<compile_context>
chip_gen: v7x
topology: tpu7x:2x2x1
jax: 0.10.0
libtpu: 0.0.40
codegen_flags: <defaults>
</compile_context>

<pallas_src>
import functools

import jax
import jax.numpy as jnp
from jax import lax
from jax.experimental import pallas as pl
from jax.experimental.pallas import tpu as pltpu


# ---------------------------------------------------------------------------
# helpers
# ---------------------------------------------------------------------------

_TARGET_STREAM_BYTES = 8 * 1024 * 1024      # cap on the streaming input tile
_MIN_PALLAS_BYTES = 256 * 1024              # below this, launch overhead dominates


def _cdiv(a, b):
    return -(-a // b)


def _round_up(a, b):
    return ((a + b - 1) // b) * b


def _sublane_multiple(dtype):
    # 8 sublanes for 32-bit, 16 for 16-bit, 32 for 8-bit dtypes.
    return 8 * max(1, 4 // jnp.dtype(dtype).itemsize)


def _padded_tile_bytes(sub, lane, dtype):
    """Bytes of a (sub, lane) VMEM slab after (sublane, 128)-tile padding."""
    it = jnp.dtype(dtype).itemsize
    return _round_up(sub, _sublane_multiple(dtype)) * _round_up(lane, 128) * it


def _vmem_limit_bytes():
    """Generation-aware scoped-VMEM limit (~half of physical capacity):
    ~32 MiB on v7x (64 MiB physical), ~64 MiB on v5e/v6e (128 MiB physical)."""
    try:
        cap = int(pltpu.get_tpu_info().vmem_capacity_bytes)
    except Exception:          # conservative default if the query is unavailable
        cap = 64 * 1024 * 1024
    return max(32 * 1024 * 1024, min(cap // 2, 96 * 1024 * 1024))


def _compute_dtype_and_precision(dtype):
    """bf16 inputs stay bf16 with default precision (exact for 0/1 matrices,
    single MXU pass); every other float uses f32 + HIGHEST (exact permutation)."""
    if dtype == jnp.bfloat16:
        return jnp.bfloat16, None
    return jnp.float32, lax.Precision.HIGHEST


def _should_use_pallas(dtype, W, r, total_bytes, vmem_limit):
    if r == 1:
        return False
    if not jnp.issubdtype(dtype, jnp.floating):
        return False           # int inputs: one-hot matmul inexact beyond 2**24
    if W % 128 != 0:
        return False           # keep every lane axis dense / unmasked
    if total_bytes < _MIN_PALLAS_BYTES:
        return False           # tiny problems: XLA transpose is faster
    cdt, _ = _compute_dtype_and_precision(dtype)
    s_bytes = r * r * W * W * jnp.dtype(cdt).itemsize
    if s_bytes > max(4 * 1024 * 1024, vmem_limit // 8):
        # TODO(synk): tile the one-hot interleave matrices along W (second grid
        # axis) for very large images instead of falling back to XLA.
        return False
    return True


def _pick_channel_block(G, in_bytes, out_bytes, temp_bytes, resident_bytes,
                        vmem_limit):
    """Channels per grid step: largest count whose working set — double-buffered
    padded in/out blocks + resident one-hot matrices + f32 temporaries — fits."""
    budget = int(vmem_limit * 0.7) - resident_bytes - (2 << 20)  # compiler slack
    per_unit = 2 * (in_bytes + out_bytes) + temp_bytes
    cb = max(1, budget // per_unit) if budget > per_unit else 1
    cb = min(cb, max(1, _TARGET_STREAM_BYTES // max(1, in_bytes)))
    cb = max(1, min(cb, G))
    if G >= 2:                 # >=2 parallel grid steps so v7x's two TCs both work
        cb = min(cb, _cdiv(G, 2))
    return int(cb)


def _lane_scatter_matrices(r, W, dtype):
    """S[j, w, q] = 1 iff q == w*r + j   (column interleave, 'up')."""
    jj = jnp.arange(r)[:, None, None]
    ww = jnp.arange(W)[None, :, None]
    q = jnp.arange(W * r)[None, None, :]
    return (q == ww * r + jj).astype(dtype)


def _lane_gather_matrices(r, W, dtype):
    """G[j, q, w] = 1 iff q == w*r + j   (column de-interleave, 'down')."""
    jj = jnp.arange(r)[:, None, None]
    q = jnp.arange(W * r)[None, :, None]
    ww = jnp.arange(W)[None, None, :]
    return (q == ww * r + jj).astype(dtype)


# ---------------------------------------------------------------------------
# pure-XLA fallback (also the reference implementation)
# ---------------------------------------------------------------------------

def _pixel_shuffle_xla(x, r):
    N, C, H, W = x.shape
    c = C // (r * r)
    return (x.reshape(N, c, r, r, H, W)
             .transpose(0, 1, 4, 2, 5, 3)
             .reshape(N, c, H * r, W * r))


def _pixel_unshuffle_xla(x, r):
    N, C, Hr, Wr = x.shape
    H, W = Hr // r, Wr // r
    return (x.reshape(N, C, H, r, W, r)
             .transpose(0, 1, 3, 5, 2, 4)
             .reshape(N, C * r * r, H, W))


# ---------------------------------------------------------------------------
# kernels
# ---------------------------------------------------------------------------

def _shuffle_kernel(x_ref, s_ref, o_ref, *, r, H, W, CB, cdt, prec):
    """PixelShuffle ('up') for CB output channels.

    x_ref: (CB, r*r, H, W)   input sub-channels
    s_ref: (r, W, W*r)       resident one-hot column-scatter matrices
    o_ref: (CB, H, r*r*W)    output view: lane index = i*(W*r) + w*r + j
    """
    Wr = W * r
    for i in range(r):                                   # r is tiny; static unroll
        acc = None
        for j in range(r):                               # K=W matmuls, no lane concat
            lhs = x_ref[:, i * r + j].astype(cdt).reshape(CB * H, W)
            part = jnp.dot(lhs, s_ref[j], preferred_element_type=jnp.float32,
                           precision=prec)               # (CB*H, W*r)
            acc = part if acc is None else acc + part
        # Aligned lane-dense store of this row-group (offsets are multiples of
        # W*r, itself a multiple of 128) — overlaps with the next row-group.
        o_ref[:, :, i * Wr:(i + 1) * Wr] = (
            acc.reshape(CB, H, Wr).astype(o_ref.dtype))


def _unshuffle_kernel(x_ref, g_ref, o_ref, *, r, H, W, CB, cdt, prec):
    """PixelUnshuffle ('down') for CB input channels.

    x_ref: (CB, H, r*W*r)    input view: lane index = i*(W*r) + (w*r + j),
                             i.e. the row phase is a free aligned lane slice
                             (dense sublanes, no (r,·) sublane padding)
    g_ref: (r, W*r, W)       resident one-hot column-gather matrices
    o_ref: (CB, r*r, H, W)   output sub-channels
    """
    Wr = W * r
    for i in range(r):
        rows = x_ref[:, :, i * Wr:(i + 1) * Wr].astype(cdt).reshape(CB * H, Wr)
        for j in range(r):
            res = jnp.dot(rows, g_ref[j], preferred_element_type=jnp.float32,
                          precision=prec)                # (CB*H, W)
            o_ref[:, i * r + j] = res.reshape(CB, H, W).astype(o_ref.dtype)


# ---------------------------------------------------------------------------
# wrappers
# ---------------------------------------------------------------------------

def pixel_shuffle(x, r):
    N, C, H, W = x.shape
    if C % (r * r) != 0:
        raise ValueError("input channels must be divisible by scale_factor**2")
    if r == 1:
        return x
    c_out = C // (r * r)
    vmem_limit = _vmem_limit_bytes()
    if not _should_use_pallas(x.dtype, W, r, x.size * x.dtype.itemsize, vmem_limit):
        return _pixel_shuffle_xla(x, r)

    cdt, prec = _compute_dtype_and_precision(x.dtype)
    G = N * c_out
    x2 = x.reshape(G, r * r, H, W)                        # free view
    s = _lane_scatter_matrices(r, W, cdt)                 # (r, W, W*r), resident

    in_b = r * r * _padded_tile_bytes(H, W, x.dtype)
    out_b = _padded_tile_bytes(H, r * r * W, x.dtype)
    temp_b = 4 * H * W * r * 4                            # f32 accumulator + casts
    s_b = int(s.size) * s.dtype.itemsize
    cb = _pick_channel_block(G, in_b, out_b, temp_b, s_b, vmem_limit)

    kernel = functools.partial(_shuffle_kernel, r=r, H=H, W=W, CB=cb,
                               cdt=cdt, prec=prec)
    flops = 2 * G * H * W * W * r ** 3 * (6 if prec is not None else 1)
    out = pl.pallas_call(
        kernel,
        out_shape=jax.ShapeDtypeStruct((G, H, r * r * W), x.dtype),
        grid=(_cdiv(G, cb),),
        in_specs=[
            pl.BlockSpec((cb, r * r, H, W), lambda g: (g, 0, 0, 0)),
            pl.BlockSpec((r, W, W * r), lambda g: (0, 0, 0)),     # VMEM-resident
        ],
        out_specs=pl.BlockSpec((cb, H, r * r * W), lambda g: (g, 0, 0)),
        compiler_params=pltpu.CompilerParams(
            dimension_semantics=("parallel",),
            vmem_limit_bytes=vmem_limit),
        cost_estimate=pl.CostEstimate(
            flops=int(flops), transcendentals=0,
            bytes_accessed=int(2 * x.size * x.dtype.itemsize + s_b)),
    )(x2, s)
    return out.reshape(N, c_out, H * r, W * r)            # free view


def pixel_unshuffle(x, r):
    N, C, Hr, Wr = x.shape
    if Hr % r != 0 or Wr % r != 0:
        raise ValueError("spatial dims must be divisible by scale_factor")
    if r == 1:
        return x
    H, W = Hr // r, Wr // r
    vmem_limit = _vmem_limit_bytes()
    if not _should_use_pallas(x.dtype, W, r, x.size * x.dtype.itemsize, vmem_limit):
        return _pixel_unshuffle_xla(x, r)

    cdt, prec = _compute_dtype_and_precision(x.dtype)
    G = N * C
    x2 = x.reshape(G, H, r * W * r)                       # free view, dense sublanes
    gm = _lane_gather_matrices(r, W, cdt)                 # (r, W*r, W), resident

    in_b = _padded_tile_bytes(H, r * W * r, x.dtype)
    out_b = r * r * _padded_tile_bytes(H, W, x.dtype)
    temp_b = 4 * H * W * r * 4                            # lhs cast + f32 results
    s_b = int(gm.size) * gm.dtype.itemsize
    cb = _pick_channel_block(G, in_b, out_b, temp_b, s_b, vmem_limit)

    kernel = functools.partial(_unshuffle_kernel, r=r, H=H, W=W, CB=cb,
                               cdt=cdt, prec=prec)
    flops = 2 * G * H * W * W * r ** 3 * (6 if prec is not None else 1)
    out = pl.pallas_call(
        kernel,
        out_shape=jax.ShapeDtypeStruct((G, r * r, H, W), x.dtype),
        grid=(_cdiv(G, cb),),
        in_specs=[
            pl.BlockSpec((cb, H, r * W * r), lambda g: (g, 0, 0)),
            pl.BlockSpec((r, W * r, W), lambda g: (0, 0, 0)),     # VMEM-resident
        ],
        out_specs=pl.BlockSpec((cb, r * r, H, W), lambda g: (g, 0, 0, 0)),
        compiler_params=pltpu.CompilerParams(
            dimension_semantics=("parallel",),
            vmem_limit_bytes=vmem_limit),
        cost_estimate=pl.CostEstimate(
            flops=int(flops), transcendentals=0,
            bytes_accessed=int(2 * x.size * x.dtype.itemsize + s_b)),
    )(x2, gm)
    return out.reshape(N, C * r * r, H, W)                # free view


class PixelShuffleCell:
    """JAX/Pallas port of src/modules/cell.py::PixelShuffleCell (no parameters)."""

    def __init__(self, cell_info):
        self.cell_info = dict(cell_info)
        mode = cell_info["mode"]
        r = cell_info["scale_factor"]
        if mode == "down":
            self._fn = functools.partial(pixel_unshuffle, r=r)
        elif mode == "up":
            self._fn = functools.partial(pixel_shuffle, r=r)
        else:
            raise ValueError("Not valid model mode")

    def __call__(self, x):
        return self._fn(x)


if __name__ == "__main__":
    key = jax.random.PRNGKey(0)
    k_up, k_dn = jax.random.split(key)
    r = 2
    vmem_limit = _vmem_limit_bytes()

    # mode='up' (nn.PixelShuffle): (2, 8, 64, 128) -> (2, 2, 128, 256)
    x_up = jax.random.normal(k_up, (2, 8, 64, 128), jnp.float32)
    assert _should_use_pallas(x_up.dtype, 128, r,
                              x_up.size * x_up.dtype.itemsize, vmem_limit)
    up_cell = PixelShuffleCell({"mode": "up", "scale_factor": r})
    y_up = jax.block_until_ready(up_cell(x_up))
    ref_up = _pixel_shuffle_xla(x_up, r)
    assert y_up.shape == (2, 2, 128, 256) and y_up.dtype == x_up.dtype
    assert jnp.allclose(y_up, ref_up, atol=1e-6, rtol=1e-6)

    # bf16 exercises the single-pass default-precision MXU path.
    y_up_bf = jax.block_until_ready(up_cell(x_up.astype(jnp.bfloat16)))
    assert jnp.allclose(y_up_bf.astype(jnp.float32),
                        ref_up.astype(jnp.bfloat16).astype(jnp.float32),
                        atol=1e-2, rtol=1e-2)

    # mode='down' (nn.PixelUnshuffle): (2, 4, 128, 256) -> (2, 16, 64, 128)
    x_dn = jax.random.normal(k_dn, (2, 4, 128, 256), jnp.float32)
    assert _should_use_pallas(x_dn.dtype, 128, r,
                              x_dn.size * x_dn.dtype.itemsize, vmem_limit)
    dn_cell = PixelShuffleCell({"mode": "down", "scale_factor": r})
    y_dn = jax.block_until_ready(dn_cell(x_dn))
    ref_dn = _pixel_unshuffle_xla(x_dn, r)
    assert y_dn.shape == (2, 16, 64, 128) and y_dn.dtype == x_dn.dtype
    assert jnp.allclose(y_dn, ref_dn, atol=1e-6, rtol=1e-6)

    # tiny / lane-unaligned shapes dispatch to the exact XLA fallback.
    x_tiny = jax.random.normal(k_up, (2, 4, 16, 16), jnp.float32)
    y_tiny = jax.block_until_ready(up_cell(x_tiny))
    assert jnp.allclose(y_tiny, _pixel_shuffle_xla(x_tiny, r), atol=1e-6, rtol=1e-6)

    print("KERNEL_OK")
</pallas_src>

<mosaic_0001>
module attributes {stable_mosaic.version = 11 : i64} {
  func.func @_shuffle_kernel(%arg0: i32, %arg1: memref<2x4x64x128xf32, #tpu.memory_space<vmem>>, %arg2: memref<2x128x256xf32, #tpu.memory_space<vmem>>, %arg3: memref<2x64x512xf32, #tpu.memory_space<vmem>>) attributes {dimension_semantics = [#tpu.dimension_semantics<parallel>], iteration_bounds = array<i64: 2>, scalar_prefetch = 0 : i64, scratch_operands = 0 : i64, tpu.core_type = #tpu.core_type<tc>, window_params = [{transform_indices = @transform_0, window_bounds = array<i64: 2, 4, 64, 128>}, {pipeline_mode = #tpu.pipeline_mode<synchronous>, transform_indices = @transform_1, window_bounds = array<i64: 2, 128, 256>}, {transform_indices = @transform_2, window_bounds = array<i64: 2, 64, 512>}]} {
    %c0 = arith.constant 0 : index
    %c0_0 = arith.constant 0 : index
    %c0_1 = arith.constant 0 : index
    %c0_2 = arith.constant 0 : index
    %0 = vector.load %arg1[%c0, %c0_0, %c0_1, %c0_2] : memref<2x4x64x128xf32, #tpu.memory_space<vmem>>, vector<2x1x64x128xf32>
    %1 = vector.shape_cast %0 : vector<2x1x64x128xf32> to vector<2x64x128xf32>
    %2 = vector.shape_cast %1 : vector<2x64x128xf32> to vector<128x128xf32>
    %c0_3 = arith.constant 0 : index
    %c0_4 = arith.constant 0 : index
    %c0_5 = arith.constant 0 : index
    %3 = vector.load %arg2[%c0_3, %c0_4, %c0_5] : memref<2x128x256xf32, #tpu.memory_space<vmem>>, vector<1x128x256xf32>
    %4 = vector.shape_cast %3 : vector<1x128x256xf32> to vector<128x256xf32>
    %cst = arith.constant dense<0.000000e+00> : vector<128x256xf32>
    %5 = tpu.matmul %2, %4, %cst {dimension_numbers = #tpu.dot_dimension_numbers<[1], [0], [0], [1], [0, 0, 1, 1], [], []>, precision = #tpu.contract_precision<fp32>} : vector<128x128xf32>, vector<128x256xf32>, vector<128x256xf32> -> vector<128x256xf32>
    %c0_6 = arith.constant 0 : index
    %c1 = arith.constant 1 : index
    %c0_7 = arith.constant 0 : index
    %c0_8 = arith.constant 0 : index
    %6 = vector.load %arg1[%c0_6, %c1, %c0_7, %c0_8] : memref<2x4x64x128xf32, #tpu.memory_space<vmem>>, vector<2x1x64x128xf32>
    %7 = vector.shape_cast %6 : vector<2x1x64x128xf32> to vector<2x64x128xf32>
    %8 = vector.shape_cast %7 : vector<2x64x128xf32> to vector<128x128xf32>
    %c1_9 = arith.constant 1 : index
    %c0_10 = arith.constant 0 : index
    %c0_11 = arith.constant 0 : index
    %9 = vector.load %arg2[%c1_9, %c0_10, %c0_11] : memref<2x128x256xf32, #tpu.memory_space<vmem>>, vector<1x128x256xf32>
    %10 = vector.shape_cast %9 : vector<1x128x256xf32> to vector<128x256xf32>
    %cst_12 = arith.constant dense<0.000000e+00> : vector<128x256xf32>
    %11 = tpu.matmul %8, %10, %cst_12 {dimension_numbers = #tpu.dot_dimension_numbers<[1], [0], [0], [1], [0, 0, 1, 1], [], []>, precision = #tpu.contract_precision<fp32>} : vector<128x128xf32>, vector<128x256xf32>, vector<128x256xf32> -> vector<128x256xf32>
    %12 = arith.addf %5, %11 : vector<128x256xf32>
    %13 = vector.shape_cast %12 : vector<128x256xf32> to vector<2x64x256xf32>
    %c0_13 = arith.constant 0 : index
    %c0_14 = arith.constant 0 : index
    %c0_15 = arith.constant 0 : index
    %14 = vector.load %arg3[%c0_13, %c0_14, %c0_15] : memref<2x64x512xf32, #tpu.memory_space<vmem>>, vector<2x64x256xf32>
    tpu.vector_store %arg3[%c0_13, %c0_14, %c0_15], %13 {strides = array<i32>} : memref<2x64x512xf32, #tpu.memory_space<vmem>>, vector<2x64x256xf32>,
    %c0_16 = arith.constant 0 : index
    %c2 = arith.constant 2 : index
    %c0_17 = arith.constant 0 : index
    %c0_18 = arith.constant 0 : index
    %15 = vector.load %arg1[%c0_16, %c2, %c0_17, %c0_18] : memref<2x4x64x128xf32, #tpu.memory_space<vmem>>, vector<2x1x64x128xf32>
    %16 = vector.shape_cast %15 : vector<2x1x64x128xf32> to vector<2x64x128xf32>
    %17 = vector.shape_cast %16 : vector<2x64x128xf32> to vector<128x128xf32>
    %c0_19 = arith.constant 0 : index
    %c0_20 = arith.constant 0 : index
    %c0_21 = arith.constant 0 : index
    %18 = vector.load %arg2[%c0_19, %c0_20, %c0_21] : memref<2x128x256xf32, #tpu.memory_space<vmem>>, vector<1x128x256xf32>
    %19 = vector.shape_cast %18 : vector<1x128x256xf32> to vector<128x256xf32>
    %cst_22 = arith.constant dense<0.000000e+00> : vector<128x256xf32>
    %20 = tpu.matmul %17, %19, %cst_22 {dimension_numbers = #tpu.dot_dimension_numbers<[1], [0], [0], [1], [0, 0, 1, 1], [], []>, precision = #tpu.contract_precision<fp32>} : vector<128x128xf32>, vector<128x256xf32>, vector<128x256xf32> -> vector<128x256xf32>
    %c0_23 = arith.constant 0 : index
    %c3 = arith.constant 3 : index
    %c0_24 = arith.constant 0 : index
    %c0_25 = arith.constant 0 : index
    %21 = vector.load %arg1[%c0_23, %c3, %c0_24, %c0_25] : memref<2x4x64x128xf32, #tpu.memory_space<vmem>>, vector<2x1x64x128xf32>
    %22 = vector.shape_cast %21 : vector<2x1x64x128xf32> to vector<2x64x128xf32>
    %23 = vector.shape_cast %22 : vector<2x64x128xf32> to vector<128x128xf32>
    %c1_26 = arith.constant 1 : index
    %c0_27 = arith.constant 0 : index
    %c0_28 = arith.constant 0 : index
    %24 = vector.load %arg2[%c1_26, %c0_27, %c0_28] : memref<2x128x256xf32, #tpu.memory_space<vmem>>, vector<1x128x256xf32>
    %25 = vector.shape_cast %24 : vector<1x128x256xf32> to vector<128x256xf32>
    %cst_29 = arith.constant dense<0.000000e+00> : vector<128x256xf32>
    %26 = tpu.matmul %23, %25, %cst_29 {dimension_numbers = #tpu.dot_dimension_numbers<[1], [0], [0], [1], [0, 0, 1, 1], [], []>, precision = #tpu.contract_precision<fp32>} : vector<128x128xf32>, vector<128x256xf32>, vector<128x256xf32> -> vector<128x256xf32>
    %27 = arith.addf %20, %26 : vector<128x256xf32>
    %28 = vector.shape_cast %27 : vector<128x256xf32> to vector<2x64x256xf32>
    %c0_30 = arith.constant 0 : index
    %c0_31 = arith.constant 0 : index
    %c256 = arith.constant 256 : index
    %29 = vector.load %arg3[%c0_30, %c0_31, %c256] : memref<2x64x512xf32, #tpu.memory_space<vmem>>, vector<2x64x256xf32>
    tpu.vector_store %arg3[%c0_30, %c0_31, %c256], %28 {strides = array<i32>} : memref<2x64x512xf32, #tpu.memory_space<vmem>>, vector<2x64x256xf32>,
    return
  }
  func.func @transform_0(%arg0: i32) -> (i32, i32, i32, i32) {
    %c0_i32 = arith.constant 0 : i32
    %c0_i32_0 = arith.constant 0 : i32
    %c0_i32_1 = arith.constant 0 : i32
    %c0_i32_2 = arith.constant 0 : i32
    return %arg0, %c0_i32, %c0_i32_0, %c0_i32_1 : i32, i32, i32, i32
  }
  func.func @transform_1(%arg0: i32) -> (i32, i32, i32) {
    %c0_i32 = arith.constant 0 : i32
    %c0_i32_0 = arith.constant 0 : i32
    %c0_i32_1 = arith.constant 0 : i32
    %c0_i32_2 = arith.constant 0 : i32
    return %c0_i32, %c0_i32_0, %c0_i32_1 : i32, i32, i32
  }
  func.func @transform_2(%arg0: i32) -> (i32, i32, i32) {
    %c0_i32 = arith.constant 0 : i32
    %c0_i32_0 = arith.constant 0 : i32
    %c0_i32_1 = arith.constant 0 : i32
    return %arg0, %c0_i32, %c0_i32_0 : i32, i32, i32
  }
}

</mosaic_0001>

<bundles_post_ra>
// kernel: tpu_custom_call.1
= control target key start
LH: loop header
LB: loop body
LE: loop exit
PB: predicated region body
PF: predicated region fallthrough
CT: control target
= control target key end

     0   :  { %7 = vsyncpa [#allocation3], 0  ;;  %s11527_s0 = inlined_call_operand.hbm [shape: f32[4,4,64,128], index: 0, kind: input, shape index: {}]   ;;  %s11528_s1 = inlined_call_operand.hbm [shape: f32[2,128,256], index: 1, kind: input, shape index: {}]   ;;  %s11529_s2 = inlined_call_operand.hbm [shape: f32[4,64,512], index: 2, kind: output, shape index: {}]  }
   0x1   :  { %9 = vsyncpa [#allocation3 + $0x1], 0 }
   0x2   :  { %10 = vsyncpa [#allocation6], 0 }
   0x3   :  { %11 = vsyncpa [#allocation4], 0 }
   0x4   :  { %13 = vsyncpa [#allocation4 + $0x1], 0  ;;  %s8659_s9 = smov 0   ;;  %s8661_s10 = smov 0  }
   0x5   :  { %s8663_s11 = smov 0   ;;  %s8665_s12 = smov 0  }
   0x6 LB: > { %s8680_s13 = sadd.s32 4294967295, %s8632_s12   ;;  %s6898_s14 = sadd.s32 4294967294, %s8632_s12   ;;  %s8632_s12 = sphi %s8665_s12, %s12605_s12   ;;  %s8628_s11 = sphi %s8663_s11, %s12604_s11   ;;  %s8624_s10 = sphi %s8661_s10, %s12603_s10   ;;  %s8620_s9 = sphi %s8659_s9, %s12602_s9  }
   0x7   : > { %p39_p0 = scmp.ne.s32.totalorder %s8624_s10, %s8620_s9  ;;  %p11530_p1 = scmp.eq.s32.totalorder %s8680_s13, 0 }
   0x8   : > { %p90_p3 = scmp.eq.s32.totalorder %s6898_s14, 1  ;;  %p6899_p5 = scmp.ge.s32.totalorder %s8632_s12, 1 }
   0x9   : > { %p8689_p4 = por %p11530_p1, %p39_p0  ;;  %p97_p7 = scmp.lt.s32.totalorder %s8632_s12, 3 }
   0xa   : > { %p8694_p6 = por %p90_p3, %p39_p0  ;;  %s8634_s18 = smov [#allocation5]  }
   0xb   : > { %s11947_s15 = scalar_select %p8689_p4, 1, 0 }
   0xc   : > { %s11948_s16 = scalar_select %p8694_p6, 1, 0 }
   0xd   : > { %p8699_p8 = pnand %p6899_p5, %p97_p7  ;;  %s109_s19 = sshll.u32 %s8634_s18, 4  ;;  %s8703_s19 = int_to_ptr.vmem [resolvable:$true] %s109_s19 }
   0xe   : > { %s8715_s21 = sadd.s32 1, %s8632_s12   ;;  %s26_s22 = sadd.s32 1, %s8628_s11 }
   0xf   : > { %s11949_s17 = scalar_select %p8699_p8, 1, 0 }
  0x10   : > { %p8448_p9 = pneg %p8699_p8  ;;  %s23_s23 = ssub.s32 %s8632_s12, %s8715_s21 }
  0x11   : > { %s8504_s26 = scalar_lea.hbm %s11528_s1, 8192 }
  0x12   : > { %p8710_p11 = pnand %p8448_p9, %p11530_p1  ;;  %p8505_p12 = scmp.ne.s32.totalorder %s11528_s1, %s8504_s26 }
  0x13   : > { %p8511_p5 = scmp.lt.u32.totalorder %s8504_s26, %s11528_s1 }
  0x14   : > { %p8506_p13 = pneg %p8710_p11 }
  0x16   : > { %p8507_p0 = pnand %p8506_p13, %p8505_p12 }
  0x18   : > { %p8508_p3 = pneg %p8507_p0 }
  0x1a   : > { %p8513_p7 = pnand %p8511_p5, %p8508_p3 }
  0x1c   : > { %8516 = shalt.err (!%p8513_p7)
}
  0x1d   : > { %s8517_s3 = scalar_lea.vmem %s8703_s19, 8192  ;;  %p8525_p2 = scmp.lt.s32.totalorder %s8703_s19, %s8703_s19 }
  0x1e   : > { %p8518_p9 = scmp.ne.s32.totalorder %s8703_s19, %s8517_s3  ;;  %p8526_p6 = scmp.lt.s32.totalorder %s8517_s3, %s8517_s3 }
  0x20   : > { %p8520_p10 = pnand %p8518_p9, %p8506_p13  ;;  %p8527_p4 = por %p8526_p6, %p8525_p2 }
  0x22   : > { %p8521_p1 = pneg %p8520_p10 }
  0x24   : > { %p8528_p8 = pnand %p8527_p4, %p8521_p1 }
  0x26   : > { %8531 = shalt.err (!%p8528_p8)
}
  0x27   : > { %s8635_s4 = smov 256   ;;  %s8636_s5 = smov 16  }
  0x28   : > { %8451 = dma.hbm_to_vmem [thread:$0]  (!%p8710_p11), %s11528_s1, 8192, %s8703_s19, [#allocation6], %s8635_s4, %s8635_s4, %s8636_s5  }
  0x29   : > { %p24_p2 = scmp.eq.s32.totalorder %s23_s23, 0  ;;  %p33_p1 = scmp.ne.s32.totalorder %s8628_s11, %s8624_s10 }
  0x2a   : > { %p34_p4 = scmp.eq.s32.totalorder %s8632_s12, 0  ;;  %p8461_p6 = scmp.lt.s32.totalorder %s8632_s12, 2 }
  0x2b   : > { %s8746_s8 = scalar_select %p24_p2, %s8628_s11, %s26_s22  }
  0x2c   : > { %p35_p8 = por %p34_p4, %p33_p1  ;;  %p11951_p10 = scmp.eq.s32.totalorder %s8680_s13, 1 }
  0x2d   : > { %s123_s18 = sand.u32 1, %s8628_s11   ;;  %s6965_s24 = sshll.u32 %s8632_s12, 13 }
  0x2e   : > { %p8750_p12 = por %p11951_p10, %p33_p1  ;;  %s6902_s25 = sshll.u32 %s123_s18, 9 }
  0x2f   : > { %s8759_s27 = scalar_lea.hbm %s11527_s0, %s6965_s24  ;;  %s127_s19 = scalar_lea.vmem [#allocation2], %s6902_s25 }
  0x30   : > { %s135_s22 = sshll.u32 %s127_s19, 4  ;;  %p8761_p11 = pnand %p8461_p6, %p35_p8  ;;  %s8765_s22 = int_to_ptr.vmem [resolvable:$true] %s135_s22 }
  0x31   : > { %s8767_s28 = scalar_lea.sflag [#allocation3], %s123_s18  ;;  %s8532_s29 = scalar_lea.hbm %s8759_s27, 8192 }
  0x32   : > { %p8533_p13 = scmp.ne.s32.totalorder %s8759_s27, %s8532_s29  ;;  %p8534_p0 = pneg %p8761_p11 }
  0x33   : > { %s8537_s4 = scalar_lea.hbm %s11527_s0, 16384  ;;  %p8538_p7 = scmp.lt.u32.totalorder %s8759_s27, %s11527_s0 }
  0x34   : > { %p8535_p3 = pnand %p8534_p0, %p8533_p13  ;;  %p8539_p9 = scmp.lt.u32.totalorder %s8537_s4, %s8532_s29 }
  0x35   : > { %p8541_p1 = scmp.lt.u32.totalorder %s8532_s29, %s8759_s27 }
  0x36   : > { %p8536_p5 = pneg %p8535_p3  ;;  %p8540_p2 = por %p8539_p9, %p8538_p7 }
  0x38   : > { %p8542_p4 = por %p8541_p1, %p8540_p2 }
  0x3a   : > { %p8543_p6 = pnand %p8542_p4, %p8536_p5 }
  0x3c   : > { %8546 = shalt.err (!%p8543_p6)
}
  0x3d   : > { %s8547_s7 = scalar_lea.vmem %s8765_s22, 8192  ;;  %s8637_s18 = smov [#allocation2]  }
  0x3e   : > { %p8548_p8 = scmp.ne.s32.totalorder %s8765_s22, %s8547_s7  ;;  %s8552_s24 = sshll.u32 %s8637_s18, 4  ;;  %s8553_s24 = int_to_ptr.vmem [resolvable:$false] %s8552_s24 }
  0x3f   : > { %s8554_s25 = scalar_lea.vmem %s8553_s24, 16384  ;;  %p8555_p3 = scmp.lt.s32.totalorder %s8765_s22, %s8553_s24 }
  0x40   : > { %p8550_p10 = pnand %p8548_p8, %p8534_p0  ;;  %p8556_p7 = scmp.lt.s32.totalorder %s8554_s25, %s8547_s7 }
  0x42   : > { %p8551_p13 = pneg %p8550_p10  ;;  %p8557_p9 = por %p8556_p7, %p8555_p3 }
  0x44   : > { %p8558_p2 = pnand %p8557_p9, %p8551_p13 }
  0x46   : > { %8561 = shalt.err (!%p8558_p2)
}
  0x47   : > { %s8638_s20 = smov 128   ;;  %s8639_s26 = smov 8  }
  0x48   : > { %8455 = dma.hbm_to_vmem [thread:$0]  (!%p8761_p11), %s8759_s27, 8192, %s8765_s22, %s8767_s28, %s8638_s20, %s8638_s20, %s8639_s26  }
  0x49   : > { %p11954_p0 = scmp.ne.s32.totalorder %s11949_s17, 0 }
  0x4b   : > { %147 = sbr.rel (%p11954_p0) target bundleno = 1125 (0x465), region = 28 }
  0x52   : > { %s8798_s19 = sand.u32 1, %s8624_s10   ;;  %p11955_p5 = scmp.ne.s32.totalorder %s11947_s15, 0 }
  0x53   : > { %s6907_s29 = sshll.u32 %s8798_s19, 9  ;;  %s150_s30 = scalar_lea.sflag [#allocation3], %s8798_s19 }
  0x54   : > { %s8804_s3 = scalar_lea.vmem [#allocation2], %s6907_s29 }
  0x55   : > { %8607 = dma.done.wait (%p11955_p5), %s150_s30, 8192  }
  0x56   : > { %8609 = vsyncadd (%p11955_p5), %s150_s30, 4294959104  ;;  %p11956_p11 = scmp.eq.s32.totalorder %s8680_s13, 0 }
  0x58   : > { %8611 = dma.done.wait (%p11956_p11), [#allocation6], 8192   ;;  %p11957_p1 = pmov %p11956_p11 }
  0x59   : > { %v11534_v0 = vmov 0.0   ;;  %v247_v1 = vld [vmem:[#allocation5 + $0x108] sm:$0xff]  ;;  %v249_v2 = vld [vmem:[#allocation5 + $0x118] sm:$0xff]  ;;  %v246_v3 = vld [vmem:[#allocation5 + $0x100] sm:$0xff]  ;;  %s11410_s15 = scalar_lea.vmem [#allocation7], %s6907_s29  ;;  %s6967_s17 = sshll.u32 %s8680_s13, 13 }
  0x5a   : > { %8613 = vsyncadd (%p11957_p1), [#allocation6], 4294959104  ;;  %374 = vmatprep.mubr.f32.mxu0 %v11534_v0  ;;  %3684 = vmatprep.mubr.f32.mxu1 %v11534_v0  ;;  %v278_v4 = vand.u32 4294901760, %v247_v1  ;;  %v282_v5 = vand.u32 4294901760, %v249_v2  ;;  %v248_v6 = vld [vmem:[#allocation5 + $0x110] sm:$0xff]  ;;  %v280_v7 = vand.u32 4294901760, %v246_v3  ;;  %s11477_s28 = scalar_lea.hbm %s11529_s2, %s6967_s17 }
  0x5b   : > { %v251_v8 = vld [vmem:[#allocation5 + $0x128] sm:$0xff]  ;;  %v253_v9 = vld [vmem:[#allocation5 + $0x138] sm:$0xff]  ;;  %v284_v10 = vand.u32 4294901760, %v248_v6  ;;  %v250_v13 = vld [vmem:[#allocation5 + $0x120] sm:$0xff]  ;;  %s6815_s27 = sshll.u32 %s11410_s15, 4  ;;  %s6801_s13 = scalar_lea.sflag [#allocation4], %s8798_s19  ;;  %s11479_s27 = int_to_ptr.vmem [resolvable:$true] %s6815_s27 }
  0x5c   : > { %v286_v11 = vand.u32 4294901760, %v251_v8  ;;  %v290_v12 = vand.u32 4294901760, %v253_v9  ;;  %v252_v14 = vld [vmem:[#allocation5 + $0x130] sm:$0xff]  ;;  %v255_v15 = vld [vmem:[#allocation5 + $0x148] sm:$0xff]  ;;  %v8816_v16 = vpack.c.bf16 %v282_v5, %v278_v4  ;;  %v8818_v17 = vsub.f32 %v247_v1, %v278_v4  ;;  %v257_v20 = vld [vmem:[#allocation5 + $0x158] sm:$0xff]  ;;  %s8562_s4 = scalar_lea.vmem %s11479_s27, 8192 }
  0x5d   : > { %v8820_v18 = vsub.f32 %v249_v2, %v282_v5  ;;  %v8822_v19 = vsub.f32 %v246_v3, %v280_v7  ;;  %v254_v21 = vld [vmem:[#allocation5 + $0x140] sm:$0xff]  ;;  %v256_v22 = vld [vmem:[#allocation5 + $0x150] sm:$0xff]  ;;  %v8824_v23 = vpack.c.bf16 %v284_v10, %v280_v7  ;;  %v8826_v24 = vsub.f32 %v248_v6, %v284_v10  ;;  %v259_v27 = vld [vmem:[#allocation5 + $0x168] sm:$0xff]  ;;  %p8563_p4 = scmp.ne.s32.totalorder %s11479_s27, %s8562_s4  ;;  %s8641_s5 = smov [#allocation7]  }
  0x5e   : > { %11958 = vst [vmem:[#allocation11_spill] sm:$0xff] %v8816_v16  ;;  %v8828_v25 = vpack.c.bf16 %v290_v12, %v286_v11  ;;  %v8830_v26 = vsub.f32 %v251_v8, %v286_v11  ;;  %v261_v28 = vld [vmem:[#allocation5 + $0x178] sm:$0xff]  ;;  %6969 = vmatprep.subr.bf16.mxu0 %v8816_v16  ;;  %7353 = vmatprep.subr.bf16.mxu1 %v8816_v16  ;;  %v288_v30 = vand.u32 4294901760, %v250_v13  ;;  %v292_v31 = vand.u32 4294901760, %v252_v14  ;;  %v258_v37 = vld [vmem:[#allocation5 + $0x160] sm:$0xff]  ;;  %v260_v42 = vld [vmem:[#allocation5 + $0x170] sm:$0xff] }
  0x5f   : > { %11959 = vst [vmem:[#allocation12_spill] sm:$0xff] %v8824_v23  ;;  %v8834_v29 = vsub.f32 %v253_v9, %v290_v12  ;;  %v294_v32 = vand.u32 4294901760, %v255_v15  ;;  %6971 = vmatpush1.bf16.msra.mxu0 %v8824_v23  ;;  %7355 = vmatpush1.bf16.msra.mxu1 %v8824_v23  ;;  %v298_v33 = vand.u32 4294901760, %v257_v20  ;;  %v296_v34 = vand.u32 4294901760, %v254_v21  ;;  %v263_v43 = vld [vmem:[#allocation5 + $0x188] sm:$0xff]  ;;  %v265_v44 = vld [vmem:[#allocation5 + $0x198] sm:$0xff]  ;;  %p8564_p6 = pnand %p8563_p4, %p8750_p12 }
  0x60   : > { %11960 = vst [vmem:[#allocation13_spill] sm:$0xff] %v8828_v25  ;;  %v300_v35 = vand.u32 4294901760, %v256_v22  ;;  %v302_v36 = vand.u32 4294901760, %v259_v27  ;;  %6973 = vmatprep.subr.bf16.mxu0 %v8828_v25  ;;  %7357 = vmatprep.subr.bf16.mxu1 %v8828_v25  ;;  %v8840_v38 = vpack.c.bf16 %v292_v31, %v288_v30  ;;  %v8842_v39 = vsub.f32 %v250_v13, %v288_v30  ;;  %v262_v49 = vld [vmem:[#allocation5 + $0x180] sm:$0xff]  ;;  %v264_v50 = vld [vmem:[#allocation5 + $0x190] sm:$0xff]  ;;  %v267_v51 = vld [vmem:[#allocation5 + $0x1a8] sm:$0xff] }
  0x61   : > { %v8844_v40 = vsub.f32 %v252_v14, %v292_v31  ;;  %v306_v41 = vand.u32 4294901760, %v261_v28  ;;  %v8846_v45 = vpack.c.bf16 %v298_v33, %v294_v32  ;;  %v8848_v46 = vsub.f32 %v255_v15, %v294_v32  ;;  %v269_v60 = vld [vmem:[#allocation5 + $0x1b8] sm:$0xff]  ;;  %v266_v2 = vld [vmem:[#allocation5 + $0x1a0] sm:$0xff]  ;;  %v268_v3 = vld [vmem:[#allocation5 + $0x1b0] sm:$0xff]  ;;  %p8565_p8 = pneg %p8564_p6  ;;  %s8566_s6 = sshll.u32 %s8641_s5, 4  ;;  %s8567_s6 = int_to_ptr.vmem [resolvable:$false] %s8566_s6 }
  0x62   : > { %11961 = vst [vmem:[#allocation14_spill] sm:$0xff] %v8840_v38  ;;  %v8850_v47 = vsub.f32 %v257_v20, %v298_v33  ;;  %v8852_v48 = vpack.c.bf16 %v300_v35, %v296_v34  ;;  %v8854_v52 = vsub.f32 %v254_v21, %v296_v34  ;;  %v8856_v53 = vsub.f32 %v256_v22, %v300_v35  ;;  %v271_v8 = vld [vmem:[#allocation5 + $0x1c8] sm:$0xff]  ;;  %v273_v9 = vld [vmem:[#allocation5 + $0x1d8] sm:$0xff]  ;;  %v270_v10 = vld [vmem:[#allocation5 + $0x1c0] sm:$0xff]  ;;  %s8568_s7 = scalar_lea.vmem %s8567_s6, 16384  ;;  %p8569_p10 = scmp.lt.s32.totalorder %s11479_s27, %s8567_s6 }
  0x63   : > { %11962 = vst [vmem:[#allocation15_spill] sm:$0xff] %v8846_v45  ;;  %v8858_v54 = vpack.c.bf16 %v306_v41, %v302_v36  ;;  %v8860_v55 = vsub.f32 %v259_v27, %v302_v36  ;;  %6975 = vmatpush1.bf16.msra.mxu0 %v8840_v38  ;;  %7359 = vmatpush1.bf16.msra.mxu1 %v8840_v38  ;;  %v304_v57 = vand.u32 4294901760, %v258_v37  ;;  %v308_v58 = vand.u32 4294901760, %v260_v42  ;;  %v272_v15 = vld [vmem:[#allocation5 + $0x1d0] sm:$0xff]  ;;  %v275_v33 = vld [vmem:[#allocation5 + $0x1e8] sm:$0xff]  ;;  %p8570_p13 = scmp.lt.s32.totalorder %s8568_s7, %s8562_s4 }
  0x64   : > { %11963 = vst [vmem:[#allocation16_spill] sm:$0xff] %v8852_v48  ;;  %v8864_v56 = vsub.f32 %v261_v28, %v306_v41  ;;  %v310_v59 = vand.u32 4294901760, %v263_v43  ;;  %6977 = vmatprep.subr.bf16.mxu0 %v8846_v45  ;;  %7361 = vmatprep.subr.bf16.mxu1 %v8846_v45  ;;  %v314_v61 = vand.u32 4294901760, %v265_v44  ;;  %v312_v62 = vand.u32 4294901760, %v262_v49  ;;  %v277_v41 = vld [vmem:[#allocation5 + $0x1f8] sm:$0xff] }
  0x65   : > { %11964 = vst [vmem:[#allocation17_spill] sm:$0xff] %v8858_v54  ;;  %v316_v63 = vand.u32 4294901760, %v264_v50  ;;  %v318_v1 = vand.u32 4294901760, %v267_v51  ;;  %v8868_v4 = vpack.c.bf16 %v308_v58, %v304_v57  ;;  %v8870_v5 = vsub.f32 %v258_v37, %v304_v57  ;;  %v6910_v57 = vld [vmem:[%s8804_s3 + $0x40] sm:$0xff]  ;;  %p8571_p3 = por %p8570_p13, %p8569_p10 }
  0x66   : > { %v8872_v6 = vsub.f32 %v260_v42, %v308_v58  ;;  %v8874_v7 = vsub.f32 %v263_v43, %v310_v59  ;;  %v8876_v11 = vpack.c.bf16 %v314_v61, %v310_v59  ;;  %v8878_v12 = vsub.f32 %v265_v44, %v314_v61  ;;  %v274_v42 = vld [vmem:[#allocation5 + $0x1e0] sm:$0xff]  ;;  %v276_v43 = vld [vmem:[#allocation5 + $0x1f0] sm:$0xff] }
  0x67   : > { %11965 = vst [vmem:[#allocation18_spill] sm:$0xff] %v8868_v4  ;;  %v8880_v13 = vpack.c.bf16 %v316_v63, %v312_v62  ;;  %v8882_v14 = vsub.f32 %v262_v49, %v312_v62  ;;  %6979 = vmatpush1.bf16.msra.mxu0 %v8852_v48  ;;  %7363 = vmatpush1.bf16.msra.mxu1 %v8852_v48  ;;  %v322_v21 = vand.u32 4294901760, %v269_v60  ;;  %v320_v27 = vand.u32 4294901760, %v266_v2  ;;  %v6944_v48 = vld [vmem:[%s8804_s3 + $0xd0] sm:$0xff]  ;;  %p8572_p7 = pnand %p8571_p3, %p8565_p8 }
  0x68   : > { %11966 = vst [vmem:[#allocation19_spill] sm:$0xff] %v8876_v11  ;;  %v8886_v20 = vsub.f32 %v264_v50, %v316_v63  ;;  %v8888_v22 = vsub.f32 %v267_v51, %v318_v1  ;;  %6981 = vmatprep.subr.bf16.mxu0 %v8858_v54  ;;  %7365 = vmatprep.subr.bf16.mxu1 %v8858_v54  ;;  %v324_v28 = vand.u32 4294901760, %v268_v3  ;;  %v326_v30 = vand.u32 4294901760, %v271_v8 }
  0x69   : > { %11967 = vst [vmem:[#allocation20_spill] sm:$0xff] %v8880_v13  ;;  %v330_v31 = vand.u32 4294901760, %v273_v9  ;;  %v328_v32 = vand.u32 4294901760, %v270_v10  ;;  %v8892_v34 = vpack.c.bf16 %v322_v21, %v318_v1  ;;  %v8894_v35 = vsub.f32 %v269_v60, %v322_v21 }
  0x6a   : > { %v8896_v36 = vsub.f32 %v266_v2, %v320_v27  ;;  %v332_v37 = vand.u32 4294901760, %v272_v15  ;;  %v8898_v44 = vpack.c.bf16 %v324_v28, %v320_v27  ;;  %v8900_v49 = vsub.f32 %v268_v3, %v324_v28  ;;  %v6942_v3 = vld [vmem:[%s8804_s3 + $0xc0] sm:$0xff]  ;;  %v6911_v27 = vld [vmem:[%s8804_s3 + $0x48] sm:$0xff] }
  0x6b   : > { %11968 = vst [vmem:[#allocation21_spill] sm:$0xff] %v8892_v34  ;;  %v8902_v50 = vpack.c.bf16 %v330_v31, %v326_v30  ;;  %v8904_v51 = vsub.f32 %v271_v8, %v326_v30  ;;  %6983 = vmatpush1.bf16.msra.mxu0 %v8868_v4  ;;  %7367 = vmatpush1.bf16.msra.mxu1 %v8868_v4  ;;  %v334_v61 = vand.u32 4294901760, %v275_v33  ;;  %v338_v63 = vand.u32 4294901760, %v277_v41 }
  0x6c   : > { %11969 = vst [vmem:[#allocation22_spill] sm:$0xff] %v8898_v44  ;;  %v8909_v58 = vsub.f32 %v273_v9, %v330_v31  ;;  %v8911_v59 = vpack.c.bf16 %v332_v37, %v328_v32  ;;  %v8913_v60 = vsub.f32 %v270_v10, %v328_v32  ;;  %6985 = vmatprep.subr.bf16.mxu0 %v8876_v11  ;;  %v336_v1 = vand.u32 4294901760, %v274_v42  ;;  %v6943_v32 = vld [vmem:[%s8804_s3 + $0xc8] sm:$0xff] }
  0x6d   : > { %11970 = vst [vmem:[#allocation23_spill] sm:$0xff] %v8902_v50  ;;  %7369 = vmatprep.subr.bf16.mxu1 %v8876_v11  ;;  %v8917_v62 = vsub.f32 %v272_v15, %v332_v37  ;;  %v340_v2 = vand.u32 4294901760, %v276_v43  ;;  %v8920_v8 = vsub.f32 %v275_v33, %v334_v61  ;;  %v8922_v9 = vand.u32 4294901760, %v6910_v57 }
  0x6e   : > { %11971 = vst [vmem:[#allocation24_spill] sm:$0xff] %v8911_v59  ;;  %v11533_v21 = vand.u32 4294901760, %v8818_v17  ;;  %v11540_v10 = vand.u32 4294901760, %v8820_v18  ;;  %v8927_v28 = vpack.c.bf16 %v338_v63, %v334_v61  ;;  %v8929_v30 = vsub.f32 %v277_v41, %v338_v63 }
  0x6f   : > { %11972 = vst [vmem:[#allocation25_spill] sm:$0xff] %v8922_v9  ;;  %v8931_v15 = vpack.c.bf16 %v340_v2, %v336_v1  ;;  %v8933_v31 = vsub.f32 %v274_v42, %v336_v1  ;;  %6987 = vmatpush1.bf16.msra.mxu0 %v8880_v13  ;;  %7371 = vmatpush1.bf16.msra.mxu1 %v8880_v13  ;;  %v8946_v61 = vand.u32 4294901760, %v6942_v3  ;;  %v11546_v63 = vand.u32 4294901760, %v8826_v24  ;;  %v6912_v1 = vld [vmem:[%s8804_s3 + $0x50] sm:$0xff] }
  0x70   : > { %11973 = vst [vmem:[#allocation26_spill] sm:$0xff] %v8927_v28  ;;  %v8938_v33 = vsub.f32 %v276_v43, %v340_v2  ;;  %v8941_v37 = vsub.f32 %v6910_v57, %v8922_v9  ;;  %v554_v41 = vsub.f32 %v8818_v17, %v11533_v21  ;;  %6989 = vmatprep.subr.bf16.mxu0 %v8892_v34  ;;  %v11545_v43 = vand.u32 4294901760, %v8822_v19 }
  0x71   : > { %11974 = vst [vmem:[#allocation27_spill] sm:$0xff] %v8931_v15  ;;  %11976 = vst [vmem:[#allocation29_spill] sm:$0xff] %v8946_v61  ;;  %7373 = vmatprep.subr.bf16.mxu1 %v8892_v34  ;;  %v566_v42 = vsub.f32 %v8820_v18, %v11540_v10  ;;  %v8955_v57 = vand.u32 4294901760, %v6911_v27  ;;  %v8960_v0 = vsub.f32 %v6942_v3, %v8946_v61  ;;  %v8962_v13 = vand.u32 4294901760, %v6943_v32 }
  0x72   : > { %11975 = vst [vmem:[#allocation28_spill] sm:$0xff] %v8941_v37  ;;  %v11555_v2 = vand.u32 4294901760, %v8941_v37  ;;  %v555_v21 = vand.u32 4294901760, %v554_v41  ;;  %v560_v10 = vsub.f32 %v8822_v19, %v11545_v43  ;;  %v572_v11 = vsub.f32 %v8826_v24, %v11546_v63 }
  0x73   : > { %11977 = vst [vmem:[#allocation30_spill] sm:$0xff] %v8955_v57  ;;  %11978 = vst [vmem:[#allocation31_spill] sm:$0xff] %v8960_v0  ;;  %v567_v34 = vand.u32 4294901760, %v566_v42  ;;  %v8971_v4 = vsub.f32 %v6911_v27, %v8955_v57  ;;  %6991 = vmatpush1.bf16.msra.mxu0 %v8898_v44  ;;  %7375 = vmatpush1.bf16.msra.mxu1 %v8898_v44  ;;  %v11562_v41 = vand.u32 4294901760, %v8960_v0  ;;  %v8982_v43 = vand.u32 4294901760, %v6912_v1 }
  0x74   : > { %11979 = vst [vmem:[#allocation32_spill] sm:$0xff] %v8962_v13  ;;  %v378_v3 = vsub.f32 %v8941_v37, %v11555_v2  ;;  %v8980_v42 = vsub.f32 %v6943_v32, %v8962_v13  ;;  %6993 = vmatprep.subr.bf16.mxu0 %v8902_v50  ;;  %7377 = vmatprep.subr.bf16.mxu1 %v8902_v50  ;;  %v561_v63 = vand.u32 4294901760, %v560_v10  ;;  %v573_v54 = vand.u32 4294901760, %v572_v11 }
  0x75   : > { %11980 = vst [vmem:[#allocation33_spill] sm:$0xff] %v8971_v4  ;;  %11982 = vst [vmem:[#allocation35_spill] sm:$0xff] %v8982_v43  ;;  %v7000_v27 = vpack.c.bf16 %v567_v34, %v555_v21  ;;  %v11560_v44 = vand.u32 4294901760, %v8971_v4  ;;  %v3688_v2 = vsub.f32 %v8960_v0, %v11562_v41  ;;  %v8993_v38 = vsub.f32 %v6912_v1, %v8982_v43 }
  0x76   : > { %11981 = vst [vmem:[#allocation34_spill] sm:$0xff] %v8980_v42  ;;  %v379_v45 = vand.u32 4294901760, %v378_v3  ;;  %v11561_v32 = vand.u32 4294901760, %v8980_v42  ;;  %v7002_v25 = vpack.c.bf16 %v573_v54, %v561_v63  ;;  %v11569_v11 = vand.u32 4294901760, %v8830_v26  ;;  %v6913_v3 = vld [vmem:[%s8804_s3 + $0x58] sm:$0xff] }
  0x77   : > { %11983 = vst [vmem:[#allocation36_spill] sm:$0xff] %v8993_v38  ;;  %v8998_v34 = vsub.f32 %v8971_v4, %v11560_v44  ;;  %v11576_v21 = vand.u32 4294901760, %v8834_v29  ;;  %6995 = vmatpush1.bf16.msra.mxu0 %v8911_v59  ;;  %7379 = vmatpush1.bf16.msra.mxu1 %v8911_v59  ;;  %v3689_v10 = vand.u32 4294901760, %v3688_v2  ;;  %v9010_v1 = vand.u32 4294901760, %v6944_v48  ;;  %v6945_v63 = vld [vmem:[%s8804_s3 + $0xd8] sm:$0xff] }
  0x78   : > { %v9007_v54 = vsub.f32 %v8980_v42, %v11561_v32  ;;  %6997 = vmatprep.subr.bf16.mxu0 %v8927_v28  ;;  %7381 = vmatprep.subr.bf16.mxu1 %v8927_v28  ;;  %v578_v2 = vsub.f32 %v8830_v26, %v11569_v11  ;;  %v11579_v41 = vand.u32 4294901760, %v8842_v39  ;;  %v11985_v50 = vand.u32 4294901760, %v8993_v38  ;;  %v6914_v42 = vld [vmem:[%s8804_s3 + $0x60] sm:$0xff] }
  0x79   : > { %11984 = vst [vmem:[#allocation37_spill] sm:$0xff] %v9010_v1  ;;  %v390_v44 = vand.u32 4294901760, %v8998_v34  ;;  %v590_v32 = vsub.f32 %v8834_v29, %v11576_v21  ;;  %v9031_v34 = vsub.f32 %v6944_v48, %v9010_v1  ;;  %v11590_v11 = vand.u32 4294901760, %v8844_v40 }
  0x7a   : > { %v3700_v59 = vand.u32 4294901760, %v9007_v54  ;;  %v9028_v28 = vsub.f32 %v8993_v38, %v11985_v50  ;;  %v579_v4 = vand.u32 4294901760, %v578_v2  ;;  %v584_v21 = vsub.f32 %v8842_v39, %v11579_v41 }
  0x7b   : > { %11986 = vst [vmem:[#allocation38_spill] sm:$0xff] %v9031_v34  ;;  %v591_v23 = vand.u32 4294901760, %v590_v32  ;;  %v9038_v0 = vand.u32 4294901760, %v6913_v3  ;;  %6999 = vmatpush1.bf16.msra.mxu0 %v8931_v15  ;;  %7383 = vmatpush1.bf16.msra.mxu1 %v8931_v15  ;;  %v11591_v48 = vand.u32 4294901760, %v9031_v34  ;;  %v596_v54 = vsub.f32 %v8844_v40, %v11590_v11  ;;  %v6946_v32 = vld [vmem:[%s8804_s3 + $0xe0] sm:$0xff] }
  0x7c   : > { %v9047_v2 = vand.u32 4294901760, %v6945_v63  ;;  %7001 = vmatprep.subr.bf16.mxu0 %v7000_v27  ;;  %7385 = vmatprep.subr.bf16.mxu1 %v7000_v27  ;;  %v585_v38 = vand.u32 4294901760, %v584_v21  ;;  %v9053_v16 = vand.u32 4294901760, %v6914_v42  ;;  %v11592_v11 = vand.u32 4294901760, %v8848_v46 }
  0x7d   : > { %11987 = vst [vmem:[#allocation39_spill] sm:$0xff] %v9038_v0  ;;  %v7004_v41 = vpack.c.bf16 %v591_v23, %v579_v4  ;;  %v9051_v37 = vsub.f32 %v6913_v3, %v9038_v0  ;;  %v3710_v50 = vsub.f32 %v9031_v34, %v11591_v48  ;;  %v597_v15 = vand.u32 4294901760, %v596_v54 }
  0x7e   : > { %11988 = vst [vmem:[#allocation40_spill] sm:$0xff] %v9047_v2  ;;  %11990 = vst [vmem:[#allocation42_spill] sm:$0xff] %v9053_v16  ;;  %v9059_v1 = vsub.f32 %v6945_v63, %v9047_v2  ;;  %380 = vmatmul.mubr.f32.vlgmr.msra.gmra.mrb[0].mxu0 %v379_v45  ;;  %3690 = vmatmul.mubr.f32.vlgmr.msra.gmra.mrb[0].mxu1 %v3689_v10  ;;  %v9064_v4 = vsub.f32 %v6914_v42, %v9053_v16  ;;  %v11596_v27 = vand.u32 4294901760, %v8850_v47  ;;  %v11994_v10 = vmov 0.0   ;;  %v6916_v16 = vld [vmem:[%s8804_s3 + $0x70] sm:$0xff] }
  0x7f   : > { %11989 = vst [vmem:[#allocation41_spill] sm:$0xff] %v9051_v37  ;;  %v11593_v23 = vand.u32 4294901760, %v9051_v37  ;;  %v9067_v21 = vand.u32 4294901760, %v6946_v32  ;;  %7003 = vmatpush1.bf16.msra.mxu0 %v7002_v25  ;;  %7387 = vmatpush1.bf16.msra.mxu1 %v7002_v25  ;;  %v3711_v3 = vand.u32 4294901760, %v3710_v50  ;;  %v7006_v54 = vpack.c.bf16 %v597_v15, %v585_v38  ;;  %v6915_v15 = vld [vmem:[%s8804_s3 + $0x68] sm:$0xff] }
  0x80   : > { %11991 = vst [vmem:[#allocation43_spill] sm:$0xff] %v9059_v1  ;;  %11992 = vst [vmem:[#allocation44_spill] sm:$0xff] %v9064_v4  ;;  %v11603_v63 = vand.u32 4294901760, %v9059_v1  ;;  %v602_v45 = vsub.f32 %v8848_v46, %v11592_v11  ;;  %385 = vmatprep.mubr.f32.mxu0 %v11994_v10  ;;  %3695 = vmatprep.mubr.f32.mxu1 %v11994_v10  ;;  %v614_v25 = vsub.f32 %v8850_v47, %v11596_v27 }
  0x81   : > { %11993 = vst [vmem:[#allocation45_spill] sm:$0xff] %v9067_v21  ;;  %v411_v42 = vsub.f32 %v9051_v37, %v11593_v23  ;;  %v9083_v38 = vsub.f32 %v6946_v32, %v9067_v21  ;;  %7005 = vmatprep.subr.bf16.mxu0 %v7004_v41  ;;  %7389 = vmatprep.subr.bf16.mxu1 %v7004_v41  ;;  %v11608_v23 = vand.u32 4294901760, %v8854_v52  ;;  %v11611_v48 = vand.u32 4294901760, %v8856_v53  ;;  %v6947_v37 = vld [vmem:[%s8804_s3 + $0xe8] sm:$0xff] }
  0x82   : > { %v3721_v50 = vsub.f32 %v9059_v1, %v11603_v63  ;;  %v603_v11 = vand.u32 4294901760, %v602_v45  ;;  %391 = vmatmul.mubr.f32.gmra.mrb[2].mxu0 %v390_v44  ;;  %3701 = vmatmul.mubr.f32.gmra.mrb[2].mxu1 %v3700_v59  ;;  %v11996_v34 = vand.u32 4294901760, %v9064_v4  ;;  %v615_v41 = vand.u32 4294901760, %v614_v25 }
  0x83   : > { %11995 = vst [vmem:[#allocation46_spill] sm:$0xff] %v9083_v38  ;;  %v412_v27 = vand.u32 4294901760, %v411_v42  ;;  %v11614_v21 = vand.u32 4294901760, %v9083_v38  ;;  %396 = vmatprep.mubr.f32.mxu0 %v11994_v10  ;;  %3706 = vmatprep.mubr.f32.mxu1 %v11994_v10  ;;  %v608_v44 = vsub.f32 %v8854_v52, %v11608_v23  ;;  %v620_v59 = vsub.f32 %v8856_v53, %v11611_v48 }
  0x84   : > { %v9095_v32 = vsub.f32 %v9064_v4, %v11996_v34  ;;  %v3722_v45 = vand.u32 4294901760, %v3721_v50  ;;  %v9107_v34 = vand.u32 4294901760, %v6915_v15  ;;  %7007 = vmatpush1.bf16.msra.mxu0 %v7006_v54  ;;  %7391 = vmatpush1.bf16.msra.mxu1 %v7006_v54  ;;  %v7008_v25 = vpack.c.bf16 %v615_v41, %v603_v11  ;;  %v6948_v4 = vld [vmem:[%s8804_s3 + $0xf0] sm:$0xff] }
  0x85   : > { %v3732_v63 = vsub.f32 %v9083_v38, %v11614_v21  ;;  %v9113_v50 = vand.u32 4294901760, %v6947_v37  ;;  %v609_v1 = vand.u32 4294901760, %v608_v44  ;;  %v621_v23 = vand.u32 4294901760, %v620_v59  ;;  %v6917_v21 = vld [vmem:[%s8804_s3 + $0x78] sm:$0xff] }
  0x86   : > { %11997 = vst [vmem:[#allocation47_spill] sm:$0xff] %v9107_v34  ;;  %v423_v42 = vand.u32 4294901760, %v9095_v32  ;;  %v9117_v2 = vsub.f32 %v6915_v15, %v9107_v34  ;;  %v9119_v48 = vand.u32 4294901760, %v6916_v16  ;;  %v12001_v0 = vand.u32 4294901760, %v9028_v28  ;;  %3712 = vmatmul.mubr.f32.gmra.mrb[4].mxu1 %v3711_v3  ;;  %7009 = vmatprep.subr.bf16.mxu0 %v7008_v25 }
  0x87   : > { %11998 = vst [vmem:[#allocation48_spill] sm:$0xff] %v9113_v50  ;;  %v3733_v54 = vand.u32 4294901760, %v3732_v63  ;;  %v9124_v11 = vsub.f32 %v6947_v37, %v9113_v50  ;;  %v11616_v32 = vand.u32 4294901760, %v8860_v55  ;;  %v11615_v41 = vand.u32 4294901760, %v8864_v56  ;;  %3717 = vmatprep.mubr.f32.mxu1 %v11994_v10  ;;  %7393 = vmatprep.subr.bf16.mxu1 %v7008_v25  ;;  %v6949_v63 = vld [vmem:[%s8804_s3 + $0xf8] sm:$0xff] }
  0x88   : > { %11999 = vst [vmem:[#allocation49_spill] sm:$0xff] %v9117_v2  ;;  %12000 = vst [vmem:[#allocation50_spill] sm:$0xff] %v9119_v48  ;;  %402 = vmatmul.mubr.f32.gmra.mrb[4].mxu0 %v12001_v0  ;;  %v7010_v15 = vpack.c.bf16 %v621_v23, %v609_v1  ;;  %v11617_v44 = vand.u32 4294901760, %v9117_v2  ;;  %v9132_v28 = vsub.f32 %v6916_v16, %v9119_v48  ;;  %v9134_v0 = vand.u32 4294901760, %v6948_v4 }
  0x89   : > { %12002 = vst [vmem:[#allocation51_spill] sm:$0xff] %v9124_v11  ;;  %407 = vmatprep.mubr.f32.mxu0 %v11994_v10  ;;  %v11618_v37 = vand.u32 4294901760, %v9124_v11  ;;  %v626_v3 = vsub.f32 %v8860_v55, %v11616_v32  ;;  %v638_v1 = vsub.f32 %v8864_v56, %v11615_v41  ;;  %v11623_v23 = vand.u32 4294901760, %v8870_v5 }
  0x8a   : > { %12003 = vst [vmem:[#allocation52_spill] sm:$0xff] %v9132_v28  ;;  %12004 = vst [vmem:[#allocation53_spill] sm:$0xff] %v9134_v0  ;;  %7011 = vmatpush1.bf16.msra.mxu0 %v7010_v15  ;;  %7395 = vmatpush1.bf16.msra.mxu1 %v7010_v15  ;;  %v433_v16 = vsub.f32 %v9117_v2, %v11617_v44  ;;  %v9149_v59 = vsub.f32 %v6948_v4, %v9134_v0  ;;  %v9170_v38 = vand.u32 4294901760, %v6917_v21  ;;  %v6950_v0 = vld [vmem:[%s8804_s3 + $0x1c0] sm:$0xff] }
  0x8b   : > { %3723 = vmatmul.mubr.f32.gmra.mrb[6].mxu1 %v3722_v45  ;;  %v3743_v41 = vsub.f32 %v9124_v11, %v11618_v37  ;;  %v627_v15 = vand.u32 4294901760, %v626_v3  ;;  %v639_v32 = vand.u32 4294901760, %v638_v1  ;;  %v632_v44 = vsub.f32 %v8870_v5, %v11623_v23  ;;  %v6918_v1 = vld [vmem:[%s8804_s3 + $0x140] sm:$0xff] }
  0x8c   : > { %12005 = vst [vmem:[#allocation54_spill] sm:$0xff] %v9149_v59  ;;  %413 = vmatmul.mubr.f32.gmra.mrb[6].mxu0 %v412_v27  ;;  %3728 = vmatprep.mubr.f32.mxu1 %v11994_v10  ;;  %v434_v4 = vand.u32 4294901760, %v433_v16  ;;  %v12006_v27 = vand.u32 4294901760, %v9132_v28  ;;  %v11634_v25 = vand.u32 4294901760, %v9149_v59  ;;  %v12007_v37 = vand.u32 4294901760, %v8872_v6  ;;  %12008 = vst [vmem:[#allocation55_spill] sm:$0xff] %v9170_v38 }
  0x8d   : > { %418 = vmatprep.mubr.f32.mxu0 %v11994_v10  ;;  %v3744_v11 = vand.u32 4294901760, %v3743_v41  ;;  %v7012_v2 = vpack.c.bf16 %v639_v32, %v627_v15  ;;  %v633_v23 = vand.u32 4294901760, %v632_v44  ;;  %v11636_v32 = vand.u32 4294901760, %v8874_v7 }
  0x8e   : > { %v444_v45 = vsub.f32 %v9132_v28, %v12006_v27  ;;  %v644_v3 = vsub.f32 %v8872_v6, %v12007_v37  ;;  %v3754_v16 = vsub.f32 %v9149_v59, %v11634_v25  ;;  %v9176_v27 = vand.u32 4294901760, %v6949_v63 }
  0x8f   : > { %3734 = vmatmul.mubr.f32.gmra.mrb[8].mxu1 %v3733_v54  ;;  %v9179_v28 = vsub.f32 %v6917_v21, %v9170_v38  ;;  %v9181_v37 = vand.u32 4294901760, %v6918_v1  ;;  %v11635_v41 = vand.u32 4294901760, %v8878_v12  ;;  %7013 = vmatprep.subr.bf16.mxu0 %v7012_v2  ;;  %v6952_v38 = vld [vmem:[%s8804_s3 + $0x1d0] sm:$0xff] }
  0x90   : > { %v445_v48 = vand.u32 4294901760, %v444_v45  ;;  %v645_v50 = vand.u32 4294901760, %v644_v3  ;;  %12009 = vst [vmem:[#allocation56_spill] sm:$0xff] %v9176_v27  ;;  %424 = vmatmul.mubr.f32.gmra.mrb[8].mxu0 %v423_v42  ;;  %3739 = vmatprep.mubr.f32.mxu1 %v11994_v10  ;;  %v3755_v44 = vand.u32 4294901760, %v3754_v16  ;;  %v9188_v45 = vsub.f32 %v6949_v63, %v9176_v27  ;;  %v6919_v16 = vld [vmem:[%s8804_s3 + $0x148] sm:$0xff] }
  0x91   : > { %12010 = vst [vmem:[#allocation57_spill] sm:$0xff] %v9179_v28  ;;  %12011 = vst [vmem:[#allocation58_spill] sm:$0xff] %v9181_v37  ;;  %429 = vmatprep.mubr.f32.mxu0 %v11994_v10  ;;  %v9190_v42 = vand.u32 4294901760, %v6950_v0  ;;  %7397 = vmatprep.subr.bf16.mxu1 %v7012_v2  ;;  %v11637_v21 = vand.u32 4294901760, %v9179_v28  ;;  %v9194_v54 = vsub.f32 %v6918_v1, %v9181_v37  ;;  %v11649_v2 = vand.u32 4294901760, %v8882_v14 }
  0x92   : > { %v7014_v15 = vpack.c.bf16 %v645_v50, %v633_v23  ;;  %12012 = vst [vmem:[#allocation59_spill] sm:$0xff] %v9188_v45  ;;  %v650_v3 = vsub.f32 %v8874_v7, %v11636_v32  ;;  %v662_v50 = vsub.f32 %v8878_v12, %v11635_v41  ;;  %v11646_v23 = vand.u32 4294901760, %v9188_v45 }
  0x93   : > { %12013 = vst [vmem:[#allocation60_spill] sm:$0xff] %v9190_v42  ;;  %12014 = vst [vmem:[#allocation61_spill] sm:$0xff] %v9194_v54  ;;  %v9204_v63 = vsub.f32 %v6950_v0, %v9190_v42  ;;  %v11654_v1 = vand.u32 4294901760, %v8886_v20  ;;  %3745 = vmatmul.mubr.f32.gmra.mrb[10].mxu1 %v3744_v11  ;;  %v455_v25 = vsub.f32 %v9179_v28, %v11637_v21  ;;  %v6920_v21 = vld [vmem:[%s8804_s3 + $0x150] sm:$0xff]  ;;  %v12016_v28 = vand.u32 4294901760, %v9194_v54 }
  0x94   : > { %7015 = vmatpush1.bf16.msra.mxu0 %v7014_v15  ;;  %7399 = vmatpush1.bf16.msra.mxu1 %v7014_v15  ;;  %v651_v41 = vand.u32 4294901760, %v650_v3  ;;  %v663_v32 = vand.u32 4294901760, %v662_v50  ;;  %v3765_v0 = vsub.f32 %v9188_v45, %v11646_v23  ;;  %v656_v11 = vsub.f32 %v8882_v14, %v11649_v2  ;;  %v6951_v50 = vld [vmem:[%s8804_s3 + $0x1c8] sm:$0xff] }
  0x95   : > { %12015 = vst [vmem:[#allocation62_spill] sm:$0xff] %v9204_v63  ;;  %435 = vmatmul.mubr.f32.gmra.mrb[10].mxu0 %v434_v4  ;;  %3750 = vmatprep.mubr.f32.mxu1 %v11994_v10  ;;  %v11657_v4 = vand.u32 4294901760, %v9204_v63  ;;  %v668_v3 = vsub.f32 %v8886_v20, %v11654_v1  ;;  %v456_v15 = vand.u32 4294901760, %v455_v25  ;;  %v466_v59 = vsub.f32 %v9194_v54, %v12016_v28 }
  0x96   : > { %440 = vmatprep.mubr.f32.mxu0 %v11994_v10  ;;  %v7016_v42 = vpack.c.bf16 %v663_v32, %v651_v41  ;;  %v9230_v37 = vand.u32 4294901760, %v6919_v16  ;;  %v3766_v23 = vand.u32 4294901760, %v3765_v0  ;;  %v657_v2 = vand.u32 4294901760, %v656_v11 }
  0x97   : > { %v3776_v45 = vsub.f32 %v9204_v63, %v11657_v4  ;;  %v669_v27 = vand.u32 4294901760, %v668_v3  ;;  %3756 = vmatmul.mubr.f32.gmra.mrb[12].mxu1 %v3755_v44  ;;  %v467_v1 = vand.u32 4294901760, %v466_v59  ;;  %v9239_v34 = vand.u32 4294901760, %v6951_v50  ;;  %v6921_v4 = vld [vmem:[%s8804_s3 + $0x158] sm:$0xff] }
  0x98   : > { %12017 = vst [vmem:[#allocation63_spill] sm:$0xff] %v9230_v37  ;;  %v9237_v25 = vsub.f32 %v6919_v16, %v9230_v37  ;;  %v9241_v28 = vand.u32 4294901760, %v6920_v21  ;;  %3761 = vmatprep.mubr.f32.mxu1 %v11994_v10  ;;  %v11660_v0 = vand.u32 4294901760, %v8888_v22  ;;  %v11659_v11 = vand.u32 4294901760, %v8894_v35  ;;  %7017 = vmatprep.subr.bf16.mxu0 %v7016_v42 }
  0x99   : > { %446 = vmatmul.mubr.f32.gmra.mrb[12].mxu0 %v445_v48  ;;  %12019 = vst [vmem:[#allocation65_spill] sm:$0xff] %v9239_v34  ;;  %v3777_v32 = vand.u32 4294901760, %v3776_v45  ;;  %v7018_v41 = vpack.c.bf16 %v669_v27, %v657_v2  ;;  %7401 = vmatprep.subr.bf16.mxu1 %v7016_v42  ;;  %v9249_v59 = vsub.f32 %v6951_v50, %v9239_v34  ;;  %v9254_v16 = vand.u32 4294901760, %v6952_v38  ;;  %v6954_v34 = vld [vmem:[%s8804_s3 + $0x1e0] sm:$0xff] }
  0x9a   : > { %12018 = vst [vmem:[#allocation64_spill] sm:$0xff] %v9237_v25  ;;  %12020 = vst [vmem:[#allocation66_spill] sm:$0xff] %v9241_v28  ;;  %451 = vmatprep.mubr.f32.mxu0 %v11994_v10  ;;  %v11658_v48 = vand.u32 4294901760, %v9237_v25  ;;  %v9252_v44 = vsub.f32 %v6920_v21, %v9241_v28  ;;  %v674_v27 = vsub.f32 %v8888_v22, %v11660_v0  ;;  %v11669_v42 = vand.u32 4294901760, %v8896_v36  ;;  %v6953_v0 = vld [vmem:[%s8804_s3 + $0x1d8] sm:$0xff] }
  0x9b   : > { %12021 = vst [vmem:[#allocation67_spill] sm:$0xff] %v9249_v59  ;;  %12023 = vst [vmem:[#allocation69_spill] sm:$0xff] %v9254_v16  ;;  %7019 = vmatpush1.bf16.msra.mxu0 %v7018_v41  ;;  %7403 = vmatpush1.bf16.msra.mxu1 %v7018_v41  ;;  %v686_v45 = vsub.f32 %v8894_v35, %v11659_v11  ;;  %v11674_v2 = vand.u32 4294901760, %v8900_v49  ;;  %v11675_v3 = vand.u32 4294901760, %v9249_v59  ;;  %v9290_v28 = vand.u32 4294901760, %v6921_v4 }
  0x9c   : > { %12022 = vst [vmem:[#allocation68_spill] sm:$0xff] %v9252_v44  ;;  %3767 = vmatmul.mubr.f32.gmra.mrb[14].mxu1 %v3766_v23  ;;  %v477_v21 = vsub.f32 %v9237_v25, %v11658_v48  ;;  %v9270_v41 = vsub.f32 %v6952_v38, %v9254_v16  ;;  %v680_v48 = vsub.f32 %v8896_v36, %v11669_v42  ;;  %v12025_v25 = vand.u32 4294901760, %v9252_v44 }
  0x9d   : > { %457 = vmatmul.mubr.f32.gmra.mrb[14].mxu0 %v456_v15  ;;  %3772 = vmatprep.mubr.f32.mxu1 %v11994_v10  ;;  %v675_v15 = vand.u32 4294901760, %v674_v27  ;;  %v687_v23 = vand.u32 4294901760, %v686_v45  ;;  %v692_v11 = vsub.f32 %v8900_v49, %v11674_v2  ;;  %v3787_v38 = vsub.f32 %v9249_v59, %v11675_v3  ;;  %v6922_v45 = vld [vmem:[%s8804_s3 + $0x160] sm:$0xff]  ;;  %12026 = vst [vmem:[#allocation71_spill] sm:$0xff] %v9290_v28 }
  0x9e   : > { %12024 = vst [vmem:[#allocation70_spill] sm:$0xff] %v9270_v41  ;;  %462 = vmatprep.mubr.f32.mxu0 %v11994_v10  ;;  %v478_v50 = vand.u32 4294901760, %v477_v21  ;;  %v488_v63 = vsub.f32 %v9252_v44, %v12025_v25  ;;  %v11678_v27 = vand.u32 4294901760, %v9270_v41  ;;  %v681_v16 = vand.u32 4294901760, %v680_v48 }
  0x9f   : > { %v7020_v54 = vpack.c.bf16 %v687_v23, %v675_v15  ;;  %v693_v42 = vand.u32 4294901760, %v692_v11  ;;  %v3788_v21 = vand.u32 4294901760, %v3787_v38  ;;  %v9296_v59 = vand.u32 4294901760, %v6953_v0 }
  0xa0   : > { %3778 = vmatmul.mubr.f32.gmra.mrb[16].mxu1 %v3777_v32  ;;  %v489_v2 = vand.u32 4294901760, %v488_v63  ;;  %v3798_v3 = vsub.f32 %v9270_v41, %v11678_v27  ;;  %v9301_v11 = vsub.f32 %v6921_v4, %v9290_v28  ;;  %v9303_v48 = vand.u32 4294901760, %v6922_v45 }
  0xa1   : > { %468 = vmatmul.mubr.f32.gmra.mrb[16].mxu0 %v467_v1  ;;  %12027 = vst [vmem:[#allocation72_spill] sm:$0xff] %v9296_v59  ;;  %3783 = vmatprep.mubr.f32.mxu1 %v11994_v10  ;;  %v7022_v25 = vpack.c.bf16 %v693_v42, %v681_v16  ;;  %v11680_v1 = vand.u32 4294901760, %v8904_v51  ;;  %v9307_v32 = vsub.f32 %v6953_v0, %v9296_v59  ;;  %v11679_v15 = vand.u32 4294901760, %v8909_v58 }
  0xa2   : > { %473 = vmatprep.mubr.f32.mxu0 %v11994_v10  ;;  %12028 = vst [vmem:[#allocation73_spill] sm:$0xff] %v9301_v11  ;;  %12029 = vst [vmem:[#allocation74_spill] sm:$0xff] %v9303_v48  ;;  %7021 = vmatprep.subr.bf16.mxu0 %v7020_v54  ;;  %v3799_v63 = vand.u32 4294901760, %v3798_v3  ;;  %v9310_v23 = vand.u32 4294901760, %v6954_v34  ;;  %v11685_v4 = vand.u32 4294901760, %v9301_v11  ;;  %v9314_v16 = vsub.f32 %v6922_v45, %v9303_v48 }
  0xa3   : > { %7405 = vmatprep.subr.bf16.mxu1 %v7020_v54  ;;  %12030 = vst [vmem:[#allocation75_spill] sm:$0xff] %v9307_v32  ;;  %7023 = vmatpush1.bf16.msra.mxu0 %v7022_v25  ;;  %v698_v42 = vsub.f32 %v8904_v51, %v11680_v1  ;;  %v11690_v54 = vand.u32 4294901760, %v8913_v60  ;;  %v11693_v0 = vand.u32 4294901760, %v9307_v32  ;;  %v710_v3 = vsub.f32 %v8909_v58, %v11679_v15 }
  0xa4   : > { %12031 = vst [vmem:[#allocation76_spill] sm:$0xff] %v9310_v23  ;;  %7407 = vmatpush1.bf16.msra.mxu1 %v7022_v25  ;;  %12032 = vst [vmem:[#allocation77_spill] sm:$0xff] %v9314_v16  ;;  %v9325_v38 = vsub.f32 %v6954_v34, %v9310_v23  ;;  %v6923_v25 = vld [vmem:[%s8804_s3 + $0x168] sm:$0xff]  ;;  %v12034_v41 = vand.u32 4294901760, %v8917_v62 }
  0xa5   : > { %479 = vmatmul.mubr.f32.gmra.mrb[18].mxu0 %v478_v50  ;;  %3789 = vmatmul.mubr.f32.gmra.mrb[18].mxu1 %v3788_v21  ;;  %v499_v50 = vsub.f32 %v9301_v11, %v11685_v4  ;;  %v699_v27 = vand.u32 4294901760, %v698_v42  ;;  %v704_v15 = vsub.f32 %v8913_v60, %v11690_v54  ;;  %v3809_v34 = vsub.f32 %v9307_v32, %v11693_v0  ;;  %v6955_v4 = vld [vmem:[%s8804_s3 + $0x1e8] sm:$0xff]  ;;  %v6924_v11 = vld [vmem:[%s8804_s3 + $0x170] sm:$0xff] }
  0xa6   : > { %12033 = vst [vmem:[#allocation78_spill] sm:$0xff] %v9325_v38  ;;  %484 = vmatprep.mubr.f32.mxu0 %v11994_v10  ;;  %3794 = vmatprep.mubr.f32.mxu1 %v11994_v10  ;;  %v711_v1 = vand.u32 4294901760, %v710_v3  ;;  %v11698_v45 = vand.u32 4294901760, %v9325_v38  ;;  %v716_v44 = vsub.f32 %v8917_v62, %v12034_v41  ;;  %v12035_v42 = vand.u32 4294901760, %v9314_v16  ;;  %v6956_v41 = vld [vmem:[%s8804_s3 + $0x1f0] sm:$0xff] }
  0xa7   : > { %v500_v21 = vand.u32 4294901760, %v499_v50  ;;  %v705_v54 = vand.u32 4294901760, %v704_v15  ;;  %v9350_v48 = vand.u32 4294901760, %v6923_v25  ;;  %v3810_v0 = vand.u32 4294901760, %v3809_v34 }
  0xa8   : > { %v510_v23 = vsub.f32 %v9314_v16, %v12035_v42  ;;  %v7024_v3 = vpack.c.bf16 %v711_v1, %v699_v27  ;;  %v3820_v32 = vsub.f32 %v9325_v38, %v11698_v45  ;;  %v717_v59 = vand.u32 4294901760, %v716_v44 }
  0xa9   : > { %12036 = vst [vmem:[#allocation79_spill] sm:$0xff] %v9350_v48  ;;  %490 = vmatmul.mubr.f32.gmra.mrb[20].mxu0 %v489_v2  ;;  %3800 = vmatmul.mubr.f32.gmra.mrb[20].mxu1 %v3799_v63  ;;  %v9359_v42 = vsub.f32 %v6923_v25, %v9350_v48  ;;  %v9361_v15 = vand.u32 4294901760, %v6955_v4  ;;  %v9363_v2 = vand.u32 4294901760, %v6924_v11  ;;  %v11700_v63 = vand.u32 4294901760, %v8920_v8 }
  0xaa   : > { %495 = vmatprep.mubr.f32.mxu0 %v11994_v10  ;;  %3805 = vmatprep.mubr.f32.mxu1 %v11994_v10  ;;  %v511_v50 = vand.u32 4294901760, %v510_v23  ;;  %v3821_v27 = vand.u32 4294901760, %v3820_v32  ;;  %v7026_v1 = vpack.c.bf16 %v717_v59, %v705_v54  ;;  %v11699_v44 = vand.u32 4294901760, %v8929_v30 }
  0xab   : > { %12037 = vst [vmem:[#allocation80_spill] sm:$0xff] %v9359_v42  ;;  %12038 = vst [vmem:[#allocation81_spill] sm:$0xff] %v9361_v15  ;;  %7025 = vmatprep.subr.bf16.mxu0 %v7024_v3  ;;  %7409 = vmatprep.subr.bf16.mxu1 %v7024_v3  ;;  %v11705_v34 = vand.u32 4294901760, %v9359_v42  ;;  %v9369_v23 = vsub.f32 %v6955_v4, %v9361_v15  ;;  %v9372_v25 = vsub.f32 %v6924_v11, %v9363_v2 }
  0xac   : > { %12039 = vst [vmem:[#allocation82_spill] sm:$0xff] %v9363_v2  ;;  %v9374_v45 = vand.u32 4294901760, %v6956_v41  ;;  %v722_v59 = vsub.f32 %v8920_v8, %v11700_v63  ;;  %v734_v32 = vsub.f32 %v8929_v30, %v11699_v44  ;;  %v11710_v54 = vand.u32 4294901760, %v8933_v31  ;;  %v6925_v44 = vld [vmem:[%s8804_s3 + $0x178] sm:$0xff]  ;;  %7027 = vmatpush1.bf16.msra.mxu0 %v7026_v1  ;;  %7411 = vmatpush1.bf16.msra.mxu1 %v7026_v1 }
  0xad   : > { %12040 = vst [vmem:[#allocation83_spill] sm:$0xff] %v9369_v23  ;;  %12041 = vst [vmem:[#allocation84_spill] sm:$0xff] %v9372_v25  ;;  %501 = vmatmul.mubr.f32.gmra.mrb[22].mxu0 %v500_v21  ;;  %3811 = vmatmul.mubr.f32.gmra.mrb[22].mxu1 %v3810_v0  ;;  %v521_v11 = vsub.f32 %v9359_v42, %v11705_v34  ;;  %v12044_v16 = vand.u32 4294901760, %v8938_v33  ;;  %v6957_v42 = vld [vmem:[%s8804_s3 + $0x1f8] sm:$0xff]  ;;  %v12045_v21 = vand.u32 4294901760, %v9369_v23  ;;  %v9409_v15 = vand.u32 4294901760, %v6925_v44 }
  0xae   : > { %12042 = vst [vmem:[#allocation85_spill] sm:$0xff] %v9374_v45  ;;  %506 = vmatprep.mubr.f32.mxu0 %v11994_v10  ;;  %3816 = vmatprep.mubr.f32.mxu1 %v11994_v10  ;;  %v9392_v3 = vsub.f32 %v6956_v41, %v9374_v45  ;;  %v723_v63 = vand.u32 4294901760, %v722_v59  ;;  %v735_v4 = vand.u32 4294901760, %v734_v32  ;;  %v728_v38 = vsub.f32 %v8933_v31, %v11710_v54 }
  0xaf   : > { %v740_v34 = vsub.f32 %v8938_v33, %v12044_v16  ;;  %v522_v0 = vand.u32 4294901760, %v521_v11  ;;  %v3831_v41 = vsub.f32 %v9369_v23, %v12045_v21  ;;  %v12046_v45 = vand.u32 4294901760, %v9372_v25  ;;  %12047 = vst [vmem:[#allocation87_spill] sm:$0xff] %v9409_v15 }
  0xb0   : > { %12043 = vst [vmem:[#allocation86_spill] sm:$0xff] %v9392_v3  ;;  %v11715_v59 = vand.u32 4294901760, %v9392_v3  ;;  %v7028_v32 = vpack.c.bf16 %v735_v4, %v723_v63  ;;  %v729_v54 = vand.u32 4294901760, %v728_v38  ;;  %v9416_v21 = vand.u32 4294901760, %v6957_v42 }
  0xb1   : > { %v532_v1 = vsub.f32 %v9372_v25, %v12046_v45  ;;  %512 = vmatmul.mubr.f32.gmra.mrb[24].mxu0 %v511_v50  ;;  %3822 = vmatmul.mubr.f32.gmra.mrb[24].mxu1 %v3821_v27  ;;  %v741_v2 = vand.u32 4294901760, %v740_v34  ;;  %v3832_v16 = vand.u32 4294901760, %v3831_v41  ;;  %v9419_v50 = vsub.f32 %v6925_v44, %v9409_v15 }
  0xb2   : > { %517 = vmatprep.mubr.f32.mxu0 %v11994_v10  ;;  %3827 = vmatprep.mubr.f32.mxu1 %v11994_v10  ;;  %v3842_v11 = vsub.f32 %v9392_v3, %v11715_v59  ;;  %12048 = vst [vmem:[#allocation88_spill] sm:$0xff] %v9416_v21  ;;  %v7032_v38 = vpack.c.bf16 %v8820_v18, %v8818_v17 }
  0xb3   : > { %7029 = vmatprep.subr.bf16.mxu0 %v7028_v32  ;;  %7413 = vmatprep.subr.bf16.mxu1 %v7028_v32  ;;  %v7030_v45 = vpack.c.bf16 %v741_v2, %v729_v54  ;;  %12049 = vst [vmem:[#allocation89_spill] sm:$0xff] %v9419_v50  ;;  %v533_v27 = vand.u32 4294901760, %v532_v1  ;;  %v9424_v34 = vsub.f32 %v6957_v42, %v9416_v21  ;;  %v11717_v41 = vand.u32 4294901760, %v9419_v50 }
  0xb4   : > { %v3843_v63 = vand.u32 4294901760, %v3842_v11  ;;  %v7036_v4 = vpack.c.bf16 %v8834_v29, %v8830_v26  ;;  %v7038_v2 = vpack.c.bf16 %v8844_v40, %v8842_v39  ;;  %v7040_v44 = vpack.c.bf16 %v8850_v47, %v8848_v46 }
  0xb5   : > { %523 = vmatmul.mubr.f32.gmra.mrb[26].mxu0 %v522_v0  ;;  %3833 = vmatmul.mubr.f32.gmra.mrb[26].mxu1 %v3832_v16  ;;  %v7042_v54 = vpack.c.bf16 %v8856_v53, %v8854_v52  ;;  %v11716_v42 = vand.u32 4294901760, %v9424_v34  ;;  %v7044_v0 = vpack.c.bf16 %v8864_v56, %v8860_v55  ;;  %v7046_v1 = vpack.c.bf16 %v8872_v6, %v8870_v5 }
  0xb6   : > { %528 = vmatprep.mubr.f32.mxu0 %v11994_v10  ;;  %3838 = vmatprep.mubr.f32.mxu1 %v11994_v10  ;;  %v543_v32 = vsub.f32 %v9419_v50, %v11717_v41  ;;  %v12063_v41 = vld [vmem:[#allocation60_spill] sm:$0xff] }
  0xb7   : > { %7031 = vmatpush1.bf16.msra.mxu0 %v7030_v45  ;;  %7415 = vmatpush1.bf16.msra.mxu1 %v7030_v45  ;;  %v3853_v16 = vsub.f32 %v9424_v34, %v11716_v42  ;;  %v7034_v45 = vpack.c.bf16 %v8826_v24, %v8822_v19  ;;  %v12061_v42 = vld [vmem:[#allocation11_spill] sm:$0xff] }
  0xb8   : > { %7033 = vmatprep.subr.bf16.mxu0 %v7032_v38  ;;  %7417 = vmatprep.subr.bf16.mxu1 %v7032_v38  ;;  %v544_v11 = vand.u32 4294901760, %v543_v32  ;;  %v7048_v38 = vpack.c.bf16 %v8878_v12, %v8874_v7  ;;  %v12055_v32 = vld [vmem:[#allocation47_spill] sm:$0xff] }
  0xb9   : > { %534 = vmatmul.mubr.f32.gmra.mrb[28].mxu0 %v533_v27  ;;  %3844 = vmatmul.mubr.f32.gmra.mrb[28].mxu1 %v3843_v63  ;;  %v3854_v59 = vand.u32 4294901760, %v3853_v16  ;;  %v12051_v27 = vld [vmem:[#allocation39_spill] sm:$0xff]  ;;  %v12052_v63 = vld [vmem:[#allocation40_spill] sm:$0xff] }
  0xba   : > { %539 = vmatprep.mubr.f32.mxu0 %v11994_v10  ;;  %3849 = vmatprep.mubr.f32.mxu1 %v11994_v10  ;;  %v12056_v16 = vld [vmem:[#allocation48_spill] sm:$0xff] }
  0xbd   : > { %545 = vmatmul.mubr.f32.gmra.mrb[30].mxu0 %v544_v11  ;;  %3855 = vmatmul.mubr.f32.gmra.mrb[30].mxu1 %v3854_v59  ;;  %v12050_v59 = vld [vmem:[#allocation37_spill] sm:$0xff]  ;;  %v7058_v11 = vpack.c.bf16 %v8917_v62, %v8913_v60 }
  0xbe   : > { %775 = vmatprep.mubr.f32.mxu0 %v11994_v10  ;;  %4085 = vmatprep.mubr.f32.mxu1 %v11994_v10 }
  0xc1   : > { %777 = vmatmul.mubr.f32.vlgmr.msra.gmra.mrb[0].mxu0 %v8922_v9  ;;  %4087 = vmatmul.mubr.f32.vlgmr.msra.gmra.mrb[0].mxu1 %v8946_v61  ;;  %v12115_v61 = vld [vmem:[#allocation78_spill] sm:$0xff]  ;;  %v12116_v9 = vld [vmem:[#allocation80_spill] sm:$0xff] }
  0xc2   : > { %7035 = vmatpush1.bf16.msra.mxu0 %v7034_v45  ;;  %7419 = vmatpush1.bf16.msra.mxu1 %v7034_v45  ;;  %v7060_v45 = vpack.c.bf16 %v8929_v30, %v8920_v8 }
  0xc3   : > { %782 = vmatprep.mubr.f32.mxu0 %v11994_v10  ;;  %4092 = vmatprep.mubr.f32.mxu1 %v11994_v10 }
  0xc4   : > { %7037 = vmatprep.subr.bf16.mxu0 %v7036_v4  ;;  %7421 = vmatprep.subr.bf16.mxu1 %v7036_v4  ;;  %v7050_v4 = vpack.c.bf16 %v8886_v20, %v8882_v14 }
  0xc5   : > { %784 = vmatmul.mubr.f32.gmra.mrb[2].mxu0 %v8955_v57  ;;  %4094 = vmatmul.mubr.f32.gmra.mrb[2].mxu1 %v8962_v13  ;;  %v12103_v13 = vld [vmem:[#allocation57_spill] sm:$0xff]  ;;  %v12104_v57 = vld [vmem:[#allocation59_spill] sm:$0xff] }
  0xc6   : > { %789 = vmatprep.mubr.f32.mxu0 %v11994_v10  ;;  %4099 = vmatprep.mubr.f32.mxu1 %v11994_v10 }
  0xc7   : > { %7039 = vmatpush1.bf16.msra.mxu0 %v7038_v2  ;;  %7423 = vmatpush1.bf16.msra.mxu1 %v7038_v2  ;;  %v7052_v2 = vpack.c.bf16 %v8894_v35, %v8888_v22 }
  0xc8   : > { %7041 = vmatprep.subr.bf16.mxu0 %v7040_v44  ;;  %7425 = vmatprep.subr.bf16.mxu1 %v7040_v44  ;;  %v12053_v44 = vld [vmem:[#allocation42_spill] sm:$0xff] }
  0xc9   : > { %791 = vmatmul.mubr.f32.gmra.mrb[4].mxu0 %v8982_v43  ;;  %4101 = vmatmul.mubr.f32.gmra.mrb[4].mxu1 %v12050_v59  ;;  %v12096_v59 = vld [vmem:[#allocation23_spill] sm:$0xff]  ;;  %v12098_v43 = vld [vmem:[#allocation54_spill] sm:$0xff] }
  0xca   : > { %796 = vmatprep.mubr.f32.mxu0 %v11994_v10  ;;  %4106 = vmatprep.mubr.f32.mxu1 %v11994_v10 }
  0xcb   : > { %7043 = vmatpush1.bf16.msra.mxu0 %v7042_v54  ;;  %7427 = vmatpush1.bf16.msra.mxu1 %v7042_v54  ;;  %v12054_v54 = vld [vmem:[#allocation45_spill] sm:$0xff] }
  0xcc   : > { %7045 = vmatprep.subr.bf16.mxu0 %v7044_v0  ;;  %7429 = vmatprep.subr.bf16.mxu1 %v7044_v0  ;;  %v7054_v0 = vpack.c.bf16 %v8900_v49, %v8896_v36 }
  0xcd   : > { %798 = vmatmul.mubr.f32.gmra.mrb[6].mxu0 %v12051_v27  ;;  %4108 = vmatmul.mubr.f32.gmra.mrb[6].mxu1 %v12052_v63  ;;  %v12090_v63 = vld [vmem:[#allocation46_spill] sm:$0xff]  ;;  %v12091_v27 = vld [vmem:[#allocation20_spill] sm:$0xff] }
  0xce   : > { %803 = vmatprep.mubr.f32.mxu0 %v11994_v10  ;;  %4113 = vmatprep.mubr.f32.mxu1 %v11994_v10 }
  0xcf   : > { %7047 = vmatpush1.bf16.msra.mxu0 %v7046_v1  ;;  %7431 = vmatpush1.bf16.msra.mxu1 %v7046_v1  ;;  %v7056_v1 = vpack.c.bf16 %v8909_v58, %v8904_v51 }
  0xd0   : > { %7049 = vmatprep.subr.bf16.mxu0 %v7048_v38  ;;  %7433 = vmatprep.subr.bf16.mxu1 %v7048_v38  ;;  %v12057_v38 = vld [vmem:[#allocation50_spill] sm:$0xff] }
  0xd1   : > { %805 = vmatmul.mubr.f32.gmra.mrb[8].mxu0 %v12053_v44  ;;  %4115 = vmatmul.mubr.f32.gmra.mrb[8].mxu1 %v12054_v54  ;;  %v12088_v54 = vld [vmem:[#allocation19_spill] sm:$0xff]  ;;  %v12089_v44 = vld [vmem:[#allocation44_spill] sm:$0xff] }
  0xd2   : > { %810 = vmatprep.mubr.f32.mxu0 %v11994_v10  ;;  %4120 = vmatprep.mubr.f32.mxu1 %v11994_v10 }
  0xd3   : > { %7051 = vmatpush1.bf16.msra.mxu0 %v7050_v4  ;;  %7435 = vmatpush1.bf16.msra.mxu1 %v7050_v4  ;;  %v12058_v4 = vld [vmem:[#allocation53_spill] sm:$0xff] }
  0xd4   : > { %7053 = vmatprep.subr.bf16.mxu0 %v7052_v2  ;;  %7437 = vmatprep.subr.bf16.mxu1 %v7052_v2  ;;  %v7062_v2 = vpack.c.bf16 %v8938_v33, %v8933_v31 }
  0xd5   : > { %812 = vmatmul.mubr.f32.gmra.mrb[10].mxu0 %v12055_v32  ;;  %4122 = vmatmul.mubr.f32.gmra.mrb[10].mxu1 %v12056_v16  ;;  %v12086_v16 = vld [vmem:[#allocation43_spill] sm:$0xff]  ;;  %v12087_v32 = vld [vmem:[#allocation18_spill] sm:$0xff] }
  0xd6   : > { %817 = vmatprep.mubr.f32.mxu0 %v11994_v10  ;;  %4127 = vmatprep.mubr.f32.mxu1 %v11994_v10 }
  0xd7   : > { %7055 = vmatpush1.bf16.msra.mxu0 %v7054_v0  ;;  %7439 = vmatpush1.bf16.msra.mxu1 %v7054_v0  ;;  %v12059_v0 = vld [vmem:[#allocation55_spill] sm:$0xff] }
  0xd8   : > { %7057 = vmatprep.subr.bf16.mxu0 %v7056_v1  ;;  %7441 = vmatprep.subr.bf16.mxu1 %v7056_v1  ;;  %v12060_v1 = vld [vmem:[#allocation56_spill] sm:$0xff] }
  0xd9   : > { %819 = vmatmul.mubr.f32.gmra.mrb[12].mxu0 %v12057_v38  ;;  %4129 = vmatmul.mubr.f32.gmra.mrb[12].mxu1 %v12058_v4  ;;  %v12084_v4 = vld [vmem:[#allocation17_spill] sm:$0xff] }
  0xda   : > { %824 = vmatprep.mubr.f32.mxu0 %v11994_v10  ;;  %4134 = vmatprep.mubr.f32.mxu1 %v11994_v10  ;;  %v12085_v38 = vld [vmem:[#allocation41_spill] sm:$0xff] }
  0xdb   : > { %7059 = vmatpush1.bf16.msra.mxu0 %v7058_v11  ;;  %7443 = vmatpush1.bf16.msra.mxu1 %v7058_v11  ;;  %v12062_v11 = vld [vmem:[#allocation58_spill] sm:$0xff] }
  0xdc   : > { %7061 = vmatprep.subr.bf16.mxu0 %v7060_v45  ;;  %7445 = vmatprep.subr.bf16.mxu1 %v7060_v45  ;;  %v12064_v45 = vld [vmem:[#allocation65_spill] sm:$0xff] }
  0xdd   : > { %826 = vmatmul.mubr.f32.gmra.mrb[14].mxu0 %v12059_v0  ;;  %4136 = vmatmul.mubr.f32.gmra.mrb[14].mxu1 %v12060_v1  ;;  %v12066_v1 = vld [vmem:[#allocation69_spill] sm:$0xff]  ;;  %v12083_v0 = vld [vmem:[#allocation16_spill] sm:$0xff] }
  0xde   : > { %831 = vmatprep.mubr.f32.mxu0 %v11994_v10  ;;  %4141 = vmatprep.mubr.f32.mxu1 %v11994_v10 }
  0xdf   : > { %7063 = vmatpush1.bf16.msra.mxu0 %v7062_v2  ;;  %7447 = vmatpush1.bf16.msra.mxu1 %v7062_v2  ;;  %v12065_v2 = vld [vmem:[#allocation66_spill] sm:$0xff] }
  0xe0   : > { %7065 = vmatprep.subr.bf16.mxu0 %v12061_v42  ;;  %7449 = vmatprep.subr.bf16.mxu1 %v12061_v42 }
  0xe1   : > { %833 = vmatmul.mubr.f32.gmra.mrb[16].mxu0 %v12062_v11  ;;  %4143 = vmatmul.mubr.f32.gmra.mrb[16].mxu1 %v12063_v41  ;;  %v12067_v41 = vld [vmem:[#allocation72_spill] sm:$0xff]  ;;  %v12082_v11 = vld [vmem:[#allocation38_spill] sm:$0xff] }
  0xe2   : > { %838 = vmatprep.mubr.f32.mxu0 %v11994_v10  ;;  %4148 = vmatprep.mubr.f32.mxu1 %v11994_v10 }
  0xe5   : > { %840 = vmatmul.mubr.f32.gmra.mrb[18].mxu0 %v9230_v37  ;;  %4150 = vmatmul.mubr.f32.gmra.mrb[18].mxu1 %v12064_v45  ;;  %v12068_v45 = vld [vmem:[#allocation74_spill] sm:$0xff]  ;;  %v12069_v37 = vld [vmem:[#allocation76_spill] sm:$0xff] }
  0xe6   : > { %845 = vmatprep.mubr.f32.mxu0 %v11994_v10  ;;  %4155 = vmatprep.mubr.f32.mxu1 %v11994_v10 }
  0xe9   : > { %847 = vmatmul.mubr.f32.gmra.mrb[20].mxu0 %v12065_v2  ;;  %4157 = vmatmul.mubr.f32.gmra.mrb[20].mxu1 %v12066_v1  ;;  %v12070_v1 = vld [vmem:[#allocation81_spill] sm:$0xff]  ;;  %v12081_v2 = vld [vmem:[#allocation36_spill] sm:$0xff] }
  0xea   : > { %852 = vmatprep.mubr.f32.mxu0 %v11994_v10  ;;  %4162 = vmatprep.mubr.f32.mxu1 %v11994_v10 }
  0xed   : > { %854 = vmatmul.mubr.f32.gmra.mrb[22].mxu0 %v9290_v28  ;;  %4164 = vmatmul.mubr.f32.gmra.mrb[22].mxu1 %v12067_v41  ;;  %v12071_v41 = vld [vmem:[#allocation82_spill] sm:$0xff]  ;;  %v12072_v28 = vld [vmem:[#allocation85_spill] sm:$0xff] }
  0xee   : > { %859 = vmatprep.mubr.f32.mxu0 %v11994_v10  ;;  %4169 = vmatprep.mubr.f32.mxu1 %v11994_v10 }
  0xf1   : > { %861 = vmatmul.mubr.f32.gmra.mrb[24].mxu0 %v12068_v45  ;;  %4171 = vmatmul.mubr.f32.gmra.mrb[24].mxu1 %v12069_v37  ;;  %v12075_v37 = vld [vmem:[#allocation12_spill] sm:$0xff]  ;;  %v12080_v45 = vld [vmem:[#allocation15_spill] sm:$0xff] }
  0xf2   : > { %866 = vmatprep.mubr.f32.mxu0 %v11994_v10  ;;  %4176 = vmatprep.mubr.f32.mxu1 %v11994_v10 }
  0xf5   : > { %868 = vmatmul.mubr.f32.gmra.mrb[26].mxu0 %v9350_v48  ;;  %4178 = vmatmul.mubr.f32.gmra.mrb[26].mxu1 %v12070_v1  ;;  %v12073_v1 = vld [vmem:[#allocation28_spill] sm:$0xff]  ;;  %v12074_v48 = vld [vmem:[#allocation31_spill] sm:$0xff] }
  0xf6   : > { %873 = vmatprep.mubr.f32.mxu0 %v11994_v10  ;;  %4183 = vmatprep.mubr.f32.mxu1 %v11994_v10 }
  0xf9   : > { %875 = vmatmul.mubr.f32.gmra.mrb[28].mxu0 %v12071_v41  ;;  %4185 = vmatmul.mubr.f32.gmra.mrb[28].mxu1 %v12072_v28  ;;  %v12076_v28 = vld [vmem:[#allocation13_spill] sm:$0xff]  ;;  %v12079_v41 = vld [vmem:[#allocation14_spill] sm:$0xff] }
  0xfa   : > { %880 = vmatprep.mubr.f32.mxu0 %v11994_v10  ;;  %4190 = vmatprep.mubr.f32.mxu1 %v11994_v10 }
  0xfd   : > { %882 = vmatmul.mubr.f32.gmra.mrb[30].mxu0 %v9409_v15  ;;  %4192 = vmatmul.mubr.f32.gmra.mrb[30].mxu1 %v9416_v21  ;;  %v12077_v21 = vld [vmem:[#allocation33_spill] sm:$0xff]  ;;  %v12078_v15 = vld [vmem:[#allocation34_spill] sm:$0xff] }
  0xfe   : > { %1016 = vmatprep.mubr.f32.mxu0 %v11994_v10  ;;  %4326 = vmatprep.mubr.f32.mxu1 %v11994_v10 }
 0x101   : > { %1019 = vmatmul.mubr.f32.vlgmr.msra.gmra.mrb[0].mxu0 %v12073_v1  ;;  %4329 = vmatmul.mubr.f32.vlgmr.msra.gmra.mrb[0].mxu1 %v12074_v48 }
 0x102   : > { %7067 = vmatpush1.bf16.msra.mxu0 %v12075_v37  ;;  %7451 = vmatpush1.bf16.msra.mxu1 %v12075_v37  ;;  %v12114_v37 = vld [vmem:[#allocation77_spill] sm:$0xff] }
 0x103   : > { %1024 = vmatprep.mubr.f32.mxu0 %v11994_v10  ;;  %4334 = vmatprep.mubr.f32.mxu1 %v11994_v10 }
 0x104   : > { %7069 = vmatprep.subr.bf16.mxu0 %v12076_v28  ;;  %7453 = vmatprep.subr.bf16.mxu1 %v12076_v28  ;;  %v12105_v28 = vld [vmem:[#allocation27_spill] sm:$0xff] }
 0x105   : > { %1027 = vmatmul.mubr.f32.gmra.mrb[2].mxu0 %v12077_v21  ;;  %4337 = vmatmul.mubr.f32.gmra.mrb[2].mxu1 %v12078_v15 }
 0x106   : > { %1032 = vmatprep.mubr.f32.mxu0 %v11994_v10  ;;  %4342 = vmatprep.mubr.f32.mxu1 %v11994_v10 }
 0x107   : > { %7071 = vmatpush1.bf16.msra.mxu0 %v12079_v41  ;;  %7455 = vmatpush1.bf16.msra.mxu1 %v12079_v41 }
 0x108   : > { %7073 = vmatprep.subr.bf16.mxu0 %v12080_v45  ;;  %7457 = vmatprep.subr.bf16.mxu1 %v12080_v45  ;;  %v12100_v45 = vld [vmem:[#allocation26_spill] sm:$0xff] }
 0x109   : > { %1035 = vmatmul.mubr.f32.gmra.mrb[4].mxu0 %v12081_v2  ;;  %4345 = vmatmul.mubr.f32.gmra.mrb[4].mxu1 %v12082_v11 }
 0x10a   : > { %1040 = vmatprep.mubr.f32.mxu0 %v11994_v10  ;;  %4350 = vmatprep.mubr.f32.mxu1 %v11994_v10 }
 0x10b   : > { %7075 = vmatpush1.bf16.msra.mxu0 %v12083_v0  ;;  %7459 = vmatpush1.bf16.msra.mxu1 %v12083_v0  ;;  %v12094_v0 = vld [vmem:[#allocation51_spill] sm:$0xff] }
 0x10c   : > { %7077 = vmatprep.subr.bf16.mxu0 %v12084_v4  ;;  %7461 = vmatprep.subr.bf16.mxu1 %v12084_v4  ;;  %v12092_v4 = vld [vmem:[#allocation21_spill] sm:$0xff] }
 0x10d   : > { %1043 = vmatmul.mubr.f32.gmra.mrb[6].mxu0 %v12085_v38  ;;  %4353 = vmatmul.mubr.f32.gmra.mrb[6].mxu1 %v12086_v16 }
 0x10e   : > { %1048 = vmatprep.mubr.f32.mxu0 %v11994_v10  ;;  %4358 = vmatprep.mubr.f32.mxu1 %v11994_v10 }
 0x10f   : > { %7079 = vmatpush1.bf16.msra.mxu0 %v12087_v32  ;;  %7463 = vmatpush1.bf16.msra.mxu1 %v12087_v32  ;;  %v12093_v32 = vld [vmem:[#allocation49_spill] sm:$0xff] }
 0x110   : > { %7081 = vmatprep.subr.bf16.mxu0 %v12088_v54  ;;  %7465 = vmatprep.subr.bf16.mxu1 %v12088_v54  ;;  %v12095_v54 = vld [vmem:[#allocation22_spill] sm:$0xff] }
 0x111   : > { %1051 = vmatmul.mubr.f32.gmra.mrb[8].mxu0 %v12089_v44  ;;  %4361 = vmatmul.mubr.f32.gmra.mrb[8].mxu1 %v12090_v63 }
 0x112   : > { %1056 = vmatprep.mubr.f32.mxu0 %v11994_v10  ;;  %4366 = vmatprep.mubr.f32.mxu1 %v11994_v10 }
 0x113   : > { %7083 = vmatpush1.bf16.msra.mxu0 %v12091_v27  ;;  %7467 = vmatpush1.bf16.msra.mxu1 %v12091_v27  ;;  %v12097_v27 = vld [vmem:[#allocation52_spill] sm:$0xff] }
 0x114   : > { %7085 = vmatprep.subr.bf16.mxu0 %v12092_v4  ;;  %7469 = vmatprep.subr.bf16.mxu1 %v12092_v4  ;;  %v12099_v4 = vld [vmem:[#allocation24_spill] sm:$0xff] }
 0x115   : > { %1059 = vmatmul.mubr.f32.gmra.mrb[10].mxu0 %v12093_v32  ;;  %4369 = vmatmul.mubr.f32.gmra.mrb[10].mxu1 %v12094_v0 }
 0x116   : > { %1064 = vmatprep.mubr.f32.mxu0 %v11994_v10  ;;  %4374 = vmatprep.mubr.f32.mxu1 %v11994_v10 }
 0x117   : > { %7087 = vmatpush1.bf16.msra.mxu0 %v12095_v54  ;;  %7471 = vmatpush1.bf16.msra.mxu1 %v12095_v54  ;;  %v12101_v54 = vand.u32 4294901760, %v8818_v17  ;;  %v12107_v17 = vld [vmem:[#allocation62_spill] sm:$0xff] }
 0x118   : > { %7089 = vmatprep.subr.bf16.mxu0 %v12096_v59  ;;  %7473 = vmatprep.subr.bf16.mxu1 %v12096_v59  ;;  %v12102_v59 = vand.u32 4294901760, %v8820_v18  ;;  %v12108_v18 = vld [vmem:[#allocation64_spill] sm:$0xff] }
 0x119   : > { %1067 = vmatmul.mubr.f32.gmra.mrb[12].mxu0 %v12097_v27  ;;  %4377 = vmatmul.mubr.f32.gmra.mrb[12].mxu1 %v12098_v43 }
 0x11a   : > { %1072 = vmatprep.mubr.f32.mxu0 %v11994_v10  ;;  %4382 = vmatprep.mubr.f32.mxu1 %v11994_v10  ;;  %v7096_v41 = vpack.c.bf16 %v12102_v59, %v12101_v54  ;;  %v12109_v59 = vld [vmem:[#allocation67_spill] sm:$0xff]  ;;  %v12110_v54 = vld [vmem:[#allocation68_spill] sm:$0xff] }
 0x11b   : > { %7091 = vmatpush1.bf16.msra.mxu0 %v12099_v4  ;;  %7475 = vmatpush1.bf16.msra.mxu1 %v12099_v4  ;;  %v12113_v4 = vld [vmem:[#allocation75_spill] sm:$0xff] }
 0x11c   : > { %7093 = vmatprep.subr.bf16.mxu0 %v12100_v45  ;;  %7477 = vmatprep.subr.bf16.mxu1 %v12100_v45  ;;  %v12106_v45 = vld [vmem:[#allocation61_spill] sm:$0xff] }
 0x11d   : > { %1075 = vmatmul.mubr.f32.gmra.mrb[14].mxu0 %v12103_v13  ;;  %4385 = vmatmul.mubr.f32.gmra.mrb[14].mxu1 %v12104_v57 }
 0x11e   : > { %1080 = vmatprep.mubr.f32.mxu0 %v11994_v10  ;;  %4390 = vmatprep.mubr.f32.mxu1 %v11994_v10 }
 0x11f   : > { %7095 = vmatpush1.bf16.msra.mxu0 %v12105_v28  ;;  %7479 = vmatpush1.bf16.msra.mxu1 %v12105_v28  ;;  %v12111_v28 = vld [vmem:[#allocation70_spill] sm:$0xff] }
 0x120   : > { %7097 = vmatprep.subr.bf16.mxu0 %v7096_v41  ;;  %7481 = vmatprep.subr.bf16.mxu1 %v7096_v41  ;;  %v12112_v41 = vld [vmem:[#allocation73_spill] sm:$0xff] }
 0x121   : > { %1083 = vmatmul.mubr.f32.gmra.mrb[16].mxu0 %v12106_v45  ;;  %4393 = vmatmul.mubr.f32.gmra.mrb[16].mxu1 %v12107_v17 }
 0x122   : > { %1088 = vmatprep.mubr.f32.mxu0 %v11994_v10  ;;  %4398 = vmatprep.mubr.f32.mxu1 %v11994_v10 }
 0x125   : > { %1091 = vmatmul.mubr.f32.gmra.mrb[18].mxu0 %v12108_v18  ;;  %4401 = vmatmul.mubr.f32.gmra.mrb[18].mxu1 %v12109_v59 }
 0x126   : > { %1096 = vmatprep.mubr.f32.mxu0 %v11994_v10  ;;  %4406 = vmatprep.mubr.f32.mxu1 %v11994_v10 }
 0x129   : > { %1099 = vmatmul.mubr.f32.gmra.mrb[20].mxu0 %v12110_v54  ;;  %4409 = vmatmul.mubr.f32.gmra.mrb[20].mxu1 %v12111_v28 }
 0x12a   : > { %1104 = vmatprep.mubr.f32.mxu0 %v11994_v10  ;;  %4414 = vmatprep.mubr.f32.mxu1 %v11994_v10 }
 0x12d   : > { %1107 = vmatmul.mubr.f32.gmra.mrb[22].mxu0 %v12112_v41  ;;  %4417 = vmatmul.mubr.f32.gmra.mrb[22].mxu1 %v12113_v4  ;;  %v12121_v4 = vand.u32 4294901760, %v12073_v1  ;;  %v12140_v1 = vand.u32 4294901760, %v12086_v16  ;;  %v12145_v16 = vand.u32 4294901760, %v12089_v44  ;;  %v12150_v44 = vand.u32 4294901760, %v8909_v58 }
 0x12e   : > { %1112 = vmatprep.mubr.f32.mxu0 %v11994_v10  ;;  %4422 = vmatprep.mubr.f32.mxu1 %v11994_v10  ;;  %v12155_v58 = vand.u32 4294901760, %v8920_v8 }
 0x131   : > { %1115 = vmatmul.mubr.f32.gmra.mrb[24].mxu0 %v12114_v37  ;;  %4425 = vmatmul.mubr.f32.gmra.mrb[24].mxu1 %v12115_v61 }
 0x132   : > { %1120 = vmatprep.mubr.f32.mxu0 %v11994_v10  ;;  %4430 = vmatprep.mubr.f32.mxu1 %v11994_v10 }
 0x135   : > { %1123 = vmatmul.mubr.f32.gmra.mrb[26].mxu0 %v12116_v9  ;;  %4433 = vmatmul.mubr.f32.gmra.mrb[26].mxu1 %v9369_v23  ;;  %v12117_v23 = vand.u32 4294901760, %v8822_v19  ;;  %v12118_v9 = vand.u32 4294901760, %v8826_v24  ;;  %v12123_v19 = vand.u32 4294901760, %v8842_v39  ;;  %v12124_v24 = vand.u32 4294901760, %v8844_v40 }
 0x136   : > { %1128 = vmatprep.mubr.f32.mxu0 %v11994_v10  ;;  %4438 = vmatprep.mubr.f32.mxu1 %v11994_v10  ;;  %v12129_v39 = vand.u32 4294901760, %v8854_v52  ;;  %v12130_v40 = vand.u32 4294901760, %v8856_v53  ;;  %v12135_v52 = vand.u32 4294901760, %v8870_v5  ;;  %v12136_v53 = vand.u32 4294901760, %v8872_v6 }
 0x137   : > { %v7098_v61 = vpack.c.bf16 %v12118_v9, %v12117_v23  ;;  %v12126_v9 = vand.u32 4294901760, %v8850_v47  ;;  %v12131_v47 = vand.u32 4294901760, %v8860_v55  ;;  %v12141_v5 = vand.u32 4294901760, %v8882_v14 }
 0x138   : > { %v7110_v55 = vpack.c.bf16 %v12136_v53, %v12135_v52  ;;  %v12142_v6 = vand.u32 4294901760, %v8886_v20  ;;  %v12147_v14 = vand.u32 4294901760, %v8896_v36  ;;  %v12148_v20 = vand.u32 4294901760, %v8900_v49  ;;  %v12188_v52 = vld [vmem:[#allocation29_spill] sm:$0xff]  ;;  %v12189_v53 = vld [vmem:[#allocation12_spill] sm:$0xff] }
 0x139   : > { %1131 = vmatmul.mubr.f32.gmra.mrb[28].mxu0 %v9372_v25  ;;  %4441 = vmatmul.mubr.f32.gmra.mrb[28].mxu1 %v9392_v3  ;;  %v12119_v25 = vand.u32 4294901760, %v8830_v26  ;;  %v12120_v3 = vand.u32 4294901760, %v8834_v29  ;;  %v7102_v26 = vpack.c.bf16 %v12124_v24, %v12123_v19  ;;  %v12125_v29 = vand.u32 4294901760, %v8848_v46 }
 0x13a   : > { %1136 = vmatprep.mubr.f32.mxu0 %v11994_v10  ;;  %4446 = vmatprep.mubr.f32.mxu1 %v11994_v10  ;;  %v7106_v46 = vpack.c.bf16 %v12130_v40, %v12129_v39  ;;  %v12152_v24 = vand.u32 4294901760, %v12094_v0  ;;  %v12153_v36 = vand.u32 4294901760, %v8913_v60  ;;  %v12154_v49 = vand.u32 4294901760, %v8917_v62  ;;  %v12180_v39 = vld [vmem:[#allocation84_spill] sm:$0xff] }
 0x13b   : > { %v7100_v37 = vpack.c.bf16 %v12120_v3, %v12119_v25  ;;  %v7104_v23 = vpack.c.bf16 %v12126_v9, %v12125_v29  ;;  %v12134_v3 = vand.u32 4294901760, %v12082_v11  ;;  %v12157_v0 = vand.u32 4294901760, %v12097_v27  ;;  %v12174_v9 = vld [vmem:[#allocation78_spill] sm:$0xff] }
 0x13c   : > { %v12158_v29 = vand.u32 4294901760, %v12098_v43  ;;  %v12159_v60 = vand.u32 4294901760, %v8933_v31  ;;  %v12160_v62 = vand.u32 4294901760, %v8938_v33  ;;  %v12162_v27 = vand.u32 4294901760, %v12104_v57 }
 0x13d   : > { %1139 = vmatmul.mubr.f32.gmra.mrb[30].mxu0 %v9419_v50  ;;  %4449 = vmatmul.mubr.f32.gmra.mrb[30].mxu1 %v9424_v34  ;;  %v12122_v50 = vand.u32 4294901760, %v12074_v48  ;;  %v12127_v48 = vand.u32 4294901760, %v12077_v21  ;;  %v12138_v21 = vand.u32 4294901760, %v8878_v12  ;;  %v12143_v12 = vand.u32 4294901760, %v8888_v22 }
 0x13e   : > { %1241 = vmatprep.mubr.f32.mxu0 %v11994_v10  ;;  %4551 = vmatprep.mubr.f32.mxu1 %v11994_v10  ;;  %v7118_v22 = vpack.c.bf16 %v12148_v20, %v12147_v14  ;;  %v7126_v8 = vpack.c.bf16 %v12160_v62, %v12159_v60  ;;  %v12163_v31 = vand.u32 4294901760, %v12106_v45  ;;  %v12164_v33 = vand.u32 4294901760, %v12107_v17  ;;  %v12170_v17 = vld [vmem:[#allocation75_spill] sm:$0xff]  ;;  %v12205_v14 = vld [vmem:[#allocation20_spill] sm:$0xff]  ;;  %v12206_v20 = vld [vmem:[#allocation21_spill] sm:$0xff] }
 0x13f   : > { %v12166_v43 = vand.u32 4294901760, %v12109_v59  ;;  %v12167_v57 = vand.u32 4294901760, %v12110_v54  ;;  %v12169_v45 = vand.u32 4294901760, %v12112_v41  ;;  %v12172_v59 = vld [vmem:[#allocation77_spill] sm:$0xff]  ;;  %v12181_v40 = vand.u32 4294901760, %v12180_v39  ;;  %v12217_v60 = vld [vmem:[#allocation56_spill] sm:$0xff] }
 0x140   : > { %v12173_v54 = vand.u32 4294901760, %v12172_v59  ;;  %v12218_v62 = vld [vmem:[#allocation27_spill] sm:$0xff] }
 0x141   : > { %1245 = vmatmul.mubr.f32.vlgmr.msra.gmra.mrb[0].mxu0 %v12121_v4  ;;  %4555 = vmatmul.mubr.f32.vlgmr.msra.gmra.mrb[0].mxu1 %v12122_v50  ;;  %v12139_v4 = vand.u32 4294901760, %v12085_v38  ;;  %v12144_v38 = vand.u32 4294901760, %v8894_v35  ;;  %v12149_v35 = vand.u32 4294901760, %v8904_v51  ;;  %v7122_v51 = vpack.c.bf16 %v12154_v49, %v12153_v36  ;;  %v196_v59 = vld [vmem:[#allocation5] sm:$0xff] }
 0x142   : > { %7099 = vmatpush1.bf16.msra.mxu0 %v7098_v61  ;;  %7483 = vmatpush1.bf16.msra.mxu1 %v7098_v61  ;;  %v12128_v61 = vand.u32 4294901760, %v12078_v15  ;;  %v12133_v15 = vand.u32 4294901760, %v12081_v2  ;;  %v12146_v2 = vand.u32 4294901760, %v12090_v63  ;;  %v12151_v63 = vand.u32 4294901760, %v12093_v32 }
 0x143   : > { %1250 = vmatprep.mubr.f32.mxu0 %v11994_v10  ;;  %4560 = vmatprep.mubr.f32.mxu1 %v11994_v10  ;;  %v7116_v11 = vpack.c.bf16 %v12144_v38, %v12143_v12  ;;  %v7120_v19 = vpack.c.bf16 %v12150_v44, %v12149_v35  ;;  %v12156_v32 = vand.u32 4294901760, %v8929_v30  ;;  %v12161_v30 = vand.u32 4294901760, %v12103_v13  ;;  %v12200_v12 = vld [vmem:[#allocation40_spill] sm:$0xff]  ;;  %v12201_v38 = vld [vmem:[#allocation18_spill] sm:$0xff] }
 0x144   : > { %7101 = vmatprep.subr.bf16.mxu0 %v7100_v37  ;;  %7485 = vmatprep.subr.bf16.mxu1 %v7100_v37  ;;  %v12132_v37 = vand.u32 4294901760, %v8864_v56  ;;  %v12137_v56 = vand.u32 4294901760, %v8874_v7  ;;  %v7114_v7 = vpack.c.bf16 %v12142_v6, %v12141_v5  ;;  %v12165_v13 = vand.u32 4294901760, %v12108_v18  ;;  %v12197_v5 = vld [vmem:[#allocation16_spill] sm:$0xff]  ;;  %v12198_v6 = vld [vmem:[#allocation17_spill] sm:$0xff] }
 0x145   : > { %1254 = vmatmul.mubr.f32.gmra.mrb[2].mxu0 %v12127_v48  ;;  %4564 = vmatmul.mubr.f32.gmra.mrb[2].mxu1 %v12128_v61  ;;  %v12171_v18 = vand.u32 4294901760, %v12170_v17  ;;  %v12178_v48 = vld [vmem:[#allocation83_spill] sm:$0xff]  ;;  %v12208_v35 = vld [vmem:[#allocation48_spill] sm:$0xff] }
 0x146   : > { %1259 = vmatprep.mubr.f32.mxu0 %v11994_v10  ;;  %4569 = vmatprep.mubr.f32.mxu1 %v11994_v10  ;;  %v7108_v25 = vpack.c.bf16 %v12132_v37, %v12131_v47  ;;  %v7112_v50 = vpack.c.bf16 %v12138_v21, %v12137_v56  ;;  %v12179_v61 = vand.u32 4294901760, %v12178_v48  ;;  %v12184_v37 = vld [vmem:[#allocation89_spill] sm:$0xff]  ;;  %v12192_v56 = vld [vmem:[#allocation32_spill] sm:$0xff]  ;;  %v12193_v21 = vld [vmem:[#allocation14_spill] sm:$0xff]  ;;  %v1870_v48 = vand.u32 4294901760, %v196_v59 }
 0x147   : > { %7103 = vmatpush1.bf16.msra.mxu0 %v7102_v26  ;;  %7487 = vmatpush1.bf16.msra.mxu1 %v7102_v26  ;;  %v7124_v26 = vpack.c.bf16 %v12156_v32, %v12155_v58  ;;  %v9834_v44 = vld [vmem:[#allocation5 + $0x8] sm:$0xff]  ;;  %v12212_v58 = vld [vmem:[#allocation53_spill] sm:$0xff]  ;;  %v12229_v17 = vld [vmem:[#allocation79_spill] sm:$0xff] }
 0x148   : > { %7105 = vmatprep.subr.bf16.mxu0 %v7104_v23  ;;  %7489 = vmatprep.subr.bf16.mxu1 %v7104_v23  ;;  %v12176_v23 = vld [vmem:[#allocation80_spill] sm:$0xff]  ;;  %v1868_v36 = vand.u32 4294901760, %v9834_v44 }
 0x149   : > { %1263 = vmatmul.mubr.f32.gmra.mrb[4].mxu0 %v12133_v15  ;;  %4573 = vmatmul.mubr.f32.gmra.mrb[4].mxu1 %v12134_v3  ;;  %v12177_v41 = vand.u32 4294901760, %v12176_v23  ;;  %v12186_v15 = vand.u32 4294901760, %v9424_v34  ;;  %v12187_v3 = vld [vmem:[#allocation25_spill] sm:$0xff]  ;;  %v12191_v34 = vld [vmem:[#allocation30_spill] sm:$0xff]  ;;  %v12213_v32 = vld [vmem:[#allocation24_spill] sm:$0xff] }
 0x14a   : > { %1268 = vmatprep.mubr.f32.mxu0 %v11994_v10  ;;  %4578 = vmatprep.mubr.f32.mxu1 %v11994_v10  ;;  %v201_v23 = vld [vmem:[#allocation5 + $0x28] sm:$0xff] }
 0x14b   : > { %7107 = vmatpush1.bf16.msra.mxu0 %v7106_v46  ;;  %7491 = vmatpush1.bf16.msra.mxu1 %v7106_v46  ;;  %v12182_v46 = vld [vmem:[#allocation86_spill] sm:$0xff]  ;;  %v1876_v39 = vand.u32 4294901760, %v201_v23 }
 0x14c   : > { %7109 = vmatprep.subr.bf16.mxu0 %v7108_v25  ;;  %7493 = vmatprep.subr.bf16.mxu1 %v7108_v25  ;;  %v12183_v47 = vand.u32 4294901760, %v12182_v46  ;;  %v12185_v25 = vand.u32 4294901760, %v12184_v37  ;;  %v200_v46 = vld [vmem:[#allocation5 + $0x20] sm:$0xff] }
 0x14d   : > { %1272 = vmatmul.mubr.f32.gmra.mrb[6].mxu0 %v12139_v4  ;;  %4582 = vmatmul.mubr.f32.gmra.mrb[6].mxu1 %v12140_v1  ;;  %v12195_v4 = vld [vmem:[#allocation35_spill] sm:$0xff]  ;;  %v12196_v1 = vld [vmem:[#allocation37_spill] sm:$0xff] }
 0x14e   : > { %1277 = vmatprep.mubr.f32.mxu0 %v11994_v10  ;;  %4587 = vmatprep.mubr.f32.mxu1 %v11994_v10  ;;  %v12233_v37 = vld [vmem:[#allocation87_spill] sm:$0xff] }
 0x14f   : > { %7111 = vmatpush1.bf16.msra.mxu0 %v7110_v55  ;;  %7495 = vmatpush1.bf16.msra.mxu1 %v7110_v55  ;;  %v12190_v55 = vld [vmem:[#allocation13_spill] sm:$0xff] }
 0x150   : > { %7113 = vmatprep.subr.bf16.mxu0 %v7112_v50  ;;  %7497 = vmatprep.subr.bf16.mxu1 %v7112_v50  ;;  %v12194_v50 = vld [vmem:[#allocation15_spill] sm:$0xff] }
 0x151   : > { %1281 = vmatmul.mubr.f32.gmra.mrb[8].mxu0 %v12145_v16  ;;  %4591 = vmatmul.mubr.f32.gmra.mrb[8].mxu1 %v12146_v2  ;;  %v12203_v16 = vld [vmem:[#allocation42_spill] sm:$0xff]  ;;  %v12204_v2 = vld [vmem:[#allocation45_spill] sm:$0xff] }
 0x152   : > { %1286 = vmatprep.mubr.f32.mxu0 %v11994_v10  ;;  %4596 = vmatprep.mubr.f32.mxu1 %v11994_v10 }
 0x153   : > { %7115 = vmatpush1.bf16.msra.mxu0 %v7114_v7  ;;  %7499 = vmatpush1.bf16.msra.mxu1 %v7114_v7  ;;  %v12199_v7 = vld [vmem:[#allocation39_spill] sm:$0xff] }
 0x154   : > { %7117 = vmatprep.subr.bf16.mxu0 %v7116_v11  ;;  %7501 = vmatprep.subr.bf16.mxu1 %v7116_v11  ;;  %v12202_v11 = vld [vmem:[#allocation19_spill] sm:$0xff] }
 0x155   : > { %1290 = vmatmul.mubr.f32.gmra.mrb[10].mxu0 %v12151_v63  ;;  %4600 = vmatmul.mubr.f32.gmra.mrb[10].mxu1 %v12152_v24  ;;  %v12209_v63 = vld [vmem:[#allocation22_spill] sm:$0xff]  ;;  %v12210_v24 = vld [vmem:[#allocation23_spill] sm:$0xff] }
 0x156   : > { %1295 = vmatprep.mubr.f32.mxu0 %v11994_v10  ;;  %4605 = vmatprep.mubr.f32.mxu1 %v11994_v10 }
 0x157   : > { %7119 = vmatpush1.bf16.msra.mxu0 %v7118_v22  ;;  %7503 = vmatpush1.bf16.msra.mxu1 %v7118_v22  ;;  %v12207_v22 = vld [vmem:[#allocation47_spill] sm:$0xff] }
 0x158   : > { %7121 = vmatprep.subr.bf16.mxu0 %v7120_v19  ;;  %7505 = vmatprep.subr.bf16.mxu1 %v7120_v19  ;;  %v9836_v19 = vld [vmem:[#allocation5 + $0x18] sm:$0xff] }
 0x159   : > { %1299 = vmatmul.mubr.f32.gmra.mrb[12].mxu0 %v12157_v0  ;;  %4609 = vmatmul.mubr.f32.gmra.mrb[12].mxu1 %v12158_v29  ;;  %v1872_v49 = vand.u32 4294901760, %v9836_v19  ;;  %v12216_v29 = vld [vmem:[#allocation55_spill] sm:$0xff] }
 0x15a   : > { %1304 = vmatprep.mubr.f32.mxu0 %v11994_v10  ;;  %4614 = vmatprep.mubr.f32.mxu1 %v11994_v10 }
 0x15b   : > { %7123 = vmatpush1.bf16.msra.mxu0 %v7122_v51  ;;  %7507 = vmatpush1.bf16.msra.mxu1 %v7122_v51  ;;  %v12211_v51 = vld [vmem:[#allocation50_spill] sm:$0xff]  ;;  %v9858_v0 = vpack.c.bf16 %v1872_v49, %v1868_v36 }
 0x15c   : > { %7125 = vmatprep.subr.bf16.mxu0 %v7124_v26  ;;  %7509 = vmatprep.subr.bf16.mxu1 %v7124_v26  ;;  %v12214_v26 = vld [vmem:[#allocation26_spill] sm:$0xff] }
 0x15d   : > { %1308 = vmatmul.mubr.f32.gmra.mrb[14].mxu0 %v12161_v30  ;;  %4618 = vmatmul.mubr.f32.gmra.mrb[14].mxu1 %v12162_v27  ;;  %12215 = vst [vmem:[#allocation11_spill] sm:$0xff] %v9858_v0  ;;  %v12220_v30 = vld [vmem:[#allocation60_spill] sm:$0xff]  ;;  %v12221_v27 = vld [vmem:[#allocation63_spill] sm:$0xff] }
 0x15e   : > { %1313 = vmatprep.mubr.f32.mxu0 %v11994_v10  ;;  %4623 = vmatprep.mubr.f32.mxu1 %v11994_v10 }
 0x15f   : > { %7127 = vmatpush1.bf16.msra.mxu0 %v7126_v8  ;;  %7511 = vmatpush1.bf16.msra.mxu1 %v7126_v8  ;;  %v12219_v8 = vld [vmem:[#allocation58_spill] sm:$0xff] }
 0x160   : > { %7129 = vmatprep.subr.bf16.mxu0 %v12061_v42  ;;  %7513 = vmatprep.subr.bf16.mxu1 %v12061_v42  ;;  %v12168_v42 = vand.u32 4294901760, %v12111_v28  ;;  %v12175_v28 = vand.u32 4294901760, %v12174_v9  ;;  %v12231_v9 = vld [vmem:[#allocation82_spill] sm:$0xff] }
 0x161   : > { %1317 = vmatmul.mubr.f32.gmra.mrb[16].mxu0 %v12163_v31  ;;  %4627 = vmatmul.mubr.f32.gmra.mrb[16].mxu1 %v12164_v33  ;;  %v12222_v31 = vld [vmem:[#allocation65_spill] sm:$0xff]  ;;  %v12223_v33 = vld [vmem:[#allocation66_spill] sm:$0xff] }
 0x162   : > { %1322 = vmatprep.mubr.f32.mxu0 %v11994_v10  ;;  %4632 = vmatprep.mubr.f32.mxu1 %v11994_v10 }
 0x165   : > { %1326 = vmatmul.mubr.f32.gmra.mrb[18].mxu0 %v12165_v13  ;;  %4636 = vmatmul.mubr.f32.gmra.mrb[18].mxu1 %v12166_v43  ;;  %v12224_v13 = vld [vmem:[#allocation69_spill] sm:$0xff]  ;;  %v12225_v43 = vld [vmem:[#allocation71_spill] sm:$0xff] }
 0x166   : > { %1331 = vmatprep.mubr.f32.mxu0 %v11994_v10  ;;  %4641 = vmatprep.mubr.f32.mxu1 %v11994_v10 }
 0x169   : > { %1335 = vmatmul.mubr.f32.gmra.mrb[20].mxu0 %v12167_v57  ;;  %4645 = vmatmul.mubr.f32.gmra.mrb[20].mxu1 %v12168_v42  ;;  %v12226_v57 = vld [vmem:[#allocation72_spill] sm:$0xff]  ;;  %v12227_v42 = vld [vmem:[#allocation74_spill] sm:$0xff] }
 0x16a   : > { %1340 = vmatprep.mubr.f32.mxu0 %v11994_v10  ;;  %4650 = vmatprep.mubr.f32.mxu1 %v11994_v10 }
 0x16d   : > { %1344 = vmatmul.mubr.f32.gmra.mrb[22].mxu0 %v12169_v45  ;;  %4654 = vmatmul.mubr.f32.gmra.mrb[22].mxu1 %v12171_v18  ;;  %v12228_v45 = vld [vmem:[#allocation76_spill] sm:$0xff]  ;;  %v12230_v18 = vld [vmem:[#allocation81_spill] sm:$0xff] }
 0x16e   : > { %1349 = vmatprep.mubr.f32.mxu0 %v11994_v10  ;;  %4659 = vmatprep.mubr.f32.mxu1 %v11994_v10 }
 0x171   : > { %1353 = vmatmul.mubr.f32.gmra.mrb[24].mxu0 %v12173_v54  ;;  %4663 = vmatmul.mubr.f32.gmra.mrb[24].mxu1 %v12175_v28  ;;  %v198_v54 = vld [vmem:[#allocation5 + $0x10] sm:$0xff] }
 0x172   : > { %1358 = vmatprep.mubr.f32.mxu0 %v11994_v10  ;;  %4668 = vmatprep.mubr.f32.mxu1 %v11994_v10  ;;  %v12232_v28 = vld [vmem:[#allocation85_spill] sm:$0xff] }
 0x175   : > { %1362 = vmatmul.mubr.f32.gmra.mrb[26].mxu0 %v12177_v41  ;;  %4672 = vmatmul.mubr.f32.gmra.mrb[26].mxu1 %v12179_v61  ;;  %v203_v41 = vld [vmem:[#allocation5 + $0x38] sm:$0xff]  ;;  %v1874_v61 = vand.u32 4294901760, %v198_v54 }
 0x176   : > { %1367 = vmatprep.mubr.f32.mxu0 %v11994_v10  ;;  %4677 = vmatprep.mubr.f32.mxu1 %v11994_v10 }
 0x179   : > { %1371 = vmatmul.mubr.f32.gmra.mrb[28].mxu0 %v12181_v40  ;;  %4681 = vmatmul.mubr.f32.gmra.mrb[28].mxu1 %v12183_v47  ;;  %v1880_v40 = vand.u32 4294901760, %v203_v41  ;;  %v202_v47 = vld [vmem:[#allocation5 + $0x30] sm:$0xff] }
 0x17a   : > { %1376 = vmatprep.mubr.f32.mxu0 %v11994_v10  ;;  %4686 = vmatprep.mubr.f32.mxu1 %v11994_v10 }
 0x17d   : > { %1380 = vmatmul.mubr.f32.gmra.mrb[30].mxu0 %v12185_v25  ;;  %4690 = vmatmul.mubr.f32.gmra.mrb[30].mxu1 %v12186_v15  ;;  %v12234_v25 = vld [vmem:[#allocation88_spill] sm:$0xff] }
 0x17e   : > { %1546 = vmatprep.mubr.f32.mxu0 %v11994_v10  ;;  %4856 = vmatprep.mubr.f32.mxu1 %v11994_v10  ;;  %v9898_v15 = vld [vmem:[#allocation5 + $0x48] sm:$0xff] }
 0x181   : > { %1548 = vmatmul.mubr.f32.vlgmr.msra.gmra.mrb[0].mxu0 %v12187_v3  ;;  %4858 = vmatmul.mubr.f32.vlgmr.msra.gmra.mrb[0].mxu1 %v12188_v52 }
 0x182   : > { %7131 = vmatpush1.bf16.msra.mxu0 %v12189_v53  ;;  %7515 = vmatpush1.bf16.msra.mxu1 %v12189_v53  ;;  %v9900_v53 = vld [vmem:[#allocation5 + $0x58] sm:$0xff] }
 0x183   : > { %1553 = vmatprep.mubr.f32.mxu0 %v11994_v10  ;;  %4863 = vmatprep.mubr.f32.mxu1 %v11994_v10 }
 0x184   : > { %7133 = vmatprep.subr.bf16.mxu0 %v12190_v55  ;;  %7517 = vmatprep.subr.bf16.mxu1 %v12190_v55  ;;  %v9907_v55 = vsub.f32 %v9834_v44, %v1868_v36  ;;  %v11761_v44 = vand.u32 4294901760, %v9900_v53  ;;  %v9932_v36 = vld [vmem:[#allocation5 + $0x78] sm:$0xff] }
 0x185   : > { %1555 = vmatmul.mubr.f32.gmra.mrb[2].mxu0 %v12191_v34  ;;  %4865 = vmatmul.mubr.f32.gmra.mrb[2].mxu1 %v12192_v56 }
 0x186   : > { %1560 = vmatprep.mubr.f32.mxu0 %v11994_v10  ;;  %4870 = vmatprep.mubr.f32.mxu1 %v11994_v10  ;;  %12235 = vst [vmem:[#allocation28_spill] sm:$0xff] %v9907_v55 }
 0x187   : > { %7135 = vmatpush1.bf16.msra.mxu0 %v12193_v21  ;;  %7519 = vmatpush1.bf16.msra.mxu1 %v12193_v21  ;;  %v9912_v21 = vsub.f32 %v9836_v19, %v1872_v49  ;;  %v9930_v19 = vld [vmem:[#allocation5 + $0x68] sm:$0xff] }
 0x188   : > { %7137 = vmatprep.subr.bf16.mxu0 %v12194_v50  ;;  %7521 = vmatprep.subr.bf16.mxu1 %v12194_v50  ;;  %v9914_v50 = vpack.c.bf16 %v1874_v61, %v1870_v48 }
 0x189   : > { %1562 = vmatmul.mubr.f32.gmra.mrb[4].mxu0 %v12195_v4  ;;  %4872 = vmatmul.mubr.f32.gmra.mrb[4].mxu1 %v12196_v1  ;;  %12236 = vst [vmem:[#allocation31_spill] sm:$0xff] %v9912_v21  ;;  %v9936_v49 = vpack.c.bf16 %v9912_v21, %v9907_v55 }
 0x18a   : > { %1567 = vmatprep.mubr.f32.mxu0 %v11994_v10  ;;  %4877 = vmatprep.mubr.f32.mxu1 %v11994_v10  ;;  %12237 = vst [vmem:[#allocation33_spill] sm:$0xff] %v9914_v50 }
 0x18b   : > { %7139 = vmatpush1.bf16.msra.mxu0 %v12197_v5  ;;  %7523 = vmatpush1.bf16.msra.mxu1 %v12197_v5  ;;  %v9916_v5 = vsub.f32 %v196_v59, %v1870_v48  ;;  %12241 = vst [vmem:[#allocation41_spill] sm:$0xff] %v9936_v49  ;;  %v9960_v48 = vld [vmem:[#allocation5 + $0x60] sm:$0xff]  ;;  %v12281_v49 = vand.u32 4294901760, %v9930_v19 }
 0x18c   : > { %7141 = vmatprep.subr.bf16.mxu0 %v12198_v6  ;;  %7525 = vmatprep.subr.bf16.mxu1 %v12198_v6  ;;  %v9918_v6 = vsub.f32 %v198_v54, %v1874_v61  ;;  %v9962_v61 = vld [vmem:[#allocation5 + $0x70] sm:$0xff] }
 0x18d   : > { %1569 = vmatmul.mubr.f32.gmra.mrb[6].mxu0 %v12199_v7  ;;  %4879 = vmatmul.mubr.f32.gmra.mrb[6].mxu1 %v12200_v12  ;;  %12238 = vst [vmem:[#allocation34_spill] sm:$0xff] %v9916_v5 }
 0x18e   : > { %1574 = vmatprep.mubr.f32.mxu0 %v11994_v10  ;;  %4884 = vmatprep.mubr.f32.mxu1 %v11994_v10  ;;  %12239 = vst [vmem:[#allocation36_spill] sm:$0xff] %v9918_v6 }
 0x18f   : > { %7143 = vmatpush1.bf16.msra.mxu0 %v12201_v38  ;;  %7527 = vmatpush1.bf16.msra.mxu1 %v12201_v38  ;;  %v1878_v38 = vand.u32 4294901760, %v200_v46 }
 0x190   : > { %7145 = vmatprep.subr.bf16.mxu0 %v12202_v11  ;;  %7529 = vmatprep.subr.bf16.mxu1 %v12202_v11  ;;  %v1882_v11 = vand.u32 4294901760, %v202_v47 }
 0x191   : > { %1576 = vmatmul.mubr.f32.gmra.mrb[8].mxu0 %v12203_v16  ;;  %4886 = vmatmul.mubr.f32.gmra.mrb[8].mxu1 %v12204_v2  ;;  %v9976_v54 = vsub.f32 %v200_v46, %v1878_v38  ;;  %v10026_v46 = vld [vmem:[#allocation5 + $0xa0] sm:$0xff] }
 0x192   : > { %1581 = vmatprep.mubr.f32.mxu0 %v11994_v10  ;;  %4891 = vmatprep.mubr.f32.mxu1 %v11994_v10  ;;  %v9979_v59 = vsub.f32 %v202_v47, %v1882_v11 }
 0x193   : > { %7147 = vmatpush1.bf16.msra.mxu0 %v12205_v14  ;;  %7531 = vmatpush1.bf16.msra.mxu1 %v12205_v14  ;;  %v9920_v14 = vpack.c.bf16 %v1880_v40, %v1876_v39  ;;  %12247 = vst [vmem:[#allocation52_spill] sm:$0xff] %v9976_v54 }
 0x194   : > { %7149 = vmatprep.subr.bf16.mxu0 %v12206_v20  ;;  %7533 = vmatprep.subr.bf16.mxu1 %v12206_v20  ;;  %v11762_v20 = vand.u32 4294901760, %v9898_v15  ;;  %12248 = vst [vmem:[#allocation54_spill] sm:$0xff] %v9979_v59 }
 0x195   : > { %1583 = vmatmul.mubr.f32.gmra.mrb[10].mxu0 %v12207_v22  ;;  %4893 = vmatmul.mubr.f32.gmra.mrb[10].mxu1 %v12208_v35  ;;  %12240 = vst [vmem:[#allocation38_spill] sm:$0xff] %v9920_v14 }
 0x196   : > { %1588 = vmatprep.mubr.f32.mxu0 %v11994_v10  ;;  %4898 = vmatprep.mubr.f32.mxu1 %v11994_v10 }
 0x197   : > { %7151 = vmatpush1.bf16.msra.mxu0 %v12209_v63  ;;  %7535 = vmatpush1.bf16.msra.mxu1 %v12209_v63  ;;  %v9924_v63 = vld [vmem:[#allocation5 + $0x40] sm:$0xff] }
 0x198   : > { %7153 = vmatprep.subr.bf16.mxu0 %v12210_v24  ;;  %7537 = vmatprep.subr.bf16.mxu1 %v12210_v24  ;;  %v9926_v24 = vld [vmem:[#allocation5 + $0x50] sm:$0xff] }
 0x199   : > { %1590 = vmatmul.mubr.f32.gmra.mrb[12].mxu0 %v12211_v51  ;;  %4900 = vmatmul.mubr.f32.gmra.mrb[12].mxu1 %v12212_v58 }
 0x19a   : > { %1595 = vmatprep.mubr.f32.mxu0 %v11994_v10  ;;  %4905 = vmatprep.mubr.f32.mxu1 %v11994_v10 }
 0x19b   : > { %7155 = vmatpush1.bf16.msra.mxu0 %v12213_v32  ;;  %7539 = vmatpush1.bf16.msra.mxu1 %v12213_v32  ;;  %v9940_v32 = vpack.c.bf16 %v9918_v6, %v9916_v5 }
 0x19c   : > { %7157 = vmatprep.subr.bf16.mxu0 %v12214_v26  ;;  %7541 = vmatprep.subr.bf16.mxu1 %v12214_v26  ;;  %v1890_v26 = vand.u32 4294901760, %v9926_v24 }
 0x19d   : > { %1597 = vmatmul.mubr.f32.gmra.mrb[14].mxu0 %v12216_v29  ;;  %4907 = vmatmul.mubr.f32.gmra.mrb[14].mxu1 %v12217_v60  ;;  %12242 = vst [vmem:[#allocation43_spill] sm:$0xff] %v9940_v32  ;;  %v9986_v32 = vld [vmem:[#allocation5 + $0x80] sm:$0xff] }
 0x19e   : > { %1602 = vmatprep.mubr.f32.mxu0 %v11994_v10  ;;  %4912 = vmatprep.mubr.f32.mxu1 %v11994_v10 }
 0x19f   : > { %7159 = vmatpush1.bf16.msra.mxu0 %v12218_v62  ;;  %7543 = vmatpush1.bf16.msra.mxu1 %v12218_v62  ;;  %v9956_v62 = vpack.c.bf16 %v11761_v44, %v11762_v20  ;;  %v9972_v44 = vsub.f32 %v201_v23, %v1876_v39  ;;  %v9974_v20 = vsub.f32 %v203_v41, %v1880_v40  ;;  %v9988_v23 = vld [vmem:[#allocation5 + $0x90] sm:$0xff]  ;;  %v12250_v41 = vand.u32 4294901760, %v9930_v19 }
 0x1a0   : > { %7161 = vmatprep.subr.bf16.mxu0 %v9858_v0  ;;  %7545 = vmatprep.subr.bf16.mxu1 %v9858_v0  ;;  %v12251_v39 = vand.u32 4294901760, %v9932_v36 }
 0x1a1   : > { %1604 = vmatmul.mubr.f32.gmra.mrb[16].mxu0 %v12219_v8  ;;  %4914 = vmatmul.mubr.f32.gmra.mrb[16].mxu1 %v12220_v30  ;;  %12244 = vst [vmem:[#allocation46_spill] sm:$0xff] %v9956_v62  ;;  %12245 = vst [vmem:[#allocation49_spill] sm:$0xff] %v9972_v44  ;;  %v10008_v0 = vpack.c.bf16 %v9974_v20, %v9972_v44 }
 0x1a2   : > { %1609 = vmatprep.mubr.f32.mxu0 %v11994_v10  ;;  %4919 = vmatprep.mubr.f32.mxu1 %v11994_v10  ;;  %12246 = vst [vmem:[#allocation51_spill] sm:$0xff] %v9974_v20  ;;  %v9996_v40 = vpack.c.bf16 %v12251_v39, %v12250_v41  ;;  %v10012_v41 = vpack.c.bf16 %v9979_v59, %v9976_v54  ;;  %v12255_v39 = vand.u32 4294901760, %v9962_v61 }
 0x1a3   : > { %12253 = vst [vmem:[#allocation61_spill] sm:$0xff] %v10008_v0 }
 0x1a4   : > { %12252 = vst [vmem:[#allocation59_spill] sm:$0xff] %v9996_v40  ;;  %12254 = vst [vmem:[#allocation62_spill] sm:$0xff] %v10012_v41  ;;  %v10038_v41 = vld [vmem:[#allocation5 + $0xb0] sm:$0xff] }
 0x1a5   : > { %1611 = vmatmul.mubr.f32.gmra.mrb[18].mxu0 %v12221_v27  ;;  %4921 = vmatmul.mubr.f32.gmra.mrb[18].mxu1 %v12222_v31 }
 0x1a6   : > { %1616 = vmatprep.mubr.f32.mxu0 %v11994_v10  ;;  %4926 = vmatprep.mubr.f32.mxu1 %v11994_v10 }
 0x1a9   : > { %1618 = vmatmul.mubr.f32.gmra.mrb[20].mxu0 %v12223_v33  ;;  %4928 = vmatmul.mubr.f32.gmra.mrb[20].mxu1 %v12224_v13 }
 0x1aa   : > { %1623 = vmatprep.mubr.f32.mxu0 %v11994_v10  ;;  %4933 = vmatprep.mubr.f32.mxu1 %v11994_v10 }
 0x1ad   : > { %1625 = vmatmul.mubr.f32.gmra.mrb[22].mxu0 %v12225_v43  ;;  %4935 = vmatmul.mubr.f32.gmra.mrb[22].mxu1 %v12226_v57 }
 0x1ae   : > { %1630 = vmatprep.mubr.f32.mxu0 %v11994_v10  ;;  %4940 = vmatprep.mubr.f32.mxu1 %v11994_v10 }
 0x1b1   : > { %1632 = vmatmul.mubr.f32.gmra.mrb[24].mxu0 %v12227_v42  ;;  %4942 = vmatmul.mubr.f32.gmra.mrb[24].mxu1 %v12228_v45 }
 0x1b2   : > { %1637 = vmatprep.mubr.f32.mxu0 %v11994_v10  ;;  %4947 = vmatprep.mubr.f32.mxu1 %v11994_v10 }
 0x1b5   : > { %1639 = vmatmul.mubr.f32.gmra.mrb[26].mxu0 %v12229_v17  ;;  %4949 = vmatmul.mubr.f32.gmra.mrb[26].mxu1 %v12230_v18 }
 0x1b6   : > { %1644 = vmatprep.mubr.f32.mxu0 %v11994_v10  ;;  %4954 = vmatprep.mubr.f32.mxu1 %v11994_v10 }
 0x1b9   : > { %1646 = vmatmul.mubr.f32.gmra.mrb[28].mxu0 %v12231_v9  ;;  %4956 = vmatmul.mubr.f32.gmra.mrb[28].mxu1 %v12232_v28 }
 0x1ba   : > { %1651 = vmatprep.mubr.f32.mxu0 %v11994_v10  ;;  %4961 = vmatprep.mubr.f32.mxu1 %v11994_v10 }
 0x1bd   : > { %1653 = vmatmul.mubr.f32.gmra.mrb[30].mxu0 %v12233_v37  ;;  %4963 = vmatmul.mubr.f32.gmra.mrb[30].mxu1 %v12234_v25  ;;  %v12279_v25 = vand.u32 4294901760, %v9907_v55 }
 0x1be   : > { %1755 = vmatprep.mubr.f32.mxu0 %v11994_v10  ;;  %5065 = vmatprep.mubr.f32.mxu1 %v11994_v10 }
 0x1c1   : > { %1757 = vmatmul.mubr.f32.vlgmr.msra.gmra.mrb[0].mxu0 %v12187_v3  ;;  %5067 = vmatmul.mubr.f32.vlgmr.msra.gmra.mrb[0].mxu1 %v12188_v52  ;;  %v9946_v3 = vpack.c.bf16 %v1882_v11, %v1878_v38  ;;  %v1886_v52 = vand.u32 4294901760, %v9924_v63  ;;  %v10002_v38 = vld [vmem:[#allocation5 + $0xa8] sm:$0xff]  ;;  %v10004_v11 = vld [vmem:[#allocation5 + $0xb8] sm:$0xff] }
 0x1c2   : > { %7163 = vmatpush1.bf16.msra.mxu0 %v9914_v50  ;;  %7547 = vmatpush1.bf16.msra.mxu1 %v9914_v50  ;;  %v9966_v50 = vld [vmem:[#allocation5 + $0x88] sm:$0xff] }
 0x1c3   : > { %1762 = vmatprep.mubr.f32.mxu0 %v11994_v10  ;;  %5072 = vmatprep.mubr.f32.mxu1 %v11994_v10  ;;  %12243 = vst [vmem:[#allocation44_spill] sm:$0xff] %v9946_v3 }
 0x1c4   : > { %7165 = vmatprep.subr.bf16.mxu0 %v9920_v14  ;;  %7549 = vmatprep.subr.bf16.mxu1 %v9920_v14  ;;  %v9968_v14 = vld [vmem:[#allocation5 + $0x98] sm:$0xff] }
 0x1c5   : > { %1764 = vmatmul.mubr.f32.gmra.mrb[2].mxu0 %v12191_v34  ;;  %5074 = vmatmul.mubr.f32.gmra.mrb[2].mxu1 %v12192_v56  ;;  %v9982_v34 = vpack.c.bf16 %v1890_v26, %v1886_v52  ;;  %v11773_v56 = vand.u32 4294901760, %v9960_v48 }
 0x1c6   : > { %1769 = vmatprep.mubr.f32.mxu0 %v11994_v10  ;;  %5079 = vmatprep.mubr.f32.mxu1 %v11994_v10 }
 0x1c7   : > { %7167 = vmatpush1.bf16.msra.mxu0 %v9946_v3  ;;  %7551 = vmatpush1.bf16.msra.mxu1 %v9946_v3  ;;  %12249 = vst [vmem:[#allocation57_spill] sm:$0xff] %v9982_v34  ;;  %v10024_v47 = vpack.c.bf16 %v12255_v39, %v11773_v56  ;;  %v10040_v39 = vld [vmem:[#allocation5 + $0xc8] sm:$0xff]  ;;  %v10042_v56 = vld [vmem:[#allocation5 + $0xd8] sm:$0xff]  ;;  %v10059_v3 = vsub.f32 %v9924_v63, %v1886_v52 }
 0x1c8   : > { %7169 = vmatprep.subr.bf16.mxu0 %v9956_v62  ;;  %7553 = vmatprep.subr.bf16.mxu1 %v9956_v62  ;;  %v10092_v52 = vld [vmem:[#allocation5 + $0xe8] sm:$0xff] }
 0x1c9   : > { %1771 = vmatmul.mubr.f32.gmra.mrb[4].mxu0 %v12195_v4  ;;  %5081 = vmatmul.mubr.f32.gmra.mrb[4].mxu1 %v12196_v1  ;;  %12256 = vst [vmem:[#allocation64_spill] sm:$0xff] %v10024_v47  ;;  %v12257_v4 = vand.u32 4294901760, %v9966_v50  ;;  %v12258_v1 = vand.u32 4294901760, %v9968_v14  ;;  %12264 = vst [vmem:[#allocation73_spill] sm:$0xff] %v10059_v3 }
 0x1ca   : > { %1776 = vmatprep.mubr.f32.mxu0 %v11994_v10  ;;  %5086 = vmatprep.mubr.f32.mxu1 %v11994_v10 }
 0x1cb   : > { %7171 = vmatpush1.bf16.msra.mxu0 %v9982_v34  ;;  %7555 = vmatpush1.bf16.msra.mxu1 %v9982_v34  ;;  %v10034_v62 = vpack.c.bf16 %v12258_v1, %v12257_v4  ;;  %v11777_v34 = vand.u32 4294901760, %v10002_v38  ;;  %v12262_v4 = vand.u32 4294901760, %v9900_v53 }
 0x1cc   : > { %7173 = vmatprep.subr.bf16.mxu0 %v9996_v40  ;;  %7557 = vmatprep.subr.bf16.mxu1 %v9996_v40  ;;  %v12260_v40 = vand.u32 4294901760, %v9898_v15 }
 0x1cd   : > { %12259 = vst [vmem:[#allocation67_spill] sm:$0xff] %v10034_v62  ;;  %1778 = vmatmul.mubr.f32.gmra.mrb[6].mxu0 %v12199_v7  ;;  %5088 = vmatmul.mubr.f32.gmra.mrb[6].mxu1 %v12200_v12  ;;  %v10054_v1 = vsub.f32 %v9900_v53, %v12262_v4  ;;  %v10062_v7 = vsub.f32 %v9926_v24, %v1890_v26  ;;  %v12266_v12 = vand.u32 4294901760, %v9986_v32  ;;  %v12269_v24 = vand.u32 4294901760, %v10004_v11  ;;  %v10094_v53 = vld [vmem:[#allocation5 + $0xf8] sm:$0xff] }
 0x1ce   : > { %v10049_v0 = vsub.f32 %v9898_v15, %v12260_v40  ;;  %1783 = vmatprep.mubr.f32.mxu0 %v11994_v10  ;;  %5093 = vmatprep.mubr.f32.mxu1 %v11994_v10  ;;  %v12267_v15 = vand.u32 4294901760, %v9988_v23  ;;  %v12276_v4 = vand.u32 4294901760, %v10040_v39 }
 0x1cf   : > { %12263 = vst [vmem:[#allocation70_spill] sm:$0xff] %v10054_v1  ;;  %12265 = vst [vmem:[#allocation75_spill] sm:$0xff] %v10062_v7  ;;  %7175 = vmatpush1.bf16.msra.mxu0 %v10024_v47  ;;  %7559 = vmatpush1.bf16.msra.mxu1 %v10024_v47  ;;  %v10082_v26 = vpack.c.bf16 %v12269_v24, %v11777_v34  ;;  %v10102_v34 = vpack.c.bf16 %v10062_v7, %v10059_v3 }
 0x1d0   : > { %12261 = vst [vmem:[#allocation68_spill] sm:$0xff] %v10049_v0  ;;  %v10068_v40 = vpack.c.bf16 %v12267_v15, %v12266_v12  ;;  %7177 = vmatprep.subr.bf16.mxu0 %v10034_v62  ;;  %7561 = vmatprep.subr.bf16.mxu1 %v10034_v62  ;;  %v10084_v12 = vld [vmem:[#allocation5 + $0xc0] sm:$0xff]  ;;  %v10086_v15 = vld [vmem:[#allocation5 + $0xd0] sm:$0xff]  ;;  %v10098_v24 = vpack.c.bf16 %v10054_v1, %v10049_v0  ;;  %v12277_v62 = vand.u32 4294901760, %v10042_v56 }
 0x1d1   : > { %12270 = vst [vmem:[#allocation78_spill] sm:$0xff] %v10082_v26  ;;  %1785 = vmatmul.mubr.f32.gmra.mrb[8].mxu0 %v12203_v16  ;;  %5095 = vmatmul.mubr.f32.gmra.mrb[8].mxu1 %v12204_v2  ;;  %12272 = vst [vmem:[#allocation83_spill] sm:$0xff] %v10102_v34  ;;  %v12273_v16 = vand.u32 4294901760, %v10026_v46  ;;  %v12274_v2 = vand.u32 4294901760, %v10038_v41 }
 0x1d2   : > { %12268 = vst [vmem:[#allocation77_spill] sm:$0xff] %v10068_v40  ;;  %12271 = vst [vmem:[#allocation80_spill] sm:$0xff] %v10098_v24  ;;  %1790 = vmatprep.mubr.f32.mxu0 %v11994_v10  ;;  %5100 = vmatprep.mubr.f32.mxu1 %v11994_v10  ;;  %v10118_v47 = vpack.c.bf16 %v12277_v62, %v12276_v4  ;;  %v2144_v62 = vsub.f32 %v9907_v55, %v12279_v25  ;;  %v12280_v4 = vand.u32 4294901760, %v9912_v21  ;;  %v180_v55 = vld [vmem:[%s8804_s3] sm:$0xff] }
 0x1d3   : > { %7179 = vmatpush1.bf16.msra.mxu0 %v10068_v40  ;;  %7563 = vmatpush1.bf16.msra.mxu1 %v10068_v40  ;;  %v10112_v63 = vpack.c.bf16 %v12274_v2, %v12273_v16  ;;  %v10126_v16 = vld [vmem:[#allocation5 + $0xe0] sm:$0xff]  ;;  %v10128_v2 = vld [vmem:[#allocation5 + $0xf0] sm:$0xff]  ;;  %v10143_v40 = vsub.f32 %v9930_v19, %v12281_v49  ;;  %v12283_v25 = vand.u32 4294901760, %v9932_v36  ;;  %v12289_v19 = vand.u32 4294901760, %v10084_v12 }
 0x1d4   : > { %12278 = vst [vmem:[#allocation86_spill] sm:$0xff] %v10118_v47  ;;  %7181 = vmatprep.subr.bf16.mxu0 %v10082_v26  ;;  %7565 = vmatprep.subr.bf16.mxu1 %v10082_v26  ;;  %v2156_v24 = vsub.f32 %v9912_v21, %v12280_v4  ;;  %v12285_v4 = vand.u32 4294901760, %v9960_v48 }
 0x1d5   : > { %12275 = vst [vmem:[#allocation84_spill] sm:$0xff] %v10112_v63  ;;  %1792 = vmatmul.mubr.f32.gmra.mrb[10].mxu0 %v12207_v22  ;;  %5102 = vmatmul.mubr.f32.gmra.mrb[10].mxu1 %v12208_v35  ;;  %12282 = vst [vmem:[#allocation89_spill] sm:$0xff] %v10143_v40  ;;  %v10148_v34 = vsub.f32 %v9932_v36, %v12283_v25  ;;  %v12287_v35 = vand.u32 4294901760, %v9962_v61  ;;  %v12290_v36 = vand.u32 4294901760, %v10086_v15  ;;  %v11793_v25 = vand.u32 4294901760, %v10126_v16 }
 0x1d6   : > { %1797 = vmatprep.mubr.f32.mxu0 %v11994_v10  ;;  %5107 = vmatprep.mubr.f32.mxu1 %v11994_v10  ;;  %v10153_v22 = vsub.f32 %v9960_v48, %v12285_v4  ;;  %v12293_v4 = vand.u32 4294901760, %v10094_v53  ;;  %v2157_v26 = vand.u32 4294901760, %v2156_v24  ;;  %v10200_v24 = vand.u32 4294901760, %v180_v55 }
 0x1d7   : > { %12284 = vst [vmem:[#allocation25_spill] sm:$0xff] %v10148_v34  ;;  %v10158_v21 = vsub.f32 %v9962_v61, %v12287_v35  ;;  %7183 = vmatpush1.bf16.msra.mxu0 %v10112_v63  ;;  %7567 = vmatpush1.bf16.msra.mxu1 %v10112_v63  ;;  %v10166_v49 = vpack.c.bf16 %v12290_v36, %v12289_v19  ;;  %v12292_v61 = vand.u32 4294901760, %v10092_v52  ;;  %v2145_v63 = vand.u32 4294901760, %v2144_v62  ;;  %v6926_v19 = vld [vmem:[%s8804_s3 + $0x80] sm:$0xff] }
 0x1d8   : > { %12286 = vst [vmem:[#allocation29_spill] sm:$0xff] %v10153_v22  ;;  %7185 = vmatprep.subr.bf16.mxu0 %v10118_v47  ;;  %7569 = vmatprep.subr.bf16.mxu1 %v10118_v47  ;;  %v10184_v36 = vpack.c.bf16 %v10148_v34, %v10143_v40 }
 0x1d9   : > { %12288 = vst [vmem:[#allocation12_spill] sm:$0xff] %v10158_v21  ;;  %12291 = vst [vmem:[#allocation13_spill] sm:$0xff] %v10166_v49  ;;  %v10176_v35 = vpack.c.bf16 %v12293_v4, %v12292_v61  ;;  %1799 = vmatmul.mubr.f32.gmra.mrb[12].mxu0 %v12211_v51  ;;  %5109 = vmatmul.mubr.f32.gmra.mrb[12].mxu1 %v12212_v58  ;;  %v10188_v48 = vpack.c.bf16 %v10158_v21, %v10153_v22  ;;  %v12297_v51 = vand.u32 4294901760, %v10128_v2  ;;  %v181_v4 = vld [vmem:[%s8804_s3 + $0x8] sm:$0xff] }
 0x1da   : > { %12295 = vst [vmem:[#allocation32_spill] sm:$0xff] %v10184_v36  ;;  %1804 = vmatprep.mubr.f32.mxu0 %v11994_v10  ;;  %5114 = vmatprep.mubr.f32.mxu1 %v11994_v10  ;;  %v7192_v62 = vpack.c.bf16 %v2157_v26, %v2145_v63  ;;  %v10204_v61 = vand.u32 4294901760, %v6926_v19  ;;  %v6927_v26 = vld [vmem:[%s8804_s3 + $0x88] sm:$0xff]  ;;  %v12336_v36 = vand.u32 4294901760, %v10094_v53 }
 0x1db   : > { %12294 = vst [vmem:[#allocation30_spill] sm:$0xff] %v10176_v35  ;;  %12296 = vst [vmem:[#allocation14_spill] sm:$0xff] %v10188_v48  ;;  %7187 = vmatpush1.bf16.msra.mxu0 %v10166_v49  ;;  %7571 = vmatpush1.bf16.msra.mxu1 %v10166_v49  ;;  %v10198_v58 = vpack.c.bf16 %v12297_v51, %v11793_v25  ;;  %v12300_v51 = vand.u32 4294901760, %v9966_v50  ;;  %v12306_v49 = vand.u32 4294901760, %v9988_v23 }
 0x1dc   : > { %7189 = vmatprep.subr.bf16.mxu0 %v10176_v35  ;;  %7573 = vmatprep.subr.bf16.mxu1 %v10176_v35  ;;  %12299 = vst [vmem:[#allocation35_spill] sm:$0xff] %v10204_v61  ;;  %v12302_v35 = vand.u32 4294901760, %v9968_v14 }
 0x1dd   : > { %12298 = vst [vmem:[#allocation15_spill] sm:$0xff] %v10198_v58  ;;  %1806 = vmatmul.mubr.f32.gmra.mrb[14].mxu0 %v12216_v29  ;;  %5116 = vmatmul.mubr.f32.gmra.mrb[14].mxu1 %v12217_v60  ;;  %v10214_v25 = vsub.f32 %v9966_v50, %v12300_v51  ;;  %v12304_v29 = vand.u32 4294901760, %v9986_v32  ;;  %v10230_v47 = vsub.f32 %v9988_v23, %v12306_v49  ;;  %v182_v23 = vld [vmem:[%s8804_s3 + $0x10] sm:$0xff] }
 0x1de   : > { %1811 = vmatprep.mubr.f32.mxu0 %v11994_v10  ;;  %5121 = vmatprep.mubr.f32.mxu1 %v11994_v10  ;;  %v10219_v63 = vsub.f32 %v9968_v14, %v12302_v35  ;;  %v10235_v50 = vsub.f32 %v180_v55, %v10200_v24  ;;  %v10237_v14 = vand.u32 4294901760, %v181_v4  ;;  %v10240_v35 = vsub.f32 %v6926_v19, %v10204_v61  ;;  %v6928_v51 = vld [vmem:[%s8804_s3 + $0x90] sm:$0xff] }
 0x1df   : > { %12301 = vst [vmem:[#allocation37_spill] sm:$0xff] %v10214_v25  ;;  %v10225_v60 = vsub.f32 %v9986_v32, %v12304_v29  ;;  %12307 = vst [vmem:[#allocation39_spill] sm:$0xff] %v10230_v47  ;;  %7191 = vmatpush1.bf16.msra.mxu0 %v10198_v58  ;;  %7575 = vmatpush1.bf16.msra.mxu1 %v10198_v58  ;;  %v10244_v32 = vand.u32 4294901760, %v6927_v26  ;;  %v12314_v19 = vand.u32 4294901760, %v10002_v38  ;;  %v12317_v29 = vand.u32 4294901760, %v10004_v11  ;;  %v186_v61 = vld [vmem:[%s8804_s3 + $0x30] sm:$0xff] }
 0x1e0   : > { %12303 = vst [vmem:[#allocation16_spill] sm:$0xff] %v10219_v63  ;;  %12308 = vst [vmem:[#allocation40_spill] sm:$0xff] %v10235_v50  ;;  %7193 = vmatprep.subr.bf16.mxu0 %v7192_v62  ;;  %7577 = vmatprep.subr.bf16.mxu1 %v7192_v62  ;;  %v10249_v49 = vpack.c.bf16 %v10219_v63, %v10214_v25  ;;  %v10264_v62 = vsub.f32 %v181_v4, %v10237_v14  ;;  %v12322_v4 = vand.u32 4294901760, %v10038_v41 }
 0x1e1   : > { %12305 = vst [vmem:[#allocation17_spill] sm:$0xff] %v10225_v60  ;;  %12309 = vst [vmem:[#allocation18_spill] sm:$0xff] %v10237_v14  ;;  %1813 = vmatmul.mubr.f32.gmra.mrb[16].mxu0 %v12219_v8  ;;  %5123 = vmatmul.mubr.f32.gmra.mrb[16].mxu1 %v12220_v30  ;;  %v10253_v55 = vpack.c.bf16 %v10230_v47, %v10225_v60  ;;  %v10260_v8 = vsub.f32 %v10002_v38, %v12314_v19  ;;  %v10278_v19 = vand.u32 4294901760, %v182_v23 }
 0x1e2   : > { %12310 = vst [vmem:[#allocation19_spill] sm:$0xff] %v10240_v35  ;;  %12311 = vst [vmem:[#allocation42_spill] sm:$0xff] %v10244_v32  ;;  %1818 = vmatprep.mubr.f32.mxu0 %v11994_v10  ;;  %5128 = vmatprep.mubr.f32.mxu1 %v11994_v10  ;;  %v10270_v58 = vsub.f32 %v10004_v11, %v12317_v29  ;;  %v10285_v30 = vsub.f32 %v10038_v41, %v12322_v4  ;;  %v12324_v11 = vand.u32 4294901760, %v10040_v39  ;;  %v183_v4 = vld [vmem:[%s8804_s3 + $0x18] sm:$0xff] }
 0x1e3   : > { %12312 = vst [vmem:[#allocation45_spill] sm:$0xff] %v10249_v49  ;;  %12313 = vst [vmem:[#allocation20_spill] sm:$0xff] %v10253_v55  ;;  %v12319_v55 = vand.u32 4294901760, %v10026_v46  ;;  %v12329_v41 = vand.u32 4294901760, %v10084_v12 }
 0x1e4   : > { %12315 = vst [vmem:[#allocation21_spill] sm:$0xff] %v10260_v8  ;;  %12316 = vst [vmem:[#allocation47_spill] sm:$0xff] %v10264_v62  ;;  %v10290_v29 = vsub.f32 %v10040_v39, %v12324_v11  ;;  %v12332_v11 = vand.u32 4294901760, %v10086_v15  ;;  %v12335_v39 = vand.u32 4294901760, %v10092_v52 }
 0x1e5   : > { %12318 = vst [vmem:[#allocation48_spill] sm:$0xff] %v10270_v58  ;;  %v10275_v49 = vsub.f32 %v10026_v46, %v12319_v55  ;;  %12321 = vst [vmem:[#allocation23_spill] sm:$0xff] %v10278_v19  ;;  %1820 = vmatmul.mubr.f32.gmra.mrb[18].mxu0 %v12221_v27  ;;  %5130 = vmatmul.mubr.f32.gmra.mrb[18].mxu1 %v12222_v31  ;;  %v10293_v46 = vsub.f32 %v6927_v26, %v10244_v32  ;;  %v12327_v27 = vand.u32 4294901760, %v10042_v56 }
 0x1e6   : > { %12323 = vst [vmem:[#allocation50_spill] sm:$0xff] %v10285_v30  ;;  %12325 = vst [vmem:[#allocation53_spill] sm:$0xff] %v10290_v29  ;;  %1825 = vmatprep.mubr.f32.mxu0 %v11994_v10  ;;  %5135 = vmatprep.mubr.f32.mxu1 %v11994_v10  ;;  %v10305_v55 = vsub.f32 %v10084_v12, %v12329_v41  ;;  %v10308_v26 = vand.u32 4294901760, %v6928_v51  ;;  %v10314_v38 = vsub.f32 %v10086_v15, %v12332_v11 }
 0x1e7   : > { %12320 = vst [vmem:[#allocation22_spill] sm:$0xff] %v10275_v49  ;;  %12326 = vst [vmem:[#allocation24_spill] sm:$0xff] %v10293_v46  ;;  %v10300_v31 = vsub.f32 %v10042_v56, %v12327_v27  ;;  %v12334_v56 = vand.u32 4294901760, %v10235_v50  ;;  %v10326_v48 = vsub.f32 %v10092_v52, %v12335_v39  ;;  %v10331_v32 = vsub.f32 %v10094_v53, %v12336_v36  ;;  %v6929_v53 = vld [vmem:[%s8804_s3 + $0x98] sm:$0xff]  ;;  %v184_v36 = vld [vmem:[%s8804_s3 + $0x20] sm:$0xff] }
 0x1e8   : > { %12330 = vst [vmem:[#allocation55_spill] sm:$0xff] %v10305_v55  ;;  %12331 = vst [vmem:[#allocation56_spill] sm:$0xff] %v10308_v26  ;;  %v12337_v15 = vand.u32 4294901760, %v10240_v35  ;;  %v10344_v39 = vand.u32 4294901760, %v183_v4  ;;  %v10350_v41 = vpack.c.bf16 %v10270_v58, %v10260_v8  ;;  %v10367_v12 = vsub.f32 %v6928_v51, %v10308_v26 }
 0x1e9   : > { %12328 = vst [vmem:[#allocation26_spill] sm:$0xff] %v10300_v31  ;;  %12333 = vst [vmem:[#allocation27_spill] sm:$0xff] %v10314_v38  ;;  %v10319_v27 = vsub.f32 %v10235_v50, %v12334_v56  ;;  %v10339_v56 = vsub.f32 %v182_v23, %v10278_v19  ;;  %1827 = vmatmul.mubr.f32.gmra.mrb[20].mxu0 %v12223_v33  ;;  %5137 = vmatmul.mubr.f32.gmra.mrb[20].mxu1 %v12224_v13  ;;  %v12342_v33 = vand.u32 4294901760, %v10126_v16 }
 0x1ea   : > { %v10336_v11 = vsub.f32 %v10240_v35, %v12337_v15  ;;  %12339 = vst [vmem:[#allocation60_spill] sm:$0xff] %v10344_v39  ;;  %12340 = vst [vmem:[#allocation63_spill] sm:$0xff] %v10350_v41  ;;  %v10354_v15 = vpack.c.bf16 %v10285_v30, %v10275_v49  ;;  %1832 = vmatprep.mubr.f32.mxu0 %v11994_v10  ;;  %5142 = vmatprep.mubr.f32.mxu1 %v11994_v10  ;;  %v12344_v23 = vand.u32 4294901760, %v9916_v5  ;;  %v6930_v35 = vld [vmem:[%s8804_s3 + $0xa0] sm:$0xff] }
 0x1eb   : > { %12338 = vst [vmem:[#allocation58_spill] sm:$0xff] %v10339_v56  ;;  %v10361_v13 = vsub.f32 %v10126_v16, %v12342_v33  ;;  %v12345_v50 = vand.u32 4294901760, %v10128_v2  ;;  %v12347_v19 = vand.u32 4294901760, %v9918_v6  ;;  %v12348_v33 = vand.u32 4294901760, %v10264_v62 }
 0x1ec   : > { %12341 = vst [vmem:[#allocation65_spill] sm:$0xff] %v10354_v15  ;;  %v2150_v52 = vsub.f32 %v9916_v5, %v12344_v23  ;;  %v185_v23 = vld [vmem:[%s8804_s3 + $0x28] sm:$0xff]  ;;  %v10387_v26 = vand.u32 4294901760, %v6929_v53  ;;  %v10400_v41 = vsub.f32 %v183_v4, %v10344_v39  ;;  %v10402_v5 = vand.u32 4294901760, %v6930_v35 }
 0x1ed   : > { %12343 = vst [vmem:[#allocation66_spill] sm:$0xff] %v10361_v13  ;;  %v10373_v15 = vsub.f32 %v10128_v2, %v12345_v50  ;;  %v2162_v16 = vsub.f32 %v9918_v6, %v12347_v19  ;;  %v10382_v14 = vsub.f32 %v10264_v62, %v12348_v33  ;;  %v10389_v2 = vand.u32 4294901760, %v184_v36  ;;  %1834 = vmatmul.mubr.f32.gmra.mrb[22].mxu0 %v12225_v43  ;;  %v6931_v6 = vld [vmem:[%s8804_s3 + $0xa8] sm:$0xff] }
 0x1ee   : > { %5144 = vmatmul.mubr.f32.gmra.mrb[22].mxu1 %v12226_v57  ;;  %v12350_v19 = vand.u32 4294901760, %v10293_v46  ;;  %12351 = vst [vmem:[#allocation72_spill] sm:$0xff] %v10400_v41  ;;  %12352 = vst [vmem:[#allocation74_spill] sm:$0xff] %v10402_v5  ;;  %1839 = vmatprep.mubr.f32.mxu0 %v11994_v10  ;;  %v2151_v43 = vand.u32 4294901760, %v2150_v52  ;;  %v10408_v51 = vand.u32 4294901760, %v185_v23  ;;  %v12354_v62 = vand.u32 4294901760, %v10339_v56 }
 0x1ef   : > { %12346 = vst [vmem:[#allocation69_spill] sm:$0xff] %v10373_v15  ;;  %12349 = vst [vmem:[#allocation71_spill] sm:$0xff] %v10389_v2  ;;  %5149 = vmatprep.mubr.f32.mxu1 %v11994_v10  ;;  %v12355_v52 = vand.u32 4294901760, %v9972_v44  ;;  %v10422_v50 = vsub.f32 %v6929_v53, %v10387_v26  ;;  %v10441_v53 = vpack.c.bf16 %v10314_v38, %v10305_v55 }
 0x1f0   : > { %v10397_v33 = vsub.f32 %v10293_v46, %v12350_v19  ;;  %12353 = vst [vmem:[#allocation76_spill] sm:$0xff] %v10408_v51  ;;  %v2163_v19 = vand.u32 4294901760, %v2162_v16  ;;  %v10416_v39 = vsub.f32 %v10339_v56, %v12354_v62  ;;  %v10425_v16 = vsub.f32 %v184_v36, %v10389_v2 }
 0x1f1   : > { %v2168_v57 = vsub.f32 %v9972_v44, %v12355_v52  ;;  %12356 = vst [vmem:[#allocation79_spill] sm:$0xff] %v10422_v50  ;;  %1841 = vmatmul.mubr.f32.gmra.mrb[24].mxu0 %v12227_v42  ;;  %v10433_v62 = vsub.f32 %v6930_v35, %v10402_v5  ;;  %v10437_v52 = vpack.c.bf16 %v10300_v31, %v10290_v29  ;;  %12360 = vst [vmem:[#allocation87_spill] sm:$0xff] %v10441_v53 }
 0x1f2   : > { %12357 = vst [vmem:[#allocation81_spill] sm:$0xff] %v10425_v16  ;;  %5151 = vmatmul.mubr.f32.gmra.mrb[24].mxu1 %v12228_v45  ;;  %1846 = vmatprep.mubr.f32.mxu0 %v11994_v10  ;;  %v12361_v45 = vand.u32 4294901760, %v9974_v20  ;;  %v12362_v35 = vand.u32 4294901760, %v10367_v12  ;;  %v10455_v4 = vsub.f32 %v185_v23, %v10408_v51  ;;  %v12363_v44 = vand.u32 4294901760, %v9976_v54 }
 0x1f3   : > { %12358 = vst [vmem:[#allocation82_spill] sm:$0xff] %v10433_v62  ;;  %12359 = vst [vmem:[#allocation85_spill] sm:$0xff] %v10437_v52  ;;  %5156 = vmatprep.mubr.f32.mxu1 %v11994_v10  ;;  %v12364_v53 = vand.u32 4294901760, %v9979_v59  ;;  %v10463_v52 = vand.u32 4294901760, %v6931_v6  ;;  %v10465_v5 = vand.u32 4294901760, %v186_v61 }
 0x1f4   : > { %v2180_v36 = vsub.f32 %v9974_v20, %v12361_v45  ;;  %v10452_v46 = vsub.f32 %v10367_v12, %v12362_v35  ;;  %v2174_v56 = vsub.f32 %v9976_v54, %v12363_v44  ;;  %v10467_v45 = vpack.c.bf16 %v2163_v19, %v2151_v43 }
 0x1f5   : > { %v2186_v42 = vsub.f32 %v9979_v59, %v12364_v53  ;;  %12365 = vst [vmem:[#allocation90_spill] sm:$0xff] %v10463_v52  ;;  %12366 = vst [vmem:[#allocation91_spill] sm:$0xff] %v10465_v5  ;;  %v11840_v35 = vand.u32 4294901760, %v10422_v50  ;;  %1848 = vmatmul.mubr.f32.gmra.mrb[26].mxu0 %v12229_v17  ;;  %v2169_v44 = vand.u32 4294901760, %v2168_v57  ;;  %v12367_v54 = vand.u32 4294901760, %v10400_v41 }
 0x1f6   : > { %5158 = vmatmul.mubr.f32.gmra.mrb[26].mxu1 %v12230_v18  ;;  %1853 = vmatprep.mubr.f32.mxu0 %v11994_v10  ;;  %v2181_v19 = vand.u32 4294901760, %v2180_v36  ;;  %v2175_v57 = vand.u32 4294901760, %v2174_v56  ;;  %v10490_v59 = vsub.f32 %v186_v61, %v10465_v5  ;;  %v12369_v17 = vand.u32 4294901760, %v10049_v0 }
 0x1f7   : > { %v10477_v53 = vsub.f32 %v10400_v41, %v12367_v54  ;;  %5163 = vmatprep.mubr.f32.mxu1 %v11994_v10  ;;  %v2187_v20 = vand.u32 4294901760, %v2186_v42  ;;  %v10487_v54 = vsub.f32 %v6931_v6, %v10463_v52  ;;  %v10496_v36 = vsub.f32 %v10422_v50, %v11840_v35 }
 0x1f8   : > { %v2192_v18 = vsub.f32 %v10049_v0, %v12369_v17  ;;  %v12370_v56 = vand.u32 4294901760, %v10054_v1  ;;  %v12371_v42 = vand.u32 4294901760, %v10425_v16  ;;  %v12372_v35 = vand.u32 4294901760, %v10433_v62  ;;  %v6932_v0 = vld [vmem:[%s8804_s3 + $0xb0] sm:$0xff] }
 0x1f9   : > { %12368 = vst [vmem:[#allocation92_spill] sm:$0xff] %v10487_v54  ;;  %1855 = vmatmul.mubr.f32.gmra.mrb[28].mxu0 %v12231_v9  ;;  %v10519_v17 = vpack.c.bf16 %v10373_v15, %v10361_v13  ;;  %v11853_v50 = vand.u32 4294901760, %v10487_v54  ;;  %v11856_v9 = vand.u32 4294901760, %v10490_v59 }
 0x1fa   : > { %v2204_v6 = vsub.f32 %v10054_v1, %v12370_v56  ;;  %5165 = vmatmul.mubr.f32.gmra.mrb[28].mxu1 %v12232_v28  ;;  %v10510_v43 = vsub.f32 %v10425_v16, %v12371_v42  ;;  %v10515_v23 = vsub.f32 %v10433_v62, %v12372_v35  ;;  %1860 = vmatprep.mubr.f32.mxu0 %v11994_v10  ;;  %v12373_v28 = vand.u32 4294901760, %v10059_v3 }
 0x1fb   : > { %5170 = vmatprep.mubr.f32.mxu1 %v11994_v10  ;;  %v12374_v42 = vand.u32 4294901760, %v10062_v7  ;;  %v12375_v35 = vand.u32 4294901760, %v10455_v4  ;;  %v7196_v62 = vpack.c.bf16 %v2181_v19, %v2169_v44  ;;  %v10536_v16 = vpack.c.bf16 %v2187_v20, %v2175_v57 }
 0x1fc   : > { %v2198_v56 = vsub.f32 %v10059_v3, %v12373_v28  ;;  %v2193_v41 = vand.u32 4294901760, %v2192_v18  ;;  %v2205_v28 = vand.u32 4294901760, %v2204_v6  ;;  %v10547_v19 = vand.u32 4294901760, %v6932_v0 }
 0x1fd   : > { %v2210_v61 = vsub.f32 %v10062_v7, %v12374_v42  ;;  %v10533_v1 = vsub.f32 %v10455_v4, %v12375_v35  ;;  %1862 = vmatmul.mubr.f32.gmra.mrb[30].mxu0 %v12233_v37  ;;  %v12376_v7 = vld [vmem:[#allocation88_spill] sm:$0xff]  ;;  %v10557_v20 = vsub.f32 %v10487_v54, %v11853_v50  ;;  %v12379_v37 = vand.u32 4294901760, %v10148_v34  ;;  %v6933_v54 = vld [vmem:[%s8804_s3 + $0xb8] sm:$0xff] }
 0x1fe   : > { %5172 = vmatmul.mubr.f32.gmra.mrb[30].mxu1 %v12376_v7  ;;  %12377 = vst [vmem:[#allocation88_spill] sm:$0xff] %v10547_v19  ;;  %1964 = vmatprep.mubr.f32.mxu0 %v11994_v10  ;;  %v2199_v18 = vand.u32 4294901760, %v2198_v56  ;;  %v187_v7 = vld [vmem:[%s8804_s3 + $0x38] sm:$0xff]  ;;  %v7200_v3 = vpack.c.bf16 %v2205_v28, %v2193_v41  ;;  %v12378_v56 = vand.u32 4294901760, %v10143_v40  ;;  %v12380_v44 = vand.u32 4294901760, %v10319_v27 }
 0x1ff   : > { %5274 = vmatprep.mubr.f32.mxu1 %v11994_v10  ;;  %v2211_v57 = vand.u32 4294901760, %v2210_v61  ;;  %v10565_v61 = vsub.f32 %v10490_v59, %v11856_v9  ;;  %v2228_v50 = vsub.f32 %v10148_v34, %v12379_v37  ;;  %v12381_v42 = vand.u32 4294901760, %v10336_v11  ;;  %v188_v9 = vld [vmem:[%s8804_s3 + $0x100] sm:$0xff] }
 0x200   : > { %v2216_v6 = vsub.f32 %v10143_v40, %v12378_v56  ;;  %v10579_v41 = vsub.f32 %v6932_v0, %v10547_v19  ;;  %v10581_v28 = vand.u32 4294901760, %v187_v7  ;;  %v12383_v27 = vand.u32 4294901760, %v10153_v22 }
 0x201   : > { %1970 = vmatmul.mubr.f32.vlgmr.msra.gmra.mrb[0].mxu0 %v12380_v44  ;;  %v7202_v37 = vpack.c.bf16 %v2211_v57, %v2199_v18  ;;  %v12384_v44 = vand.u32 4294901760, %v10158_v21  ;;  %v10598_v35 = vand.u32 4294901760, %v6933_v54  ;;  %v12387_v57 = vand.u32 4294901760, %v10219_v63 }
 0x202   : > { %5280 = vmatmul.mubr.f32.vlgmr.msra.gmra.mrb[0].mxu1 %v12381_v42  ;;  %12382 = vst [vmem:[#allocation93_spill] sm:$0xff] %v10581_v28  ;;  %7195 = vmatpush1.bf16.msra.mxu0 %v10467_v45  ;;  %v2222_v11 = vsub.f32 %v10153_v22, %v12383_v27  ;;  %v2217_v42 = vand.u32 4294901760, %v2216_v6  ;;  %v2229_v22 = vand.u32 4294901760, %v2228_v50  ;;  %v10607_v34 = vand.u32 4294901760, %v188_v9 }
 0x203   : > { %7579 = vmatpush1.bf16.msra.mxu1 %v10467_v45  ;;  %1975 = vmatprep.mubr.f32.mxu0 %v11994_v10  ;;  %v2234_v56 = vsub.f32 %v10158_v21, %v12384_v44  ;;  %12385 = vst [vmem:[#allocation94_spill] sm:$0xff] %v10598_v35  ;;  %v12386_v45 = vand.u32 4294901760, %v10214_v25  ;;  %v2252_v27 = vsub.f32 %v10219_v63, %v12387_v57  ;;  %v12389_v44 = vand.u32 4294901760, %v10382_v14  ;;  %v6934_v14 = vld [vmem:[%s8804_s3 + $0x180] sm:$0xff] }
 0x204   : > { %5285 = vmatprep.mubr.f32.mxu1 %v11994_v10  ;;  %7197 = vmatprep.subr.bf16.mxu0 %v7196_v62  ;;  %12388 = vst [vmem:[#allocation95_spill] sm:$0xff] %v10607_v34  ;;  %v12390_v21 = vand.u32 4294901760, %v10397_v33  ;;  %v12391_v57 = vand.u32 4294901760, %v10225_v60  ;;  %v12392_v6 = vand.u32 4294901760, %v10230_v47  ;;  %v7204_v63 = vpack.c.bf16 %v2229_v22, %v2217_v42 }
 0x205   : > { %v2240_v18 = vsub.f32 %v10214_v25, %v12386_v45  ;;  %7581 = vmatprep.subr.bf16.mxu1 %v7196_v62  ;;  %1981 = vmatmul.mubr.f32.gmra.mrb[2].mxu0 %v12389_v44  ;;  %v10615_v25 = vsub.f32 %v187_v7, %v10581_v28  ;;  %v12394_v7 = vand.u32 4294901760, %v10270_v58  ;;  %v2235_v45 = vand.u32 4294901760, %v2234_v56 }
 0x206   : > { %5291 = vmatmul.mubr.f32.gmra.mrb[2].mxu1 %v12390_v21  ;;  %v2246_v62 = vsub.f32 %v10225_v60, %v12391_v57  ;;  %v2258_v50 = vsub.f32 %v10230_v47, %v12392_v6  ;;  %1986 = vmatprep.mubr.f32.mxu0 %v11994_v10  ;;  %v12393_v21 = vand.u32 4294901760, %v10260_v8  ;;  %v2223_v6 = vand.u32 4294901760, %v2222_v11 }
 0x207   : > { %5296 = vmatprep.mubr.f32.mxu1 %v11994_v10  ;;  %v2276_v44 = vsub.f32 %v10270_v58, %v12394_v7  ;;  %7199 = vmatpush1.bf16.msra.mxu0 %v10536_v16  ;;  %v2241_v47 = vand.u32 4294901760, %v2240_v18  ;;  %v2253_v60 = vand.u32 4294901760, %v2252_v27  ;;  %v11866_v7 = vand.u32 4294901760, %v10290_v29 }
 0x208   : > { %v2264_v33 = vsub.f32 %v10260_v8, %v12393_v21  ;;  %7583 = vmatpush1.bf16.msra.mxu1 %v10536_v16  ;;  %7201 = vmatprep.subr.bf16.mxu0 %v7200_v3  ;;  %v10637_v21 = vsub.f32 %v6933_v54, %v10598_v35  ;;  %v11865_v0 = vand.u32 4294901760, %v10300_v31  ;;  %v12395_v57 = vand.u32 4294901760, %v10416_v39 }
 0x209   : > { %7585 = vmatprep.subr.bf16.mxu1 %v7200_v3  ;;  %v12396_v58 = vand.u32 4294901760, %v10452_v46  ;;  %v10646_v16 = vsub.f32 %v188_v9, %v10607_v34  ;;  %v10648_v56 = vand.u32 4294901760, %v6934_v14  ;;  %v2247_v3 = vand.u32 4294901760, %v2246_v62 }
 0x20a   : > { %1992 = vmatmul.mubr.f32.gmra.mrb[4].mxu0 %v12395_v57  ;;  %v2259_v22 = vand.u32 4294901760, %v2258_v50  ;;  %v2265_v54 = vand.u32 4294901760, %v2264_v33  ;;  %v2277_v11 = vand.u32 4294901760, %v2276_v44  ;;  %v12398_v42 = vand.u32 4294901760, %v10275_v49 }
 0x20b   : > { %5302 = vmatmul.mubr.f32.gmra.mrb[4].mxu1 %v12396_v58  ;;  %12397 = vst [vmem:[#allocation96_spill] sm:$0xff] %v10648_v56  ;;  %1997 = vmatprep.mubr.f32.mxu0 %v11994_v10  ;;  %v12399_v46 = vand.u32 4294901760, %v10285_v30  ;;  %v7206_v9 = vpack.c.bf16 %v2235_v45, %v2223_v6  ;;  %v7208_v18 = vpack.c.bf16 %v2253_v60, %v2241_v47  ;;  %v11870_v27 = vand.u32 4294901760, %v10305_v55 }
 0x20c   : > { %5307 = vmatprep.mubr.f32.mxu1 %v11994_v10  ;;  %v2270_v39 = vsub.f32 %v10275_v49, %v12398_v42  ;;  %7203 = vmatpush1.bf16.msra.mxu0 %v7202_v37  ;;  %v11869_v62 = vand.u32 4294901760, %v10314_v38  ;;  %v2288_v50 = vsub.f32 %v10290_v29, %v11866_v7  ;;  %v2300_v33 = vsub.f32 %v10300_v31, %v11865_v0 }
 0x20d   : > { %v2282_v58 = vsub.f32 %v10285_v30, %v12399_v46  ;;  %7587 = vmatpush1.bf16.msra.mxu1 %v7202_v37  ;;  %7205 = vmatprep.subr.bf16.mxu0 %v7204_v63  ;;  %v11868_v37 = vand.u32 4294901760, %v10326_v48  ;;  %v11867_v47 = vand.u32 4294901760, %v10331_v32  ;;  %v12400_v60 = vand.u32 4294901760, %v10477_v53  ;;  %v189_v46 = vld [vmem:[%s8804_s3 + $0x108] sm:$0xff] }
 0x20e   : > { %7589 = vmatprep.subr.bf16.mxu1 %v7204_v63  ;;  %v12401_v45 = vand.u32 4294901760, %v10496_v36  ;;  %v12402_v63 = vand.u32 4294901760, %v10579_v41  ;;  %v11871_v57 = vand.u32 4294901760, %v10615_v25  ;;  %v10680_v42 = vsub.f32 %v6934_v14, %v10648_v56  ;;  %v6935_v36 = vld [vmem:[%s8804_s3 + $0x188] sm:$0xff] }
 0x20f   : > { %2003 = vmatmul.mubr.f32.gmra.mrb[6].mxu0 %v12400_v60  ;;  %v7210_v53 = vpack.c.bf16 %v2259_v22, %v2247_v3  ;;  %v7212_v60 = vpack.c.bf16 %v2277_v11, %v2265_v54  ;;  %v2283_v0 = vand.u32 4294901760, %v2282_v58  ;;  %v2306_v14 = vsub.f32 %v10314_v38, %v11869_v62 }
 0x210   : > { %5313 = vmatmul.mubr.f32.gmra.mrb[6].mxu1 %v12401_v45  ;;  %v10675_v44 = vsub.f32 %v10579_v41, %v12402_v63  ;;  %2008 = vmatprep.mubr.f32.mxu0 %v11994_v10  ;;  %v2271_v45 = vand.u32 4294901760, %v2270_v39  ;;  %v2294_v63 = vsub.f32 %v10305_v55, %v11870_v27  ;;  %v11874_v7 = vand.u32 4294901760, %v10361_v13 }
 0x211   : > { %5318 = vmatprep.mubr.f32.mxu1 %v11994_v10  ;;  %7207 = vmatpush1.bf16.msra.mxu0 %v7206_v9  ;;  %v11875_v6 = vand.u32 4294901760, %v10373_v15  ;;  %v2289_v3 = vand.u32 4294901760, %v2288_v50  ;;  %v2301_v22 = vand.u32 4294901760, %v2300_v33  ;;  %v2312_v54 = vsub.f32 %v10326_v48, %v11868_v37  ;;  %v191_v37 = vld [vmem:[%s8804_s3 + $0x118] sm:$0xff] }
 0x212   : > { %7591 = vmatpush1.bf16.msra.mxu1 %v7206_v9  ;;  %7209 = vmatprep.subr.bf16.mxu0 %v7208_v18  ;;  %v2324_v11 = vsub.f32 %v10331_v32, %v11867_v47  ;;  %v12403_v39 = vand.u32 4294901760, %v10510_v43  ;;  %v12404_v58 = vand.u32 4294901760, %v10515_v23  ;;  %v2035_v9 = vand.u32 4294901760, %v10565_v61 }
 0x213   : > { %7593 = vmatprep.subr.bf16.mxu1 %v7208_v18  ;;  %v5345_v18 = vand.u32 4294901760, %v10675_v44  ;;  %v10706_v50 = vand.u32 4294901760, %v189_v46  ;;  %v10708_v33 = vand.u32 4294901760, %v6935_v36  ;;  %v10715_v43 = vsub.f32 %v10615_v25, %v11871_v57  ;;  %v6937_v44 = vld [vmem:[%s8804_s3 + $0x198] sm:$0xff] }
 0x214   : > { %2014 = vmatmul.mubr.f32.gmra.mrb[8].mxu0 %v12403_v39  ;;  %5324 = vmatmul.mubr.f32.gmra.mrb[8].mxu1 %v12404_v58  ;;  %v12407_v23 = vand.u32 4294901760, %v10637_v21  ;;  %v190_v39 = vld [vmem:[%s8804_s3 + $0x110] sm:$0xff]  ;;  %v7214_v47 = vpack.c.bf16 %v2283_v0, %v2271_v45  ;;  %v2295_v62 = vand.u32 4294901760, %v2294_v63  ;;  %v2307_v27 = vand.u32 4294901760, %v2306_v14 }
 0x215   : > { %12405 = vst [vmem:[#allocation97_spill] sm:$0xff] %v10706_v50  ;;  %12406 = vst [vmem:[#allocation98_spill] sm:$0xff] %v10708_v33  ;;  %2019 = vmatprep.mubr.f32.mxu0 %v11994_v10  ;;  %5329 = vmatprep.mubr.f32.mxu1 %v11994_v10  ;;  %v6936_v58 = vld [vmem:[%s8804_s3 + $0x190] sm:$0xff]  ;;  %v2318_v57 = vsub.f32 %v10361_v13, %v11874_v7  ;;  %v2330_v38 = vsub.f32 %v10373_v15, %v11875_v6  ;;  %v2313_v0 = vand.u32 4294901760, %v2312_v54 }
 0x216   : > { %v10720_v61 = vsub.f32 %v10637_v21, %v12407_v23  ;;  %7211 = vmatpush1.bf16.msra.mxu0 %v7210_v53  ;;  %7595 = vmatpush1.bf16.msra.mxu1 %v7210_v53  ;;  %v7216_v55 = vpack.c.bf16 %v2301_v22, %v2289_v3  ;;  %v2325_v45 = vand.u32 4294901760, %v2324_v11  ;;  %v12408_v53 = vand.u32 4294901760, %v10533_v1 }
 0x217   : > { %7213 = vmatprep.subr.bf16.mxu0 %v7212_v60  ;;  %7597 = vmatprep.subr.bf16.mxu1 %v7212_v60  ;;  %v12409_v63 = vand.u32 4294901760, %v10557_v20  ;;  %v10739_v14 = vsub.f32 %v189_v46, %v10706_v50  ;;  %v10742_v7 = vsub.f32 %v6935_v36, %v10708_v33  ;;  %v10744_v6 = vand.u32 4294901760, %v190_v39 }
 0x218   : > { %2025 = vmatmul.mubr.f32.gmra.mrb[10].mxu0 %v12408_v53  ;;  %v10746_v23 = vand.u32 4294901760, %v6936_v58  ;;  %v12412_v1 = vand.u32 4294901760, %v10646_v16  ;;  %v10753_v20 = vand.u32 4294901760, %v191_v37  ;;  %v10755_v46 = vand.u32 4294901760, %v6937_v44 }
 0x219   : > { %5335 = vmatmul.mubr.f32.gmra.mrb[10].mxu1 %v12409_v63  ;;  %12410 = vst [vmem:[#allocation99_spill] sm:$0xff] %v10744_v6  ;;  %2030 = vmatprep.mubr.f32.mxu0 %v11994_v10  ;;  %v7218_v36 = vpack.c.bf16 %v2307_v27, %v2295_v62  ;;  %v2319_v3 = vand.u32 4294901760, %v2318_v57  ;;  %v2331_v22 = vand.u32 4294901760, %v2330_v38  ;;  %v2046_v54 = vand.u32 4294901760, %v10715_v43  ;;  %v192_v57 = vld [vmem:[%s8804_s3 + $0x120] sm:$0xff] }
 0x21a   : > { %12411 = vst [vmem:[#allocation100_spill] sm:$0xff] %v10746_v23  ;;  %5340 = vmatprep.mubr.f32.mxu1 %v11994_v10  ;;  %v2056_v60 = vsub.f32 %v10646_v16, %v12412_v1  ;;  %12413 = vst [vmem:[#allocation101_spill] sm:$0xff] %v10753_v20  ;;  %7215 = vmatpush1.bf16.msra.mxu0 %v7214_v47  ;;  %v5356_v11 = vand.u32 4294901760, %v10720_v61  ;;  %v12415_v53 = vand.u32 4294901760, %v10680_v42  ;;  %v11876_v27 = vand.u32 4294901760, %v10742_v7  ;;  %v6938_v43 = vld [vmem:[%s8804_s3 + $0x1a0] sm:$0xff] }
 0x21b   : > { %7599 = vmatpush1.bf16.msra.mxu1 %v7214_v47  ;;  %12414 = vst [vmem:[#allocation102_spill] sm:$0xff] %v10755_v46  ;;  %7217 = vmatprep.subr.bf16.mxu0 %v7216_v55  ;;  %v7220_v1 = vpack.c.bf16 %v2325_v45, %v2313_v0  ;;  %v11877_v47 = vand.u32 4294901760, %v10739_v14  ;;  %v10765_v62 = vsub.f32 %v190_v39, %v10744_v6  ;;  %v10782_v0 = vand.u32 4294901760, %v6938_v43 }
 0x21c   : > { %v5366_v63 = vsub.f32 %v10680_v42, %v12415_v53  ;;  %7601 = vmatprep.subr.bf16.mxu1 %v7216_v55  ;;  %2036 = vmatmul.mubr.f32.gmra.mrb[12].mxu0 %v2035_v9  ;;  %v10768_v38 = vsub.f32 %v6936_v58, %v10746_v23  ;;  %v10775_v55 = vsub.f32 %v191_v37, %v10753_v20  ;;  %v2057_v61 = vand.u32 4294901760, %v2056_v60 }
 0x21d   : > { %5346 = vmatmul.mubr.f32.gmra.mrb[12].mxu1 %v5345_v18  ;;  %2041 = vmatprep.mubr.f32.mxu0 %v11994_v10  ;;  %v10778_v9 = vsub.f32 %v6937_v44, %v10755_v46  ;;  %v7222_v18 = vpack.c.bf16 %v2331_v22, %v2319_v3  ;;  %v10780_v58 = vand.u32 4294901760, %v192_v57  ;;  %12417 = vst [vmem:[#allocation104_spill] sm:$0xff] %v10782_v0  ;;  %v11879_v45 = vand.u32 4294901760, %v10765_v62  ;;  %v6939_v3 = vld [vmem:[%s8804_s3 + $0x1a8] sm:$0xff]  ;;  %v6940_v22 = vld [vmem:[%s8804_s3 + $0x1b0] sm:$0xff] }
 0x21e   : > { %5351 = vmatprep.mubr.f32.mxu1 %v11994_v10  ;;  %7219 = vmatpush1.bf16.msra.mxu0 %v7218_v36  ;;  %v5367_v39 = vand.u32 4294901760, %v5366_v63  ;;  %v2067_v37 = vsub.f32 %v10739_v14, %v11877_v47  ;;  %v5377_v44 = vsub.f32 %v10742_v7, %v11876_v27  ;;  %v11878_v60 = vand.u32 4294901760, %v10768_v38  ;;  %v12420_v27 = vld [vmem:[#allocation41_spill] sm:$0xff] }
 0x21f   : > { %7603 = vmatpush1.bf16.msra.mxu1 %v7218_v36  ;;  %12416 = vst [vmem:[#allocation103_spill] sm:$0xff] %v10780_v58  ;;  %7221 = vmatprep.subr.bf16.mxu0 %v7220_v1  ;;  %v193_v36 = vld [vmem:[%s8804_s3 + $0x128] sm:$0xff]  ;;  %v10802_v53 = vsub.f32 %v6938_v43, %v10782_v0 }
 0x220   : > { %7605 = vmatprep.subr.bf16.mxu1 %v7220_v1  ;;  %2047 = vmatmul.mubr.f32.gmra.mrb[14].mxu0 %v2046_v54  ;;  %v10804_v63 = vand.u32 4294901760, %v193_v36  ;;  %v10806_v1 = vand.u32 4294901760, %v6939_v3  ;;  %v2068_v47 = vand.u32 4294901760, %v2067_v37  ;;  %v5378_v54 = vand.u32 4294901760, %v5377_v44 }
 0x221   : > { %5357 = vmatmul.mubr.f32.gmra.mrb[14].mxu1 %v5356_v11  ;;  %2052 = vmatprep.mubr.f32.mxu0 %v11994_v10  ;;  %v10799_v11 = vsub.f32 %v192_v57, %v10780_v58  ;;  %v2078_v57 = vsub.f32 %v10765_v62, %v11879_v45  ;;  %v5388_v43 = vsub.f32 %v10768_v38, %v11878_v60  ;;  %v6941_v60 = vld [vmem:[%s8804_s3 + $0x1b8] sm:$0xff] }
 0x222   : > { %5362 = vmatprep.mubr.f32.mxu1 %v11994_v10  ;;  %7223 = vmatpush1.bf16.msra.mxu0 %v7222_v18  ;;  %12418 = vst [vmem:[#allocation105_spill] sm:$0xff] %v10804_v63  ;;  %12419 = vst [vmem:[#allocation106_spill] sm:$0xff] %v10806_v1  ;;  %v10829_v45 = vsub.f32 %v193_v36, %v10804_v63  ;;  %v10832_v15 = vsub.f32 %v6939_v3, %v10806_v1  ;;  %v10858_v8 = vand.u32 4294901760, %v6941_v60 }
 0x223   : > { %7607 = vmatpush1.bf16.msra.mxu1 %v7222_v18  ;;  %7225 = vmatprep.subr.bf16.mxu0 %v12420_v27  ;;  %v194_v18 = vld [vmem:[%s8804_s3 + $0x130] sm:$0xff]  ;;  %v2079_v13 = vand.u32 4294901760, %v2078_v57  ;;  %v5389_v31 = vand.u32 4294901760, %v5388_v43  ;;  %v12425_v30 = vand.u32 4294901760, %v10799_v11 }
 0x224   : > { %7609 = vmatprep.subr.bf16.mxu1 %v12420_v27  ;;  %2058 = vmatmul.mubr.f32.gmra.mrb[16].mxu0 %v2057_v61  ;;  %v12421_v27 = vand.u32 4294901760, %v10775_v55  ;;  %v10834_v29 = vand.u32 4294901760, %v194_v18  ;;  %v11888_v57 = vand.u32 4294901760, %v10829_v45  ;;  %v11893_v43 = vand.u32 4294901760, %v10832_v15  ;;  %12428 = vst [vmem:[#allocation109_spill] sm:$0xff] %v10858_v8 }
 0x225   : > { %5368 = vmatmul.mubr.f32.gmra.mrb[16].mxu1 %v5367_v39  ;;  %2063 = vmatprep.mubr.f32.mxu0 %v11994_v10  ;;  %v12422_v39 = vand.u32 4294901760, %v10778_v9  ;;  %v2100_v3 = vsub.f32 %v10799_v11, %v12425_v30 }
 0x226   : > { %5373 = vmatprep.mubr.f32.mxu1 %v11994_v10  ;;  %v2089_v61 = vsub.f32 %v10775_v55, %v12421_v27  ;;  %12423 = vst [vmem:[#allocation41_spill] sm:$0xff] %v10834_v29  ;;  %v10836_v27 = vand.u32 4294901760, %v6940_v22  ;;  %v10851_v49 = vsub.f32 %v194_v18, %v10834_v29 }
 0x227   : > { %v5399_v37 = vsub.f32 %v10778_v9, %v12422_v39  ;;  %v195_v39 = vld [vmem:[%s8804_s3 + $0x138] sm:$0xff]  ;;  %v2101_v30 = vand.u32 4294901760, %v2100_v3  ;;  %v10874_v3 = vsub.f32 %v6941_v60, %v10858_v8 }
 0x228   : > { %2069 = vmatmul.mubr.f32.gmra.mrb[18].mxu0 %v2068_v47  ;;  %12424 = vst [vmem:[#allocation107_spill] sm:$0xff] %v10836_v27  ;;  %v2090_v44 = vand.u32 4294901760, %v2089_v61  ;;  %v12426_v47 = vand.u32 4294901760, %v10802_v53  ;;  %v10854_v61 = vsub.f32 %v6940_v22, %v10836_v27  ;;  %v11890_v22 = vand.u32 4294901760, %v10851_v49 }
 0x229   : > { %5379 = vmatmul.mubr.f32.gmra.mrb[18].mxu1 %v5378_v54  ;;  %2074 = vmatprep.mubr.f32.mxu0 %v11994_v10  ;;  %v5400_v36 = vand.u32 4294901760, %v5399_v37  ;;  %v10856_v37 = vand.u32 4294901760, %v195_v39  ;;  %v11891_v60 = vand.u32 4294901760, %v10874_v3 }
 0x22a   : > { %5384 = vmatprep.mubr.f32.mxu1 %v11994_v10  ;;  %v5410_v54 = vsub.f32 %v10802_v53, %v12426_v47  ;;  %v11889_v18 = vand.u32 4294901760, %v10854_v61 }
 0x22b   : > { %12427 = vst [vmem:[#allocation108_spill] sm:$0xff] %v10856_v37  ;;  %v10871_v40 = vsub.f32 %v195_v39, %v10856_v37 }
 0x22c   : > { %2080 = vmatmul.mubr.f32.gmra.mrb[20].mxu0 %v2079_v13  ;;  %v5411_v47 = vand.u32 4294901760, %v5410_v54  ;;  %v5421_v13 = vsub.f32 %v10832_v15, %v11893_v43  ;;  %v5432_v39 = vsub.f32 %v10854_v61, %v11889_v18  ;;  %v12455_v43 = vld [vmem:[#allocation24_spill] sm:$0xff] }
 0x22d   : > { %5390 = vmatmul.mubr.f32.gmra.mrb[20].mxu1 %v5389_v31  ;;  %2085 = vmatprep.mubr.f32.mxu0 %v11994_v10  ;;  %v2111_v31 = vsub.f32 %v10829_v45, %v11888_v57 }
 0x22e   : > { %5395 = vmatprep.mubr.f32.mxu1 %v11994_v10  ;;  %v5422_v57 = vand.u32 4294901760, %v5421_v13  ;;  %v5443_v13 = vsub.f32 %v10874_v3, %v11891_v60  ;;  %v12445_v60 = vld [vmem:[#allocation63_spill] sm:$0xff] }
 0x22f   : > { %v2112_v54 = vand.u32 4294901760, %v2111_v31 }
 0x230   : > { %2091 = vmatmul.mubr.f32.gmra.mrb[22].mxu0 %v2090_v44  ;;  %v2122_v44 = vsub.f32 %v10851_v49, %v11890_v22  ;;  %v5444_v22 = vand.u32 4294901760, %v5443_v13  ;;  %v12438_v13 = vld [vmem:[#allocation83_spill] sm:$0xff] }
 0x231   : > { %5401 = vmatmul.mubr.f32.gmra.mrb[22].mxu1 %v5400_v36  ;;  %2096 = vmatprep.mubr.f32.mxu0 %v11994_v10  ;;  %v11892_v36 = vand.u32 4294901760, %v10871_v40 }
 0x232   : > { %5406 = vmatprep.mubr.f32.mxu1 %v11994_v10 }
 0x233   : > { %v2133_v31 = vsub.f32 %v10871_v40, %v11892_v36  ;;  %v12454_v36 = vld [vmem:[#allocation47_spill] sm:$0xff] }
 0x234   : > { %2102 = vmatmul.mubr.f32.gmra.mrb[24].mxu0 %v2101_v30  ;;  %v2123_v30 = vand.u32 4294901760, %v2122_v44  ;;  %v12431_v44 = vld [vmem:[#allocation61_spill] sm:$0xff] }
 0x235   : > { %5412 = vmatmul.mubr.f32.gmra.mrb[24].mxu1 %v5411_v47  ;;  %2107 = vmatprep.mubr.f32.mxu0 %v11994_v10  ;;  %v5433_v47 = vand.u32 4294901760, %v5432_v39  ;;  %v2134_v18 = vand.u32 4294901760, %v2133_v31  ;;  %v12434_v39 = vld [vmem:[#allocation62_spill] sm:$0xff]  ;;  %v12437_v31 = vld [vmem:[#allocation56_spill] sm:$0xff] }
 0x236   : > { %5417 = vmatprep.mubr.f32.mxu1 %v11994_v10 }
 0x238   : > { %2113 = vmatmul.mubr.f32.gmra.mrb[26].mxu0 %v2112_v54  ;;  %v12430_v54 = vld [vmem:[#allocation43_spill] sm:$0xff] }
 0x239   : > { %5423 = vmatmul.mubr.f32.gmra.mrb[26].mxu1 %v5422_v57  ;;  %2118 = vmatprep.mubr.f32.mxu0 %v11994_v10  ;;  %v12429_v57 = vld [vmem:[#allocation35_spill] sm:$0xff] }
 0x23a   : > { %5428 = vmatprep.mubr.f32.mxu1 %v11994_v10 }
 0x23c   : > { %2124 = vmatmul.mubr.f32.gmra.mrb[28].mxu0 %v2123_v30  ;;  %v12435_v30 = vld [vmem:[#allocation80_spill] sm:$0xff] }
 0x23d   : > { %5434 = vmatmul.mubr.f32.gmra.mrb[28].mxu1 %v5433_v47  ;;  %2129 = vmatprep.mubr.f32.mxu0 %v11994_v10  ;;  %v12436_v47 = vld [vmem:[#allocation23_spill] sm:$0xff] }
 0x23e   : > { %5439 = vmatprep.mubr.f32.mxu1 %v11994_v10 }
 0x240   : > { %2135 = vmatmul.mubr.f32.gmra.mrb[30].mxu0 %v2134_v18  ;;  %v12433_v18 = vld [vmem:[#allocation42_spill] sm:$0xff] }
 0x241   : > { %5445 = vmatmul.mubr.f32.gmra.mrb[30].mxu1 %v5444_v22  ;;  %2365 = vmatprep.mubr.f32.mxu0 %v11994_v10  ;;  %v12432_v22 = vld [vmem:[#allocation18_spill] sm:$0xff] }
 0x242   : > { %5675 = vmatprep.mubr.f32.mxu1 %v11994_v10 }
 0x244   : > { %2367 = vmatmul.mubr.f32.vlgmr.msra.gmra.mrb[0].mxu0 %v10200_v24 }
 0x245   : > { %5677 = vmatmul.mubr.f32.vlgmr.msra.gmra.mrb[0].mxu1 %v12429_v57  ;;  %7227 = vmatpush1.bf16.msra.mxu0 %v12430_v54 }
 0x246   : > { %7611 = vmatpush1.bf16.msra.mxu1 %v12430_v54  ;;  %2372 = vmatprep.mubr.f32.mxu0 %v11994_v10  ;;  %v12439_v54 = vld [vmem:[#allocation32_spill] sm:$0xff] }
 0x247   : > { %5682 = vmatprep.mubr.f32.mxu1 %v11994_v10  ;;  %7229 = vmatprep.subr.bf16.mxu0 %v12431_v44 }
 0x248   : > { %7613 = vmatprep.subr.bf16.mxu1 %v12431_v44  ;;  %2374 = vmatmul.mubr.f32.gmra.mrb[2].mxu0 %v12432_v22  ;;  %v12440_v44 = vld [vmem:[#allocation60_spill] sm:$0xff] }
 0x249   : > { %5684 = vmatmul.mubr.f32.gmra.mrb[2].mxu1 %v12433_v18  ;;  %2379 = vmatprep.mubr.f32.mxu0 %v11994_v10 }
 0x24a   : > { %5689 = vmatprep.mubr.f32.mxu1 %v11994_v10  ;;  %7231 = vmatpush1.bf16.msra.mxu0 %v12434_v39 }
 0x24b   : > { %7615 = vmatpush1.bf16.msra.mxu1 %v12434_v39  ;;  %7233 = vmatprep.subr.bf16.mxu0 %v12435_v30  ;;  %v12441_v39 = vld [vmem:[#allocation14_spill] sm:$0xff] }
 0x24c   : > { %7617 = vmatprep.subr.bf16.mxu1 %v12435_v30  ;;  %2381 = vmatmul.mubr.f32.gmra.mrb[4].mxu0 %v12436_v47  ;;  %v12442_v30 = vld [vmem:[#allocation45_spill] sm:$0xff] }
 0x24d   : > { %5691 = vmatmul.mubr.f32.gmra.mrb[4].mxu1 %v12437_v31  ;;  %2386 = vmatprep.mubr.f32.mxu0 %v11994_v10 }
 0x24e   : > { %5696 = vmatprep.mubr.f32.mxu1 %v11994_v10  ;;  %7235 = vmatpush1.bf16.msra.mxu0 %v12438_v13 }
 0x24f   : > { %7619 = vmatpush1.bf16.msra.mxu1 %v12438_v13  ;;  %7237 = vmatprep.subr.bf16.mxu0 %v12439_v54  ;;  %v12443_v13 = vld [vmem:[#allocation74_spill] sm:$0xff] }
 0x250   : > { %7621 = vmatprep.subr.bf16.mxu1 %v12439_v54  ;;  %2388 = vmatmul.mubr.f32.gmra.mrb[6].mxu0 %v12440_v44  ;;  %v12444_v54 = vld [vmem:[#allocation20_spill] sm:$0xff] }
 0x251   : > { %5698 = vmatmul.mubr.f32.gmra.mrb[6].mxu1 %v10387_v26  ;;  %2393 = vmatprep.mubr.f32.mxu0 %v11994_v10 }
 0x252   : > { %5703 = vmatprep.mubr.f32.mxu1 %v11994_v10  ;;  %7239 = vmatpush1.bf16.msra.mxu0 %v12441_v39 }
 0x253   : > { %7623 = vmatpush1.bf16.msra.mxu1 %v12441_v39  ;;  %7241 = vmatprep.subr.bf16.mxu0 %v12442_v30  ;;  %v12446_v39 = vld [vmem:[#allocation65_spill] sm:$0xff] }
 0x254   : > { %7625 = vmatprep.subr.bf16.mxu1 %v12442_v30  ;;  %2395 = vmatmul.mubr.f32.gmra.mrb[8].mxu0 %v10389_v2  ;;  %v12447_v30 = vld [vmem:[#allocation85_spill] sm:$0xff] }
 0x255   : > { %5705 = vmatmul.mubr.f32.gmra.mrb[8].mxu1 %v12443_v13  ;;  %2400 = vmatprep.mubr.f32.mxu0 %v11994_v10 }
 0x256   : > { %5710 = vmatprep.mubr.f32.mxu1 %v11994_v10  ;;  %7243 = vmatpush1.bf16.msra.mxu0 %v12444_v54 }
 0x257   : > { %7627 = vmatpush1.bf16.msra.mxu1 %v12444_v54  ;;  %7245 = vmatprep.subr.bf16.mxu0 %v12445_v60  ;;  %v7252_v54 = vpack.c.bf16 %v10331_v32, %v10326_v48 }
 0x258   : > { %7629 = vmatprep.subr.bf16.mxu1 %v12445_v60  ;;  %2402 = vmatmul.mubr.f32.gmra.mrb[10].mxu0 %v10408_v51  ;;  %v12448_v60 = vld [vmem:[#allocation87_spill] sm:$0xff] }
 0x259   : > { %5712 = vmatmul.mubr.f32.gmra.mrb[10].mxu1 %v10463_v52  ;;  %2407 = vmatprep.mubr.f32.mxu0 %v11994_v10  ;;  %v12478_v51 = vld [vmem:[#allocation15_spill] sm:$0xff] }
 0x25a   : > { %5717 = vmatprep.mubr.f32.mxu1 %v11994_v10  ;;  %7247 = vmatpush1.bf16.msra.mxu0 %v12446_v39 }
 0x25b   : > { %7631 = vmatpush1.bf16.msra.mxu1 %v12446_v39  ;;  %7249 = vmatprep.subr.bf16.mxu0 %v12447_v30  ;;  %v12449_v39 = vld [vmem:[#allocation11_spill] sm:$0xff] }
 0x25c   : > { %7633 = vmatprep.subr.bf16.mxu1 %v12447_v30  ;;  %2409 = vmatmul.mubr.f32.gmra.mrb[12].mxu0 %v10465_v5  ;;  %v12451_v30 = vld [vmem:[#allocation19_spill] sm:$0xff] }
 0x25d   : > { %5719 = vmatmul.mubr.f32.gmra.mrb[12].mxu1 %v10547_v19  ;;  %2414 = vmatprep.mubr.f32.mxu0 %v11994_v10  ;;  %v12474_v19 = vld [vmem:[#allocation28_spill] sm:$0xff]  ;;  %v12488_v2 = vand.u32 4294901760, %v12451_v30 }
 0x25e   : > { %5724 = vmatprep.mubr.f32.mxu1 %v11994_v10  ;;  %7251 = vmatpush1.bf16.msra.mxu0 %v12448_v60  ;;  %v12475_v5 = vand.u32 4294901760, %v12474_v19 }
 0x25f   : > { %7635 = vmatpush1.bf16.msra.mxu1 %v12448_v60  ;;  %7253 = vmatprep.subr.bf16.mxu0 %v7252_v54  ;;  %v12453_v60 = vld [vmem:[#allocation38_spill] sm:$0xff] }
 0x260   : > { %7637 = vmatprep.subr.bf16.mxu1 %v7252_v54  ;;  %2416 = vmatmul.mubr.f32.gmra.mrb[14].mxu0 %v10581_v28  ;;  %v12452_v54 = vld [vmem:[#allocation33_spill] sm:$0xff]  ;;  %v12473_v28 = vld [vmem:[#allocation30_spill] sm:$0xff] }
 0x261   : > { %5726 = vmatmul.mubr.f32.gmra.mrb[14].mxu1 %v10598_v35  ;;  %2421 = vmatprep.mubr.f32.mxu0 %v11994_v10  ;;  %v12472_v35 = vld [vmem:[#allocation13_spill] sm:$0xff] }
 0x262   : > { %5731 = vmatprep.mubr.f32.mxu1 %v11994_v10  ;;  %7255 = vmatpush1.bf16.msra.mxu0 %v10519_v17 }
 0x263   : > { %7639 = vmatpush1.bf16.msra.mxu1 %v10519_v17  ;;  %7257 = vmatprep.subr.bf16.mxu0 %v12449_v39  ;;  %v12450_v17 = vld [vmem:[#allocation40_spill] sm:$0xff] }
 0x264   : > { %7641 = vmatprep.subr.bf16.mxu1 %v12449_v39  ;;  %2423 = vmatmul.mubr.f32.gmra.mrb[16].mxu0 %v10607_v34  ;;  %v12471_v34 = vld [vmem:[#allocation86_spill] sm:$0xff]  ;;  %v12487_v13 = vand.u32 4294901760, %v12450_v17 }
 0x265   : > { %5733 = vmatmul.mubr.f32.gmra.mrb[16].mxu1 %v10648_v56  ;;  %2428 = vmatprep.mubr.f32.mxu0 %v11994_v10  ;;  %v12470_v56 = vld [vmem:[#allocation84_spill] sm:$0xff] }
 0x266   : > { %5738 = vmatprep.mubr.f32.mxu1 %v11994_v10 }
 0x268   : > { %2430 = vmatmul.mubr.f32.gmra.mrb[18].mxu0 %v10706_v50  ;;  %v12469_v50 = vld [vmem:[#allocation92_spill] sm:$0xff] }
 0x269   : > { %5740 = vmatmul.mubr.f32.gmra.mrb[18].mxu1 %v10708_v33  ;;  %2435 = vmatprep.mubr.f32.mxu0 %v11994_v10  ;;  %v12468_v33 = vld [vmem:[#allocation78_spill] sm:$0xff] }
 0x26a   : > { %5745 = vmatprep.mubr.f32.mxu1 %v11994_v10 }
 0x26c   : > { %2437 = vmatmul.mubr.f32.gmra.mrb[20].mxu0 %v10744_v6  ;;  %v12467_v6 = vld [vmem:[#allocation77_spill] sm:$0xff] }
 0x26d   : > { %5747 = vmatmul.mubr.f32.gmra.mrb[20].mxu1 %v10746_v23  ;;  %2442 = vmatprep.mubr.f32.mxu0 %v11994_v10  ;;  %v12466_v23 = vld [vmem:[#allocation82_spill] sm:$0xff] }
 0x26e   : > { %5752 = vmatprep.mubr.f32.mxu1 %v11994_v10 }
 0x270   : > { %2444 = vmatmul.mubr.f32.gmra.mrb[22].mxu0 %v10753_v20  ;;  %v12465_v20 = vld [vmem:[#allocation81_spill] sm:$0xff] }
 0x271   : > { %5754 = vmatmul.mubr.f32.gmra.mrb[22].mxu1 %v10755_v46  ;;  %2449 = vmatprep.mubr.f32.mxu0 %v11994_v10  ;;  %v12464_v46 = vld [vmem:[#allocation67_spill] sm:$0xff] }
 0x272   : > { %5759 = vmatprep.mubr.f32.mxu1 %v11994_v10 }
 0x274   : > { %2451 = vmatmul.mubr.f32.gmra.mrb[24].mxu0 %v10780_v58  ;;  %v12463_v58 = vld [vmem:[#allocation64_spill] sm:$0xff] }
 0x275   : > { %5761 = vmatmul.mubr.f32.gmra.mrb[24].mxu1 %v10782_v0  ;;  %2456 = vmatprep.mubr.f32.mxu0 %v11994_v10  ;;  %v12462_v0 = vld [vmem:[#allocation79_spill] sm:$0xff] }
 0x276   : > { %5766 = vmatprep.mubr.f32.mxu1 %v11994_v10 }
 0x278   : > { %2458 = vmatmul.mubr.f32.gmra.mrb[26].mxu0 %v10804_v63  ;;  %v12461_v63 = vld [vmem:[#allocation72_spill] sm:$0xff] }
 0x279   : > { %5768 = vmatmul.mubr.f32.gmra.mrb[26].mxu1 %v10806_v1  ;;  %2463 = vmatprep.mubr.f32.mxu0 %v11994_v10  ;;  %v12460_v1 = vld [vmem:[#allocation59_spill] sm:$0xff] }
 0x27a   : > { %5773 = vmatprep.mubr.f32.mxu1 %v11994_v10 }
 0x27c   : > { %2465 = vmatmul.mubr.f32.gmra.mrb[28].mxu0 %v10834_v29  ;;  %v12459_v29 = vld [vmem:[#allocation57_spill] sm:$0xff] }
 0x27d   : > { %5775 = vmatmul.mubr.f32.gmra.mrb[28].mxu1 %v10836_v27  ;;  %2470 = vmatprep.mubr.f32.mxu0 %v11994_v10  ;;  %v12458_v27 = vld [vmem:[#allocation58_spill] sm:$0xff] }
 0x27e   : > { %5780 = vmatprep.mubr.f32.mxu1 %v11994_v10 }
 0x280   : > { %2472 = vmatmul.mubr.f32.gmra.mrb[30].mxu0 %v10856_v37  ;;  %v12457_v37 = vld [vmem:[#allocation46_spill] sm:$0xff] }
 0x281   : > { %5782 = vmatmul.mubr.f32.gmra.mrb[30].mxu1 %v10858_v8  ;;  %2606 = vmatprep.mubr.f32.mxu0 %v11994_v10  ;;  %v12456_v8 = vld [vmem:[#allocation44_spill] sm:$0xff] }
 0x282   : > { %5916 = vmatprep.mubr.f32.mxu1 %v11994_v10 }
 0x284   : > { %2609 = vmatmul.mubr.f32.vlgmr.msra.gmra.mrb[0].mxu0 %v12450_v17 }
 0x285   : > { %5919 = vmatmul.mubr.f32.vlgmr.msra.gmra.mrb[0].mxu1 %v12451_v30  ;;  %7259 = vmatpush1.bf16.msra.mxu0 %v12452_v54  ;;  %v12498_v30 = vand.u32 4294901760, %v12455_v43 }
 0x286   : > { %7643 = vmatpush1.bf16.msra.mxu1 %v12452_v54  ;;  %2614 = vmatprep.mubr.f32.mxu0 %v11994_v10 }
 0x287   : > { %5924 = vmatprep.mubr.f32.mxu1 %v11994_v10  ;;  %7261 = vmatprep.subr.bf16.mxu0 %v12453_v60 }
 0x288   : > { %7645 = vmatprep.subr.bf16.mxu1 %v12453_v60  ;;  %2617 = vmatmul.mubr.f32.gmra.mrb[2].mxu0 %v12454_v36 }
 0x289   : > { %5927 = vmatmul.mubr.f32.gmra.mrb[2].mxu1 %v12455_v43  ;;  %2622 = vmatprep.mubr.f32.mxu0 %v11994_v10  ;;  %v12507_v43 = vand.u32 4294901760, %v12458_v27 }
 0x28a   : > { %5932 = vmatprep.mubr.f32.mxu1 %v11994_v10  ;;  %7263 = vmatpush1.bf16.msra.mxu0 %v12456_v8 }
 0x28b   : > { %7647 = vmatpush1.bf16.msra.mxu1 %v12456_v8  ;;  %7265 = vmatprep.subr.bf16.mxu0 %v12457_v37 }
 0x28c   : > { %7649 = vmatprep.subr.bf16.mxu1 %v12457_v37  ;;  %2625 = vmatmul.mubr.f32.gmra.mrb[4].mxu0 %v12458_v27  ;;  %v12515_v27 = vld [vmem:[#allocation16_spill] sm:$0xff] }
 0x28d   : > { %5935 = vmatmul.mubr.f32.gmra.mrb[4].mxu1 %v10367_v12  ;;  %2630 = vmatprep.mubr.f32.mxu0 %v11994_v10 }
 0x28e   : > { %5940 = vmatprep.mubr.f32.mxu1 %v11994_v10  ;;  %7267 = vmatpush1.bf16.msra.mxu0 %v12459_v29 }
 0x28f   : > { %7651 = vmatpush1.bf16.msra.mxu1 %v12459_v29  ;;  %7269 = vmatprep.subr.bf16.mxu0 %v12460_v1 }
 0x290   : > { %7653 = vmatprep.subr.bf16.mxu1 %v12460_v1  ;;  %2633 = vmatmul.mubr.f32.gmra.mrb[6].mxu0 %v12461_v63 }
 0x291   : > { %5943 = vmatmul.mubr.f32.gmra.mrb[6].mxu1 %v12462_v0  ;;  %2638 = vmatprep.mubr.f32.mxu0 %v11994_v10 }
 0x292   : > { %5948 = vmatprep.mubr.f32.mxu1 %v11994_v10  ;;  %7271 = vmatpush1.bf16.msra.mxu0 %v12463_v58 }
 0x293   : > { %7655 = vmatpush1.bf16.msra.mxu1 %v12463_v58  ;;  %7273 = vmatprep.subr.bf16.mxu0 %v12464_v46 }
 0x294   : > { %7657 = vmatprep.subr.bf16.mxu1 %v12464_v46  ;;  %2641 = vmatmul.mubr.f32.gmra.mrb[8].mxu0 %v12465_v20 }
 0x295   : > { %5951 = vmatmul.mubr.f32.gmra.mrb[8].mxu1 %v12466_v23  ;;  %2646 = vmatprep.mubr.f32.mxu0 %v11994_v10 }
 0x296   : > { %5956 = vmatprep.mubr.f32.mxu1 %v11994_v10  ;;  %7275 = vmatpush1.bf16.msra.mxu0 %v12467_v6 }
 0x297   : > { %7659 = vmatpush1.bf16.msra.mxu1 %v12467_v6  ;;  %7277 = vmatprep.subr.bf16.mxu0 %v12468_v33 }
 0x298   : > { %7661 = vmatprep.subr.bf16.mxu1 %v12468_v33  ;;  %2649 = vmatmul.mubr.f32.gmra.mrb[10].mxu0 %v10455_v4 }
 0x299   : > { %5959 = vmatmul.mubr.f32.gmra.mrb[10].mxu1 %v12469_v50  ;;  %2654 = vmatprep.mubr.f32.mxu0 %v11994_v10 }
 0x29a   : > { %5964 = vmatprep.mubr.f32.mxu1 %v11994_v10  ;;  %7279 = vmatpush1.bf16.msra.mxu0 %v12470_v56 }
 0x29b   : > { %7663 = vmatpush1.bf16.msra.mxu1 %v12470_v56  ;;  %7281 = vmatprep.subr.bf16.mxu0 %v12471_v34  ;;  %v12476_v56 = vld [vmem:[#allocation31_spill] sm:$0xff] }
 0x29c   : > { %7665 = vmatprep.subr.bf16.mxu1 %v12471_v34  ;;  %2657 = vmatmul.mubr.f32.gmra.mrb[12].mxu0 %v10490_v59  ;;  %v12477_v34 = vand.u32 4294901760, %v12476_v56 }
 0x29d   : > { %5967 = vmatmul.mubr.f32.gmra.mrb[12].mxu1 %v10579_v41  ;;  %2662 = vmatprep.mubr.f32.mxu0 %v11994_v10 }
 0x29e   : > { %5972 = vmatprep.mubr.f32.mxu1 %v11994_v10  ;;  %7283 = vmatpush1.bf16.msra.mxu0 %v12472_v35  ;;  %v7288_v52 = vpack.c.bf16 %v12477_v34, %v12475_v5  ;;  %v12479_v5 = vld [vmem:[#allocation34_spill] sm:$0xff] }
 0x29f   : > { %7667 = vmatpush1.bf16.msra.mxu1 %v12472_v35  ;;  %7285 = vmatprep.subr.bf16.mxu0 %v12473_v28  ;;  %v12480_v34 = vand.u32 4294901760, %v12479_v5  ;;  %v12485_v35 = vld [vmem:[#allocation51_spill] sm:$0xff]  ;;  %v12489_v5 = vld [vmem:[#allocation52_spill] sm:$0xff] }
 0x2a0   : > { %7669 = vmatprep.subr.bf16.mxu1 %v12473_v28  ;;  %2665 = vmatmul.mubr.f32.gmra.mrb[14].mxu0 %v10615_v25  ;;  %v12486_v33 = vand.u32 4294901760, %v12485_v35  ;;  %v12493_v35 = vld [vmem:[#allocation68_spill] sm:$0xff] }
 0x2a1   : > { %5975 = vmatmul.mubr.f32.gmra.mrb[14].mxu1 %v10637_v21  ;;  %2670 = vmatprep.mubr.f32.mxu0 %v11994_v10 }
 0x2a2   : > { %5980 = vmatprep.mubr.f32.mxu1 %v11994_v10  ;;  %7287 = vmatpush1.bf16.msra.mxu0 %v12478_v51 }
 0x2a3   : > { %7671 = vmatpush1.bf16.msra.mxu1 %v12478_v51  ;;  %7289 = vmatprep.subr.bf16.mxu0 %v7288_v52  ;;  %v12483_v51 = vld [vmem:[#allocation49_spill] sm:$0xff] }
 0x2a4   : > { %7673 = vmatprep.subr.bf16.mxu1 %v7288_v52  ;;  %2673 = vmatmul.mubr.f32.gmra.mrb[16].mxu0 %v10646_v16  ;;  %v12481_v52 = vld [vmem:[#allocation36_spill] sm:$0xff]  ;;  %v12484_v28 = vand.u32 4294901760, %v12483_v51 }
 0x2a5   : > { %5983 = vmatmul.mubr.f32.gmra.mrb[16].mxu1 %v10680_v42  ;;  %2678 = vmatprep.mubr.f32.mxu0 %v11994_v10  ;;  %v12482_v19 = vand.u32 4294901760, %v12481_v52  ;;  %v12490_v52 = vand.u32 4294901760, %v12489_v5 }
 0x2a6   : > { %5988 = vmatprep.mubr.f32.mxu1 %v11994_v10  ;;  %v7292_v6 = vpack.c.bf16 %v12486_v33, %v12484_v28  ;;  %v12494_v28 = vand.u32 4294901760, %v12493_v35  ;;  %v12495_v33 = vld [vmem:[#allocation70_spill] sm:$0xff] }
 0x2a7   : > { %v7290_v56 = vpack.c.bf16 %v12482_v19, %v12480_v34  ;;  %v12491_v34 = vld [vmem:[#allocation54_spill] sm:$0xff] }
 0x2a8   : > { %2681 = vmatmul.mubr.f32.gmra.mrb[18].mxu0 %v10739_v14  ;;  %v12492_v19 = vand.u32 4294901760, %v12491_v34 }
 0x2a9   : > { %5991 = vmatmul.mubr.f32.gmra.mrb[18].mxu1 %v10742_v7  ;;  %2686 = vmatprep.mubr.f32.mxu0 %v11994_v10 }
 0x2aa   : > { %5996 = vmatprep.mubr.f32.mxu1 %v11994_v10  ;;  %v7294_v51 = vpack.c.bf16 %v12492_v19, %v12490_v52  ;;  %v12503_v19 = vld [vmem:[#allocation89_spill] sm:$0xff] }
 0x2ab   : > { %v12504_v35 = vand.u32 4294901760, %v12503_v19 }
 0x2ac   : > { %2689 = vmatmul.mubr.f32.gmra.mrb[20].mxu0 %v10765_v62 }
 0x2ad   : > { %5999 = vmatmul.mubr.f32.gmra.mrb[20].mxu1 %v10768_v38  ;;  %2694 = vmatprep.mubr.f32.mxu0 %v11994_v10 }
 0x2ae   : > { %6004 = vmatprep.mubr.f32.mxu1 %v11994_v10 }
 0x2b0   : > { %2697 = vmatmul.mubr.f32.gmra.mrb[22].mxu0 %v10775_v55 }
 0x2b1   : > { %6007 = vmatmul.mubr.f32.gmra.mrb[22].mxu1 %v10778_v9  ;;  %2702 = vmatprep.mubr.f32.mxu0 %v11994_v10 }
 0x2b2   : > { %6012 = vmatprep.mubr.f32.mxu1 %v11994_v10 }
 0x2b4   : > { %2705 = vmatmul.mubr.f32.gmra.mrb[24].mxu0 %v10799_v11 }
 0x2b5   : > { %6015 = vmatmul.mubr.f32.gmra.mrb[24].mxu1 %v10802_v53  ;;  %2710 = vmatprep.mubr.f32.mxu0 %v11994_v10 }
 0x2b6   : > { %6020 = vmatprep.mubr.f32.mxu1 %v11994_v10 }
 0x2b8   : > { %2713 = vmatmul.mubr.f32.gmra.mrb[26].mxu0 %v10829_v45 }
 0x2b9   : > { %6023 = vmatmul.mubr.f32.gmra.mrb[26].mxu1 %v10832_v15  ;;  %2718 = vmatprep.mubr.f32.mxu0 %v11994_v10 }
 0x2ba   : > { %6028 = vmatprep.mubr.f32.mxu1 %v11994_v10 }
 0x2bc   : > { %2721 = vmatmul.mubr.f32.gmra.mrb[28].mxu0 %v10851_v49 }
 0x2bd   : > { %6031 = vmatmul.mubr.f32.gmra.mrb[28].mxu1 %v10854_v61  ;;  %2726 = vmatprep.mubr.f32.mxu0 %v11994_v10 }
 0x2be   : > { %6036 = vmatprep.mubr.f32.mxu1 %v11994_v10 }
 0x2c0   : > { %2729 = vmatmul.mubr.f32.gmra.mrb[30].mxu0 %v10871_v40 }
 0x2c1   : > { %6039 = vmatmul.mubr.f32.gmra.mrb[30].mxu1 %v10874_v3  ;;  %2831 = vmatprep.mubr.f32.mxu0 %v11994_v10 }
 0x2c2   : > { %6141 = vmatprep.mubr.f32.mxu1 %v11994_v10 }
 0x2c4   : > { %2835 = vmatmul.mubr.f32.vlgmr.msra.gmra.mrb[0].mxu0 %v12487_v13  ;;  %v12496_v13 = vand.u32 4294901760, %v12495_v33 }
 0x2c5   : > { %6145 = vmatmul.mubr.f32.vlgmr.msra.gmra.mrb[0].mxu1 %v12488_v2  ;;  %7291 = vmatpush1.bf16.msra.mxu0 %v7290_v56  ;;  %v12497_v2 = vand.u32 4294901760, %v12454_v36  ;;  %v12505_v36 = vld [vmem:[#allocation25_spill] sm:$0xff] }
 0x2c6   : > { %7675 = vmatpush1.bf16.msra.mxu1 %v7290_v56  ;;  %2840 = vmatprep.mubr.f32.mxu0 %v11994_v10  ;;  %v7296_v17 = vpack.c.bf16 %v12496_v13, %v12494_v28  ;;  %v12499_v56 = vld [vmem:[#allocation73_spill] sm:$0xff]  ;;  %v12506_v28 = vand.u32 4294901760, %v12505_v36  ;;  %v12508_v13 = vand.u32 4294901760, %v10367_v12  ;;  %v12517_v12 = vand.u32 4294901760, %v12461_v63  ;;  %v12525_v63 = vld [vmem:[#allocation48_spill] sm:$0xff] }
 0x2c7   : > { %6150 = vmatprep.mubr.f32.mxu1 %v11994_v10  ;;  %7293 = vmatprep.subr.bf16.mxu0 %v7292_v6  ;;  %v12500_v5 = vand.u32 4294901760, %v12499_v56 }
 0x2c8   : > { %7677 = vmatprep.subr.bf16.mxu1 %v7292_v6  ;;  %2844 = vmatmul.mubr.f32.gmra.mrb[2].mxu0 %v12497_v2  ;;  %v12501_v6 = vld [vmem:[#allocation75_spill] sm:$0xff]  ;;  %v7300_v33 = vpack.c.bf16 %v12506_v28, %v12504_v35  ;;  %v12518_v35 = vand.u32 4294901760, %v12462_v0  ;;  %v12527_v0 = vand.u32 4294901760, %v12465_v20  ;;  %v12535_v20 = vld [vmem:[#allocation26_spill] sm:$0xff] }
 0x2c9   : > { %6154 = vmatmul.mubr.f32.gmra.mrb[2].mxu1 %v12498_v30  ;;  %2849 = vmatprep.mubr.f32.mxu0 %v11994_v10  ;;  %v12502_v52 = vand.u32 4294901760, %v12501_v6  ;;  %v12521_v28 = vld [vmem:[#allocation39_spill] sm:$0xff] }
 0x2ca   : > { %6159 = vmatprep.mubr.f32.mxu1 %v11994_v10  ;;  %7295 = vmatpush1.bf16.msra.mxu0 %v7294_v51 }
 0x2cb   : > { %7679 = vmatpush1.bf16.msra.mxu1 %v7294_v51  ;;  %v7298_v34 = vpack.c.bf16 %v12502_v52, %v12500_v5  ;;  %7297 = vmatprep.subr.bf16.mxu0 %v7296_v17  ;;  %v12509_v51 = vld [vmem:[#allocation29_spill] sm:$0xff]  ;;  %v12516_v52 = vand.u32 4294901760, %v12515_v27 }
 0x2cc   : > { %7681 = vmatprep.subr.bf16.mxu1 %v7296_v17  ;;  %2853 = vmatmul.mubr.f32.gmra.mrb[4].mxu0 %v12507_v43  ;;  %v12510_v2 = vand.u32 4294901760, %v12509_v51  ;;  %v12511_v17 = vld [vmem:[#allocation12_spill] sm:$0xff]  ;;  %v12513_v5 = vld [vmem:[#allocation37_spill] sm:$0xff] }
 0x2cd   : > { %6163 = vmatmul.mubr.f32.gmra.mrb[4].mxu1 %v12508_v13  ;;  %2858 = vmatprep.mubr.f32.mxu0 %v11994_v10  ;;  %v12512_v30 = vand.u32 4294901760, %v12511_v17  ;;  %v12514_v6 = vand.u32 4294901760, %v12513_v5  ;;  %v12523_v13 = vld [vmem:[#allocation21_spill] sm:$0xff] }
 0x2ce   : > { %6168 = vmatprep.mubr.f32.mxu1 %v11994_v10  ;;  %7299 = vmatpush1.bf16.msra.mxu0 %v7298_v34  ;;  %v12524_v51 = vand.u32 4294901760, %v12523_v13 }
 0x2cf   : > { %7683 = vmatpush1.bf16.msra.mxu1 %v7298_v34  ;;  %v7302_v56 = vpack.c.bf16 %v12512_v30, %v12510_v2  ;;  %7301 = vmatprep.subr.bf16.mxu0 %v7300_v33  ;;  %v7304_v19 = vpack.c.bf16 %v12516_v52, %v12514_v6  ;;  %v12519_v34 = vld [vmem:[#allocation17_spill] sm:$0xff]  ;;  %v12526_v2 = vand.u32 4294901760, %v12525_v63  ;;  %v12528_v30 = vand.u32 4294901760, %v12466_v23  ;;  %v12531_v6 = vld [vmem:[#allocation50_spill] sm:$0xff] }
 0x2d0   : > { %7685 = vmatprep.subr.bf16.mxu1 %v7300_v33  ;;  %2862 = vmatmul.mubr.f32.gmra.mrb[6].mxu0 %v12517_v12  ;;  %v12520_v36 = vand.u32 4294901760, %v12519_v34  ;;  %v12522_v33 = vand.u32 4294901760, %v12521_v28  ;;  %v12532_v27 = vand.u32 4294901760, %v12531_v6  ;;  %v12537_v23 = vand.u32 4294901760, %v10455_v4  ;;  %v12539_v28 = vld [vmem:[#allocation55_spill] sm:$0xff] }
 0x2d1   : > { %6172 = vmatmul.mubr.f32.gmra.mrb[6].mxu1 %v12518_v35  ;;  %2867 = vmatprep.mubr.f32.mxu0 %v11994_v10  ;;  %v7308_v17 = vpack.c.bf16 %v12526_v2, %v12524_v51  ;;  %v12536_v35 = vand.u32 4294901760, %v12535_v20  ;;  %v12543_v63 = vand.u32 4294901760, %v10326_v48  ;;  %v12544_v4 = vand.u32 4294901760, %v10331_v32  ;;  %v12586_v20 = vld [vmem:[#allocation97_spill] sm:$0xff] }
 0x2d2   : > { %6177 = vmatprep.mubr.f32.mxu1 %v11994_v10  ;;  %7303 = vmatpush1.bf16.msra.mxu0 %v7302_v56  ;;  %v7306_v43 = vpack.c.bf16 %v12522_v33, %v12520_v36  ;;  %v12538_v36 = vand.u32 4294901760, %v12469_v50  ;;  %v12540_v33 = vand.u32 4294901760, %v12539_v28  ;;  %v12545_v50 = vand.u32 4294901760, %v10490_v59  ;;  %v12591_v28 = vld [vmem:[#allocation102_spill] sm:$0xff] }
 0x2d3   : > { %7687 = vmatpush1.bf16.msra.mxu1 %v7302_v56  ;;  %7305 = vmatprep.subr.bf16.mxu0 %v7304_v19  ;;  %v12529_v56 = vld [vmem:[#allocation22_spill] sm:$0xff]  ;;  %v7316_v2 = vpack.c.bf16 %v12544_v4, %v12543_v63  ;;  %v12551_v32 = vand.u32 4294901760, %v10615_v25  ;;  %v12552_v59 = vand.u32 4294901760, %v10637_v21  ;;  %v12554_v6 = vand.u32 4294901760, %v10680_v42  ;;  %v12596_v63 = vld [vmem:[#allocation41_spill] sm:$0xff]  ;;  %v12597_v4 = vld [vmem:[#allocation107_spill] sm:$0xff] }
 0x2d4   : > { %7689 = vmatprep.subr.bf16.mxu1 %v7304_v19  ;;  %2871 = vmatmul.mubr.f32.gmra.mrb[8].mxu0 %v12527_v0  ;;  %v12530_v5 = vand.u32 4294901760, %v12529_v56  ;;  %v12533_v19 = vld [vmem:[#allocation53_spill] sm:$0xff]  ;;  %v12547_v0 = vld [vmem:[#allocation66_spill] sm:$0xff]  ;;  %v12555_v25 = vand.u32 4294901760, %v10739_v14  ;;  %v12556_v21 = vand.u32 4294901760, %v10742_v7  ;;  %v12558_v42 = vand.u32 4294901760, %v10768_v38 }
 0x2d5   : > { %6181 = vmatmul.mubr.f32.gmra.mrb[8].mxu1 %v12528_v30  ;;  %2876 = vmatprep.mubr.f32.mxu0 %v11994_v10  ;;  %v12534_v12 = vand.u32 4294901760, %v12533_v19  ;;  %v12548_v30 = vand.u32 4294901760, %v12547_v0  ;;  %v12549_v56 = vld [vmem:[#allocation69_spill] sm:$0xff]  ;;  %v12559_v14 = vand.u32 4294901760, %v10775_v55  ;;  %v12560_v7 = vand.u32 4294901760, %v10778_v9  ;;  %v12584_v19 = vld [vmem:[#allocation95_spill] sm:$0xff] }
 0x2d6   : > { %6186 = vmatprep.mubr.f32.mxu1 %v11994_v10  ;;  %7307 = vmatpush1.bf16.msra.mxu0 %v7306_v43  ;;  %v7310_v52 = vpack.c.bf16 %v12532_v27, %v12530_v5  ;;  %v12550_v5 = vand.u32 4294901760, %v12549_v56  ;;  %v12562_v38 = vand.u32 4294901760, %v10802_v53  ;;  %v12563_v55 = vand.u32 4294901760, %v10829_v45  ;;  %v12582_v27 = vld [vmem:[#allocation94_spill] sm:$0xff] }
 0x2d7   : > { %7691 = vmatpush1.bf16.msra.mxu1 %v7306_v43  ;;  %7309 = vmatprep.subr.bf16.mxu0 %v7308_v17  ;;  %v7312_v34 = vpack.c.bf16 %v12536_v35, %v12534_v12  ;;  %v12541_v43 = vld [vmem:[#allocation27_spill] sm:$0xff]  ;;  %v12564_v9 = vand.u32 4294901760, %v10832_v15  ;;  %v12566_v53 = vand.u32 4294901760, %v10854_v61  ;;  %v12567_v45 = vand.u32 4294901760, %v10871_v40  ;;  %v12576_v61 = vld [vmem:[#allocation86_spill] sm:$0xff]  ;;  %v12585_v12 = vld [vmem:[#allocation96_spill] sm:$0xff] }
 0x2d8   : > { %7693 = vmatprep.subr.bf16.mxu1 %v7308_v17  ;;  %2880 = vmatmul.mubr.f32.gmra.mrb[10].mxu0 %v12537_v23  ;;  %v12542_v13 = vand.u32 4294901760, %v12541_v43  ;;  %v12546_v17 = vand.u32 4294901760, %v10579_v41  ;;  %v7318_v48 = vpack.c.bf16 %v12550_v5, %v12548_v30  ;;  %v12553_v41 = vand.u32 4294901760, %v10646_v16  ;;  %v12569_v40 = vld [vmem:[#allocation71_spill] sm:$0xff]  ;;  %v12587_v35 = vld [vmem:[#allocation98_spill] sm:$0xff]  ;;  %v12589_v23 = vld [vmem:[#allocation100_spill] sm:$0xff] }
 0x2d9   : > { %6190 = vmatmul.mubr.f32.gmra.mrb[10].mxu1 %v12538_v36  ;;  %2885 = vmatprep.mubr.f32.mxu0 %v11994_v10  ;;  %v12557_v16 = vand.u32 4294901760, %v10765_v62  ;;  %v12561_v62 = vand.u32 4294901760, %v10799_v11  ;;  %v12565_v11 = vand.u32 4294901760, %v10851_v49  ;;  %v12568_v15 = vand.u32 4294901760, %v10874_v3  ;;  %v12570_v49 = vld [vmem:[#allocation74_spill] sm:$0xff]  ;;  %v12578_v3 = vld [vmem:[#allocation88_spill] sm:$0xff] }
 0x2da   : > { %6195 = vmatprep.mubr.f32.mxu1 %v11994_v10  ;;  %7311 = vmatpush1.bf16.msra.mxu0 %v7310_v52  ;;  %v7314_v51 = vpack.c.bf16 %v12542_v13, %v12540_v33  ;;  %v12590_v36 = vld [vmem:[#allocation101_spill] sm:$0xff]  ;;  %v12592_v33 = vld [vmem:[#allocation103_spill] sm:$0xff]  ;;  %v12593_v43 = vld [vmem:[#allocation104_spill] sm:$0xff] }
 0x2db   : > { %7695 = vmatpush1.bf16.msra.mxu1 %v7310_v52  ;;  %7313 = vmatprep.subr.bf16.mxu0 %v7312_v34  ;;  %v12583_v52 = vld [vmem:[#allocation15_spill] sm:$0xff]  ;;  %v12594_v13 = vld [vmem:[#allocation105_spill] sm:$0xff] }
 0x2dc   : > { %7697 = vmatprep.subr.bf16.mxu1 %v7312_v34  ;;  %2889 = vmatmul.mubr.f32.gmra.mrb[12].mxu0 %v12545_v50  ;;  %v12588_v34 = vld [vmem:[#allocation99_spill] sm:$0xff]  ;;  %v12599_v50 = vld [vmem:[#allocation109_spill] sm:$0xff] }
 0x2dd   : > { %6199 = vmatmul.mubr.f32.gmra.mrb[12].mxu1 %v12546_v17  ;;  %2894 = vmatprep.mubr.f32.mxu0 %v11994_v10 }
 0x2de   : > { %6204 = vmatprep.mubr.f32.mxu1 %v11994_v10  ;;  %7315 = vmatpush1.bf16.msra.mxu0 %v7314_v51 }
 0x2df   : > { %7699 = vmatpush1.bf16.msra.mxu1 %v7314_v51  ;;  %7317 = vmatprep.subr.bf16.mxu0 %v7316_v2  ;;  %v12595_v51 = vld [vmem:[#allocation106_spill] sm:$0xff] }
 0x2e0   : > { %7701 = vmatprep.subr.bf16.mxu1 %v7316_v2  ;;  %2898 = vmatmul.mubr.f32.gmra.mrb[14].mxu0 %v12551_v32  ;;  %v12598_v2 = vld [vmem:[#allocation108_spill] sm:$0xff] }
 0x2e1   : > { %6208 = vmatmul.mubr.f32.gmra.mrb[14].mxu1 %v12552_v59  ;;  %2903 = vmatprep.mubr.f32.mxu0 %v11994_v10 }
 0x2e2   : > { %6213 = vmatprep.mubr.f32.mxu1 %v11994_v10  ;;  %7319 = vmatpush1.bf16.msra.mxu0 %v7318_v48 }
 0x2e3   : > { %7703 = vmatpush1.bf16.msra.mxu1 %v7318_v48  ;;  %7321 = vmatprep.subr.bf16.mxu0 %v12449_v39 }
 0x2e4   : > { %7705 = vmatprep.subr.bf16.mxu1 %v12449_v39  ;;  %2907 = vmatmul.mubr.f32.gmra.mrb[16].mxu0 %v12553_v41  ;;  %v12579_v39 = vld [vmem:[#allocation13_spill] sm:$0xff] }
 0x2e5   : > { %6217 = vmatmul.mubr.f32.gmra.mrb[16].mxu1 %v12554_v6  ;;  %2912 = vmatprep.mubr.f32.mxu0 %v11994_v10 }
 0x2e6   : > { %6222 = vmatprep.mubr.f32.mxu1 %v11994_v10 }
 0x2e8   : > { %2916 = vmatmul.mubr.f32.gmra.mrb[18].mxu0 %v12555_v25 }
 0x2e9   : > { %6226 = vmatmul.mubr.f32.gmra.mrb[18].mxu1 %v12556_v21  ;;  %2921 = vmatprep.mubr.f32.mxu0 %v11994_v10 }
 0x2ea   : > { %6231 = vmatprep.mubr.f32.mxu1 %v11994_v10 }
 0x2ec   : > { %2925 = vmatmul.mubr.f32.gmra.mrb[20].mxu0 %v12557_v16 }
 0x2ed   : > { %6235 = vmatmul.mubr.f32.gmra.mrb[20].mxu1 %v12558_v42  ;;  %2930 = vmatprep.mubr.f32.mxu0 %v11994_v10 }
 0x2ee   : > { %6240 = vmatprep.mubr.f32.mxu1 %v11994_v10 }
 0x2f0   : > { %2934 = vmatmul.mubr.f32.gmra.mrb[22].mxu0 %v12559_v14 }
 0x2f1   : > { %6244 = vmatmul.mubr.f32.gmra.mrb[22].mxu1 %v12560_v7  ;;  %2939 = vmatprep.mubr.f32.mxu0 %v11994_v10 }
 0x2f2   : > { %6249 = vmatprep.mubr.f32.mxu1 %v11994_v10 }
 0x2f4   : > { %2943 = vmatmul.mubr.f32.gmra.mrb[24].mxu0 %v12561_v62 }
 0x2f5   : > { %6253 = vmatmul.mubr.f32.gmra.mrb[24].mxu1 %v12562_v38  ;;  %2948 = vmatprep.mubr.f32.mxu0 %v11994_v10 }
 0x2f6   : > { %6258 = vmatprep.mubr.f32.mxu1 %v11994_v10 }
 0x2f8   : > { %2952 = vmatmul.mubr.f32.gmra.mrb[26].mxu0 %v12563_v55 }
 0x2f9   : > { %6262 = vmatmul.mubr.f32.gmra.mrb[26].mxu1 %v12564_v9  ;;  %2957 = vmatprep.mubr.f32.mxu0 %v11994_v10 }
 0x2fa   : > { %6267 = vmatprep.mubr.f32.mxu1 %v11994_v10 }
 0x2fc   : > { %2961 = vmatmul.mubr.f32.gmra.mrb[28].mxu0 %v12565_v11 }
 0x2fd   : > { %6271 = vmatmul.mubr.f32.gmra.mrb[28].mxu1 %v12566_v53  ;;  %2966 = vmatprep.mubr.f32.mxu0 %v11994_v10 }
 0x2fe   : > { %6276 = vmatprep.mubr.f32.mxu1 %v11994_v10 }
 0x300   : > { %2970 = vmatmul.mubr.f32.gmra.mrb[30].mxu0 %v12567_v45 }
 0x301   : > { %6280 = vmatmul.mubr.f32.gmra.mrb[30].mxu1 %v12568_v15  ;;  %3136 = vmatprep.mubr.f32.mxu0 %v11994_v10 }
 0x302   : > { %6446 = vmatprep.mubr.f32.mxu1 %v11994_v10 }
 0x304   : > { %3138 = vmatmul.mubr.f32.vlgmr.msra.gmra.mrb[0].mxu0 %v10200_v24 }
 0x305   : > { %6448 = vmatmul.mubr.f32.vlgmr.msra.gmra.mrb[0].mxu1 %v12429_v57  ;;  %7323 = vmatpush1.bf16.msra.mxu0 %v12452_v54 }
 0x306   : > { %7707 = vmatpush1.bf16.msra.mxu1 %v12452_v54  ;;  %3143 = vmatprep.mubr.f32.mxu0 %v11994_v10  ;;  %v12580_v54 = vld [vmem:[#allocation30_spill] sm:$0xff] }
 0x307   : > { %6453 = vmatprep.mubr.f32.mxu1 %v11994_v10  ;;  %7325 = vmatprep.subr.bf16.mxu0 %v12453_v60 }
 0x308   : > { %7709 = vmatprep.subr.bf16.mxu1 %v12453_v60  ;;  %3145 = vmatmul.mubr.f32.gmra.mrb[2].mxu0 %v12432_v22  ;;  %v12581_v60 = vld [vmem:[#allocation93_spill] sm:$0xff] }
 0x309   : > { %6455 = vmatmul.mubr.f32.gmra.mrb[2].mxu1 %v12433_v18  ;;  %3150 = vmatprep.mubr.f32.mxu0 %v11994_v10 }
 0x30a   : > { %6460 = vmatprep.mubr.f32.mxu1 %v11994_v10  ;;  %7327 = vmatpush1.bf16.msra.mxu0 %v12456_v8 }
 0x30b   : > { %7711 = vmatpush1.bf16.msra.mxu1 %v12456_v8  ;;  %7329 = vmatprep.subr.bf16.mxu0 %v12457_v37  ;;  %v12571_v8 = vld [vmem:[#allocation77_spill] sm:$0xff] }
 0x30c   : > { %7713 = vmatprep.subr.bf16.mxu1 %v12457_v37  ;;  %3152 = vmatmul.mubr.f32.gmra.mrb[4].mxu0 %v12436_v47  ;;  %v12577_v37 = vld [vmem:[#allocation91_spill] sm:$0xff] }
 0x30d   : > { %6462 = vmatmul.mubr.f32.gmra.mrb[4].mxu1 %v12437_v31  ;;  %3157 = vmatprep.mubr.f32.mxu0 %v11994_v10 }
 0x30e   : > { %6467 = vmatprep.mubr.f32.mxu1 %v11994_v10  ;;  %7331 = vmatpush1.bf16.msra.mxu0 %v12459_v29 }
 0x30f   : > { %7715 = vmatpush1.bf16.msra.mxu1 %v12459_v29  ;;  %7333 = vmatprep.subr.bf16.mxu0 %v12460_v1  ;;  %v12572_v29 = vld [vmem:[#allocation78_spill] sm:$0xff] }
 0x310   : > { %7717 = vmatprep.subr.bf16.mxu1 %v12460_v1  ;;  %3159 = vmatmul.mubr.f32.gmra.mrb[6].mxu0 %v12440_v44  ;;  %v12574_v1 = vld [vmem:[#allocation90_spill] sm:$0xff] }
 0x311   : > { %6469 = vmatmul.mubr.f32.gmra.mrb[6].mxu1 %v10387_v26  ;;  %3164 = vmatprep.mubr.f32.mxu0 %v11994_v10 }
 0x312   : > { %6474 = vmatprep.mubr.f32.mxu1 %v11994_v10  ;;  %7335 = vmatpush1.bf16.msra.mxu0 %v12463_v58 }
 0x313   : > { %7719 = vmatpush1.bf16.msra.mxu1 %v12463_v58  ;;  %7337 = vmatprep.subr.bf16.mxu0 %v12464_v46  ;;  %v12573_v58 = vld [vmem:[#allocation76_spill] sm:$0xff] }
 0x314   : > { %7721 = vmatprep.subr.bf16.mxu1 %v12464_v46  ;;  %3166 = vmatmul.mubr.f32.gmra.mrb[8].mxu0 %v12569_v40  ;;  %v12575_v46 = vld [vmem:[#allocation84_spill] sm:$0xff] }
 0x315   : > { %6476 = vmatmul.mubr.f32.gmra.mrb[8].mxu1 %v12570_v49  ;;  %3171 = vmatprep.mubr.f32.mxu0 %v11994_v10 }
 0x316   : > { %6481 = vmatprep.mubr.f32.mxu1 %v11994_v10  ;;  %7339 = vmatpush1.bf16.msra.mxu0 %v12571_v8 }
 0x317   : > { %7723 = vmatpush1.bf16.msra.mxu1 %v12571_v8  ;;  %7341 = vmatprep.subr.bf16.mxu0 %v12572_v29 }
 0x318   : > { %7725 = vmatprep.subr.bf16.mxu1 %v12572_v29  ;;  %3173 = vmatmul.mubr.f32.gmra.mrb[10].mxu0 %v12573_v58 }
 0x319   : > { %6483 = vmatmul.mubr.f32.gmra.mrb[10].mxu1 %v12574_v1  ;;  %3178 = vmatprep.mubr.f32.mxu0 %v11994_v10 }
 0x31a   : > { %6488 = vmatprep.mubr.f32.mxu1 %v11994_v10  ;;  %7343 = vmatpush1.bf16.msra.mxu0 %v12575_v46 }
 0x31b   : > { %7727 = vmatpush1.bf16.msra.mxu1 %v12575_v46  ;;  %7345 = vmatprep.subr.bf16.mxu0 %v12576_v61 }
 0x31c   : > { %7729 = vmatprep.subr.bf16.mxu1 %v12576_v61  ;;  %3180 = vmatmul.mubr.f32.gmra.mrb[12].mxu0 %v12577_v37 }
 0x31d   : > { %6490 = vmatmul.mubr.f32.gmra.mrb[12].mxu1 %v12578_v3  ;;  %3185 = vmatprep.mubr.f32.mxu0 %v11994_v10 }
 0x31e   : > { %6495 = vmatprep.mubr.f32.mxu1 %v11994_v10  ;;  %7347 = vmatpush1.bf16.msra.mxu0 %v12579_v39 }
 0x31f   : > { %7731 = vmatpush1.bf16.msra.mxu1 %v12579_v39  ;;  %7349 = vmatprep.subr.bf16.mxu0 %v12580_v54 }
 0x320   : > { %7733 = vmatprep.subr.bf16.mxu1 %v12580_v54  ;;  %3187 = vmatmul.mubr.f32.gmra.mrb[14].mxu0 %v12581_v60 }
 0x321   : > { %6497 = vmatmul.mubr.f32.gmra.mrb[14].mxu1 %v12582_v27  ;;  %3192 = vmatprep.mubr.f32.mxu0 %v11994_v10 }
 0x322   : > { %6502 = vmatprep.mubr.f32.mxu1 %v11994_v10  ;;  %7351 = vmatpush1.bf16.msra.mxu0 %v12583_v52 }
 0x323   : > { %7735 = vmatpush1.bf16.msra.mxu1 %v12583_v52 }
 0x324   : > { %3194 = vmatmul.mubr.f32.gmra.mrb[16].mxu0 %v12584_v19 }
 0x325   : > { %6504 = vmatmul.mubr.f32.gmra.mrb[16].mxu1 %v12585_v12  ;;  %3199 = vmatprep.mubr.f32.mxu0 %v11994_v10 }
 0x326   : > { %6509 = vmatprep.mubr.f32.mxu1 %v11994_v10 }
 0x328   : > { %3201 = vmatmul.mubr.f32.gmra.mrb[18].mxu0 %v12586_v20 }
 0x329   : > { %6511 = vmatmul.mubr.f32.gmra.mrb[18].mxu1 %v12587_v35  ;;  %3206 = vmatprep.mubr.f32.mxu0 %v11994_v10 }
 0x32a   : > { %6516 = vmatprep.mubr.f32.mxu1 %v11994_v10 }
 0x32c   : > { %3208 = vmatmul.mubr.f32.gmra.mrb[20].mxu0 %v12588_v34 }
 0x32d   : > { %6518 = vmatmul.mubr.f32.gmra.mrb[20].mxu1 %v12589_v23  ;;  %3213 = vmatprep.mubr.f32.mxu0 %v11994_v10 }
 0x32e   : > { %6523 = vmatprep.mubr.f32.mxu1 %v11994_v10 }
 0x330   : > { %3215 = vmatmul.mubr.f32.gmra.mrb[22].mxu0 %v12590_v36 }
 0x331   : > { %6525 = vmatmul.mubr.f32.gmra.mrb[22].mxu1 %v12591_v28  ;;  %3220 = vmatprep.mubr.f32.mxu0 %v11994_v10 }
 0x332   : > { %6530 = vmatprep.mubr.f32.mxu1 %v11994_v10 }
 0x334   : > { %3222 = vmatmul.mubr.f32.gmra.mrb[24].mxu0 %v12592_v33 }
 0x335   : > { %6532 = vmatmul.mubr.f32.gmra.mrb[24].mxu1 %v12593_v43  ;;  %3227 = vmatprep.mubr.f32.mxu0 %v11994_v10 }
 0x336   : > { %6537 = vmatprep.mubr.f32.mxu1 %v11994_v10 }
 0x338   : > { %3229 = vmatmul.mubr.f32.gmra.mrb[26].mxu0 %v12594_v13 }
 0x339   : > { %6539 = vmatmul.mubr.f32.gmra.mrb[26].mxu1 %v12595_v51  ;;  %3234 = vmatprep.mubr.f32.mxu0 %v11994_v10 }
 0x33a   : > { %6544 = vmatprep.mubr.f32.mxu1 %v11994_v10 }
 0x33c   : > { %3236 = vmatmul.mubr.f32.gmra.mrb[28].mxu0 %v12596_v63 }
 0x33d   : > { %6546 = vmatmul.mubr.f32.gmra.mrb[28].mxu1 %v12597_v4  ;;  %3241 = vmatprep.mubr.f32.mxu0 %v11994_v10 }
 0x33e   : > { %6551 = vmatprep.mubr.f32.mxu1 %v11994_v10 }
 0x340   : > { %3243 = vmatmul.mubr.f32.gmra.mrb[30].mxu0 %v12598_v2 }
 0x341   : > { %6553 = vmatmul.mubr.f32.gmra.mrb[30].mxu1 %v12599_v50  ;;  %3345 = vmatprep.mubr.f32.mxu0 %v11994_v10 }
 0x342   : > { %6655 = vmatprep.mubr.f32.mxu1 %v11994_v10 }
 0x344   : > { %3347 = vmatmul.mubr.f32.vlgmr.msra.gmra.mrb[0].mxu0 %v10200_v24 }
 0x345   : > { %6657 = vmatmul.mubr.f32.vlgmr.msra.gmra.mrb[0].mxu1 %v12429_v57  ;;  %3352 = vmatprep.mubr.f32.mxu0 %v11994_v10 }
 0x346   : > { %6662 = vmatprep.mubr.f32.mxu1 %v11994_v10 }
 0x348   : > { %3354 = vmatmul.mubr.f32.gmra.mrb[2].mxu0 %v12432_v22 }
 0x349   : > { %6664 = vmatmul.mubr.f32.gmra.mrb[2].mxu1 %v12433_v18  ;;  %3359 = vmatprep.mubr.f32.mxu0 %v11994_v10 }
 0x34a   : > { %6669 = vmatprep.mubr.f32.mxu1 %v11994_v10 }
 0x34c   : > { %3361 = vmatmul.mubr.f32.gmra.mrb[4].mxu0 %v12436_v47 }
 0x34d   : > { %6671 = vmatmul.mubr.f32.gmra.mrb[4].mxu1 %v12437_v31  ;;  %3366 = vmatprep.mubr.f32.mxu0 %v11994_v10 }
 0x34e   : > { %6676 = vmatprep.mubr.f32.mxu1 %v11994_v10 }
 0x350   : > { %3368 = vmatmul.mubr.f32.gmra.mrb[6].mxu0 %v12440_v44 }
 0x351   : > { %6678 = vmatmul.mubr.f32.gmra.mrb[6].mxu1 %v10387_v26  ;;  %3373 = vmatprep.mubr.f32.mxu0 %v11994_v10 }
 0x352   : > { %6683 = vmatprep.mubr.f32.mxu1 %v11994_v10 }
 0x354   : > { %3375 = vmatmul.mubr.f32.gmra.mrb[8].mxu0 %v12569_v40 }
 0x355   : > { %6685 = vmatmul.mubr.f32.gmra.mrb[8].mxu1 %v12570_v49  ;;  %3380 = vmatprep.mubr.f32.mxu0 %v11994_v10 }
 0x356   : > { %6690 = vmatprep.mubr.f32.mxu1 %v11994_v10 }
 0x358   : > { %3382 = vmatmul.mubr.f32.gmra.mrb[10].mxu0 %v12573_v58 }
 0x359   : > { %6692 = vmatmul.mubr.f32.gmra.mrb[10].mxu1 %v12574_v1  ;;  %3387 = vmatprep.mubr.f32.mxu0 %v11994_v10 }
 0x35a   : > { %6697 = vmatprep.mubr.f32.mxu1 %v11994_v10 }
 0x35c   : > { %3389 = vmatmul.mubr.f32.gmra.mrb[12].mxu0 %v12577_v37 }
 0x35d   : > { %6699 = vmatmul.mubr.f32.gmra.mrb[12].mxu1 %v12578_v3  ;;  %3394 = vmatprep.mubr.f32.mxu0 %v11994_v10 }
 0x35e   : > { %6704 = vmatprep.mubr.f32.mxu1 %v11994_v10 }
 0x360   : > { %3396 = vmatmul.mubr.f32.gmra.mrb[14].mxu0 %v12581_v60 }
 0x361   : > { %6706 = vmatmul.mubr.f32.gmra.mrb[14].mxu1 %v12582_v27  ;;  %3401 = vmatprep.mubr.f32.mxu0 %v11994_v10 }
 0x362   : > { %6711 = vmatprep.mubr.f32.mxu1 %v11994_v10 }
 0x364   : > { %3403 = vmatmul.mubr.f32.gmra.mrb[16].mxu0 %v12584_v19 }
 0x365   : > { %6713 = vmatmul.mubr.f32.gmra.mrb[16].mxu1 %v12585_v12  ;;  %3408 = vmatprep.mubr.f32.mxu0 %v11994_v10 }
 0x366   : > { %6718 = vmatprep.mubr.f32.mxu1 %v11994_v10 }
 0x368   : > { %3410 = vmatmul.mubr.f32.gmra.mrb[18].mxu0 %v12586_v20 }
 0x369   : > { %6720 = vmatmul.mubr.f32.gmra.mrb[18].mxu1 %v12587_v35  ;;  %3415 = vmatprep.mubr.f32.mxu0 %v11994_v10 }
 0x36a   : > { %6725 = vmatprep.mubr.f32.mxu1 %v11994_v10 }
 0x36c   : > { %3417 = vmatmul.mubr.f32.gmra.mrb[20].mxu0 %v12588_v34 }
 0x36d   : > { %6727 = vmatmul.mubr.f32.gmra.mrb[20].mxu1 %v12589_v23  ;;  %3422 = vmatprep.mubr.f32.mxu0 %v11994_v10 }
 0x36e   : > { %6732 = vmatprep.mubr.f32.mxu1 %v11994_v10 }
 0x370   : > { %3424 = vmatmul.mubr.f32.gmra.mrb[22].mxu0 %v12590_v36 }
 0x371   : > { %6734 = vmatmul.mubr.f32.gmra.mrb[22].mxu1 %v12591_v28  ;;  %3429 = vmatprep.mubr.f32.mxu0 %v11994_v10 }
 0x372   : > { %6739 = vmatprep.mubr.f32.mxu1 %v11994_v10 }
 0x374   : > { %3431 = vmatmul.mubr.f32.gmra.mrb[24].mxu0 %v12592_v33 }
 0x375   : > { %6741 = vmatmul.mubr.f32.gmra.mrb[24].mxu1 %v12593_v43  ;;  %3436 = vmatprep.mubr.f32.mxu0 %v11994_v10 }
 0x376   : > { %6746 = vmatprep.mubr.f32.mxu1 %v11994_v10 }
 0x378   : > { %3438 = vmatmul.mubr.f32.gmra.mrb[26].mxu0 %v12594_v13 }
 0x379   : > { %6748 = vmatmul.mubr.f32.gmra.mrb[26].mxu1 %v12595_v51  ;;  %3443 = vmatprep.mubr.f32.mxu0 %v11994_v10 }
 0x37a   : > { %6753 = vmatprep.mubr.f32.mxu1 %v11994_v10 }
 0x37c   : > { %3445 = vmatmul.mubr.f32.gmra.mrb[28].mxu0 %v12596_v63 }
 0x37d   : > { %6755 = vmatmul.mubr.f32.gmra.mrb[28].mxu1 %v12597_v4  ;;  %3450 = vmatprep.mubr.f32.mxu0 %v11994_v10 }
 0x37e   : > { %6760 = vmatprep.mubr.f32.mxu1 %v11994_v10 }
 0x380   : > { %3452 = vmatmul.mubr.f32.gmra.mrb[30].mxu0 %v12598_v2 }
 0x381   : > { %6762 = vmatmul.mubr.f32.gmra.mrb[30].mxu1 %v12599_v50 }
 0x417   : > { %v3348_v24 = vpop.f32.mrb[0].mxu0 }
 0x418   : > { %v6658_v26 = vpop.f32.mrb[0].mxu1  ;;  %3458 = vst [vmem:[%s11410_s15] sm:$0xff] %v3348_v24  ;;  %v3350_v10 = vpop.f32.mrb[1].mxu0 }
 0x419   : > { %6768 = vst [vmem:[%s11410_s15 + $0x10] sm:$0xff] %v6658_v26  ;;  %v6660_v57 = vpop.f32.mrb[1].mxu1  ;;  %3459 = vst [vmem:[%s11410_s15 + $0x8] sm:$0xff] %v3350_v10 }
 0x41a   : > { %6769 = vst [vmem:[%s11410_s15 + $0x18] sm:$0xff] %v6660_v57 }
 0x41b   : > { %v3355_v22 = vpop.f32.mrb[2].mxu0 }
 0x41c   : > { %v6665_v18 = vpop.f32.mrb[2].mxu1  ;;  %3460 = vst [vmem:[%s11410_s15 + $0x20] sm:$0xff] %v3355_v22  ;;  %v3357_v47 = vpop.f32.mrb[3].mxu0 }
 0x41d   : > { %6770 = vst [vmem:[%s11410_s15 + $0x30] sm:$0xff] %v6665_v18  ;;  %v6667_v31 = vpop.f32.mrb[3].mxu1  ;;  %3461 = vst [vmem:[%s11410_s15 + $0x28] sm:$0xff] %v3357_v47 }
 0x41e   : > { %6771 = vst [vmem:[%s11410_s15 + $0x38] sm:$0xff] %v6667_v31 }
 0x41f   : > { %v3362_v44 = vpop.f32.mrb[4].mxu0 }
 0x420   : > { %v6672_v17 = vpop.f32.mrb[4].mxu1  ;;  %3462 = vst [vmem:[%s11410_s15 + $0x40] sm:$0xff] %v3362_v44  ;;  %v3364_v0 = vpop.f32.mrb[5].mxu0 }
 0x421   : > { %6772 = vst [vmem:[%s11410_s15 + $0x50] sm:$0xff] %v6672_v17  ;;  %v6674_v30 = vpop.f32.mrb[5].mxu1  ;;  %3463 = vst [vmem:[%s11410_s15 + $0x48] sm:$0xff] %v3364_v0 }
 0x422   : > { %6773 = vst [vmem:[%s11410_s15 + $0x58] sm:$0xff] %v6674_v30 }
 0x423   : > { %v3369_v56 = vpop.f32.mrb[6].mxu0 }
 0x424   : > { %v6679_v5 = vpop.f32.mrb[6].mxu1  ;;  %3464 = vst [vmem:[%s11410_s15 + $0x60] sm:$0xff] %v3369_v56  ;;  %v3371_v48 = vpop.f32.mrb[7].mxu0 }
 0x425   : > { %6774 = vst [vmem:[%s11410_s15 + $0x70] sm:$0xff] %v6679_v5  ;;  %v6681_v32 = vpop.f32.mrb[7].mxu1  ;;  %3465 = vst [vmem:[%s11410_s15 + $0x68] sm:$0xff] %v3371_v48 }
 0x426   : > { %6775 = vst [vmem:[%s11410_s15 + $0x78] sm:$0xff] %v6681_v32 }
 0x427   : > { %v3376_v59 = vpop.f32.mrb[8].mxu0 }
 0x428   : > { %v6686_v41 = vpop.f32.mrb[8].mxu1  ;;  %3466 = vst [vmem:[%s11410_s15 + $0x80] sm:$0xff] %v3376_v59  ;;  %v3378_v6 = vpop.f32.mrb[9].mxu0 }
 0x429   : > { %6776 = vst [vmem:[%s11410_s15 + $0x90] sm:$0xff] %v6686_v41  ;;  %v6688_v25 = vpop.f32.mrb[9].mxu1  ;;  %3467 = vst [vmem:[%s11410_s15 + $0x88] sm:$0xff] %v3378_v6 }
 0x42a   : > { %6777 = vst [vmem:[%s11410_s15 + $0x98] sm:$0xff] %v6688_v25 }
 0x42b   : > { %v3383_v21 = vpop.f32.mrb[10].mxu0 }
 0x42c   : > { %v6693_v16 = vpop.f32.mrb[10].mxu1  ;;  %3468 = vst [vmem:[%s11410_s15 + $0xa0] sm:$0xff] %v3383_v21  ;;  %v3385_v42 = vpop.f32.mrb[11].mxu0 }
 0x42d   : > { %6778 = vst [vmem:[%s11410_s15 + $0xb0] sm:$0xff] %v6693_v16  ;;  %v6695_v14 = vpop.f32.mrb[11].mxu1  ;;  %3469 = vst [vmem:[%s11410_s15 + $0xa8] sm:$0xff] %v3385_v42 }
 0x42e   : > { %6779 = vst [vmem:[%s11410_s15 + $0xb8] sm:$0xff] %v6695_v14 }
 0x42f   : > { %v3390_v7 = vpop.f32.mrb[12].mxu0 }
 0x430   : > { %v6700_v62 = vpop.f32.mrb[12].mxu1  ;;  %3470 = vst [vmem:[%s11410_s15 + $0xc0] sm:$0xff] %v3390_v7  ;;  %v3392_v38 = vpop.f32.mrb[13].mxu0 }
 0x431   : > { %6780 = vst [vmem:[%s11410_s15 + $0xd0] sm:$0xff] %v6700_v62  ;;  %v6702_v55 = vpop.f32.mrb[13].mxu1  ;;  %3471 = vst [vmem:[%s11410_s15 + $0xc8] sm:$0xff] %v3392_v38 }
 0x432   : > { %6781 = vst [vmem:[%s11410_s15 + $0xd8] sm:$0xff] %v6702_v55 }
 0x433   : > { %v3397_v9 = vpop.f32.mrb[14].mxu0 }
 0x434   : > { %v6707_v11 = vpop.f32.mrb[14].mxu1  ;;  %3472 = vst [vmem:[%s11410_s15 + $0xe0] sm:$0xff] %v3397_v9  ;;  %v3399_v53 = vpop.f32.mrb[15].mxu0 }
 0x435   : > { %6782 = vst [vmem:[%s11410_s15 + $0xf0] sm:$0xff] %v6707_v11  ;;  %v6709_v45 = vpop.f32.mrb[15].mxu1  ;;  %3473 = vst [vmem:[%s11410_s15 + $0xe8] sm:$0xff] %v3399_v53 }
 0x436   : > { %6783 = vst [vmem:[%s11410_s15 + $0xf8] sm:$0xff] %v6709_v45 }
 0x437   : > { %v3404_v15 = vpop.f32.mrb[16].mxu0 }
 0x438   : > { %v6714_v40 = vpop.f32.mrb[16].mxu1  ;;  %3474 = vst [vmem:[%s11410_s15 + $0x100] sm:$0xff] %v3404_v15  ;;  %v3406_v49 = vpop.f32.mrb[17].mxu0 }
 0x439   : > { %6784 = vst [vmem:[%s11410_s15 + $0x110] sm:$0xff] %v6714_v40  ;;  %v6716_v8 = vpop.f32.mrb[17].mxu1  ;;  %3475 = vst [vmem:[%s11410_s15 + $0x108] sm:$0xff] %v3406_v49 }
 0x43a   : > { %6785 = vst [vmem:[%s11410_s15 + $0x118] sm:$0xff] %v6716_v8 }
 0x43b   : > { %v3411_v29 = vpop.f32.mrb[18].mxu0 }
 0x43c   : > { %v6721_v58 = vpop.f32.mrb[18].mxu1  ;;  %3476 = vst [vmem:[%s11410_s15 + $0x120] sm:$0xff] %v3411_v29  ;;  %v3413_v1 = vpop.f32.mrb[19].mxu0 }
 0x43d   : > { %6786 = vst [vmem:[%s11410_s15 + $0x130] sm:$0xff] %v6721_v58  ;;  %v6723_v46 = vpop.f32.mrb[19].mxu1  ;;  %3477 = vst [vmem:[%s11410_s15 + $0x128] sm:$0xff] %v3413_v1 }
 0x43e   : > { %6787 = vst [vmem:[%s11410_s15 + $0x138] sm:$0xff] %v6723_v46 }
 0x43f   : > { %v3418_v61 = vpop.f32.mrb[20].mxu0 }
 0x440   : > { %v6728_v37 = vpop.f32.mrb[20].mxu1  ;;  %3478 = vst [vmem:[%s11410_s15 + $0x140] sm:$0xff] %v3418_v61  ;;  %v3420_v3 = vpop.f32.mrb[21].mxu0 }
 0x441   : > { %6788 = vst [vmem:[%s11410_s15 + $0x150] sm:$0xff] %v6728_v37  ;;  %v6730_v39 = vpop.f32.mrb[21].mxu1  ;;  %3479 = vst [vmem:[%s11410_s15 + $0x148] sm:$0xff] %v3420_v3 }
 0x442   : > { %6789 = vst [vmem:[%s11410_s15 + $0x158] sm:$0xff] %v6730_v39 }
 0x443   : > { %v3425_v54 = vpop.f32.mrb[22].mxu0 }
 0x444   : > { %v6735_v60 = vpop.f32.mrb[22].mxu1  ;;  %3480 = vst [vmem:[%s11410_s15 + $0x160] sm:$0xff] %v3425_v54  ;;  %v3427_v27 = vpop.f32.mrb[23].mxu0 }
 0x445   : > { %6790 = vst [vmem:[%s11410_s15 + $0x170] sm:$0xff] %v6735_v60  ;;  %v6737_v52 = vpop.f32.mrb[23].mxu1  ;;  %3481 = vst [vmem:[%s11410_s15 + $0x168] sm:$0xff] %v3427_v27 }
 0x446   : > { %6791 = vst [vmem:[%s11410_s15 + $0x178] sm:$0xff] %v6737_v52 }
 0x447   : > { %v3432_v19 = vpop.f32.mrb[24].mxu0 }
 0x448   : > { %v6742_v12 = vpop.f32.mrb[24].mxu1  ;;  %3482 = vst [vmem:[%s11410_s15 + $0x180] sm:$0xff] %v3432_v19  ;;  %v3434_v20 = vpop.f32.mrb[25].mxu0 }
 0x449   : > { %6792 = vst [vmem:[%s11410_s15 + $0x190] sm:$0xff] %v6742_v12  ;;  %v6744_v35 = vpop.f32.mrb[25].mxu1  ;;  %3483 = vst [vmem:[%s11410_s15 + $0x188] sm:$0xff] %v3434_v20 }
 0x44a   : > { %6793 = vst [vmem:[%s11410_s15 + $0x198] sm:$0xff] %v6744_v35 }
 0x44b   : > { %v3439_v34 = vpop.f32.mrb[26].mxu0 }
 0x44c   : > { %v6749_v23 = vpop.f32.mrb[26].mxu1  ;;  %3484 = vst [vmem:[%s11410_s15 + $0x1a0] sm:$0xff] %v3439_v34  ;;  %v3441_v36 = vpop.f32.mrb[27].mxu0 }
 0x44d   : > { %6794 = vst [vmem:[%s11410_s15 + $0x1b0] sm:$0xff] %v6749_v23  ;;  %v6751_v28 = vpop.f32.mrb[27].mxu1  ;;  %3485 = vst [vmem:[%s11410_s15 + $0x1a8] sm:$0xff] %v3441_v36 }
 0x44e   : > { %6795 = vst [vmem:[%s11410_s15 + $0x1b8] sm:$0xff] %v6751_v28 }
 0x44f   : > { %v3446_v33 = vpop.f32.mrb[28].mxu0 }
 0x450   : > { %v6756_v43 = vpop.f32.mrb[28].mxu1  ;;  %3486 = vst [vmem:[%s11410_s15 + $0x1c0] sm:$0xff] %v3446_v33  ;;  %v3448_v13 = vpop.f32.mrb[29].mxu0 }
 0x451   : > { %6796 = vst [vmem:[%s11410_s15 + $0x1d0] sm:$0xff] %v6756_v43  ;;  %v6758_v51 = vpop.f32.mrb[29].mxu1  ;;  %3487 = vst [vmem:[%s11410_s15 + $0x1c8] sm:$0xff] %v3448_v13 }
 0x452   : > { %6797 = vst [vmem:[%s11410_s15 + $0x1d8] sm:$0xff] %v6758_v51 }
 0x453   : > { %v3453_v63 = vpop.f32.mrb[30].mxu0 }
 0x454   : > { %v6763_v4 = vpop.f32.mrb[30].mxu1  ;;  %3488 = vst [vmem:[%s11410_s15 + $0x1e0] sm:$0xff] %v3453_v63  ;;  %v3455_v2 = vpop.f32.mrb[31].mxu0 }
 0x455   : > { %6798 = vst [vmem:[%s11410_s15 + $0x1f0] sm:$0xff] %v6763_v4  ;;  %v6765_v50 = vpop.f32.mrb[31].mxu1  ;;  %3489 = vst [vmem:[%s11410_s15 + $0x1e8] sm:$0xff] %v3455_v2 }
 0x456   : > { %6799 = vst [vmem:[%s11410_s15 + $0x1f8] sm:$0xff] %v6765_v50 }
 0x457   : > { %8575 = shalt.err (!%p8572_p7)
}
 0x458   : > { %s8576_s18 = scalar_lea.hbm %s11477_s28, 8192  ;;  %s8580_s20 = scalar_lea.hbm %s11529_s2, 16384 }
 0x459   : > { %p8577_p9 = scmp.ne.s32.totalorder %s11477_s28, %s8576_s18  ;;  %p8581_p5 = scmp.lt.u32.totalorder %s11477_s28, %s11529_s2 }
 0x45a   : > { %p8582_p11 = scmp.lt.u32.totalorder %s8580_s20, %s8576_s18  ;;  %p8584_p4 = scmp.lt.u32.totalorder %s8576_s18, %s11477_s28 }
 0x45b   : > { %p8578_p2 = pnand %p8577_p9, %p8750_p12 }
 0x45c   : > { %p8583_p1 = por %p8582_p11, %p8581_p5 }
 0x45d   : > { %p8579_p0 = pneg %p8578_p2 }
 0x45e   : > { %p8585_p6 = por %p8584_p4, %p8583_p1 }
 0x460   : > { %p8586_p8 = pnand %p8585_p6, %p8579_p0 }
 0x462   : > { %8589 = shalt.err (!%p8586_p8)
}
 0x463   : > { %s8642_s30 = smov 512   ;;  %s8643_s3 = smov 32  }
 0x464   : > { %8446 = dma.vmem_to_hbm [thread:$0]  (%p8750_p12), %s11479_s27, 8192, %s11477_s28, %s6801_s13, %s8642_s30, %s8642_s30, %s8643_s3  }
 0x465 PF: > { %s6830_s15 = sand.u32 1, %s8620_s9   ;;  %p12600_p10 = scmp.ne.s32.totalorder %s11948_s16, 0 }
 0x466   : > { %p12601_p13 = scmp.ge.s32.totalorder %s8632_s12, 2  ;;  %s6831_s17 = scalar_lea.sflag [#allocation4], %s6830_s15 }
 0x468   : > { %p8457_p3 = pnand %p12601_p13, %p12600_p10 }
 0x46a   : > { %8615 = dma.done.wait (!%p8457_p3), %s6831_s17, 8192  }
 0x46b   : > { %8617 = vsyncadd (!%p8457_p3), %s6831_s17, 4294959104  ;;  %p16_p7 = scmp.ge.s32.totalorder %s8715_s21, 4   ;;  %s12602_s9 = smov %s8624_s10 }
 0x46c   : > { %s12603_s10 = smov %s8628_s11  ;;  %s12604_s11 = smov %s8746_s8 }
 0x46d   : > { %s12605_s12 = smov %s8715_s21  ;;  %18 = sbr.rel (!%p16_p7) target bundleno = 6 (0x6), region = 81 }
 0x474   :  { %6836 = vsyncpa [#allocation3], 1 }
 0x475   :  { %6838 = vsyncpa [#allocation3 + $0x1], 1 }
 0x476   :  { %6839 = vsyncpa [#allocation6], 1 }
 0x477   :  { %6840 = vsyncpa [#allocation4], 1 }
 0x478   :  { %6842 = vsyncpa [#allocation4 + $0x1], 1 }

</bundles_post_ra>
